<compile_context>
chip_gen: v6e
topology: v6e:2x2x1
jax: 0.10.0
libtpu: 0.0.40
codegen_flags: <defaults>
</compile_context>

<pallas_src>
import jax
import jax.numpy as jnp
from jax.experimental import pallas as pl
from jax.experimental.pallas import tpu as pltpu

HID = 100           # true hidden width of the PyTorch MLP
PAD = 128           # lane-padded width used inside the kernel
TM_LARGE = 2048     # batch tile for large collocation batches
SMALL_N = 4096      # below this (per TensorCore) use one step per core


def _pinn_kernel(x_ref,           # (TM, 1)   time samples
                 w1_ref, b1_ref,  # (1, PAD)  layer-1 weight row / bias row
                 wh_ref, bh_ref,  # (3, PAD, PAD) / (3, 1, PAD) hidden layers 2-4
                 w5_ref, b5_ref,  # (1, PAD)  layer-5 weight (as a row) / (1, 1) bias
                 o_ref):          # (TM, 1)
    t_col = x_ref[...]                                            # (TM, 1)

    # Layer 1: K == 1 -> VPU outer product + bias + ReLU (no MXU).
    h = jnp.maximum(t_col * w1_ref[...] + b1_ref[...], 0.0)       # (TM, PAD)

    # Layers 2-4: lane-aligned MXU matmuls, f32 accumulation.
    for l in range(3):
        h = jnp.maximum(
            jnp.dot(h, wh_ref[l], preferred_element_type=jnp.float32)
            + bh_ref[l], 0.0)

    # Layer 5: output width 1 -> elementwise multiply + XLU lane reduction.
    out = jnp.sum(h * w5_ref[...], axis=-1, keepdims=True) + b5_ref[...]
    o_ref[...] = out


def _num_tensorcores():
    """v7x has 2 TensorCores per chip; earlier generations have 1."""
    try:
        kind = jax.devices()[0].device_kind.lower()
        return 2 if "v7" in kind else 1
    except Exception:  # be conservative if device query fails
        return 1


def _choose_tiling(n, num_tc):
    """Pick (tm, steps, n_pad): tm multiple of 8, tm * steps >= n."""
    n8 = pl.cdiv(n, 8) * 8                       # sublane-align the batch
    if n8 <= SMALL_N * num_tc:
        steps = num_tc                           # 1 step (v5e/v6e), 2 steps (v7x)
        tm = pl.cdiv(pl.cdiv(n8, steps), 8) * 8  # balanced, sublane-aligned
    else:
        tm = TM_LARGE                            # amortize per-step overhead
        steps = pl.cdiv(n8, tm)
    return tm, steps, tm * steps


def prepare_params(params, pytorch_layout=False):
    """One-time padding/stacking of the params for the kernel.

    params: list of 5 (w, b) pairs.  With pytorch_layout=False the weights are
    stored as (in, out) — as produced by init_params — so the kernel computes
    x @ W.  Real PyTorch nn.Linear.weight is (out, in); pass
    pytorch_layout=True to transpose them here.
    """
    params = [(jnp.asarray(w, jnp.float32), jnp.asarray(b, jnp.float32))
              for (w, b) in params]
    if pytorch_layout:
        params = [(w.T, b) for (w, b) in params]

    (w1, b1), (w2, b2), (w3, b3), (w4, b4), (w5, b5) = params
    # Explicit shape checks to catch a missed transpose of a real state_dict.
    assert w1.shape == (1, HID) and w5.shape == (HID, 1), (w1.shape, w5.shape)
    for w in (w2, w3, w4):
        assert w.shape == (HID, HID), w.shape

    def pad_row(v):  # v: (HID,) -> (1, PAD)
        return jnp.zeros((1, PAD), jnp.float32).at[0, :HID].set(v)

    def pad_sq(w):   # w: (HID, HID) -> (PAD, PAD)
        return jnp.zeros((PAD, PAD), jnp.float32).at[:HID, :HID].set(w)

    w1_row = pad_row(w1[0])
    b1_row = pad_row(b1)
    wh = jnp.stack([pad_sq(w2), pad_sq(w3), pad_sq(w4)])       # (3, PAD, PAD)
    bh = jnp.stack([pad_row(b2), pad_row(b3), pad_row(b4)])    # (3, 1, PAD)
    w5_row = pad_row(w5[:, 0])
    b5_val = jnp.reshape(b5, (1, 1))
    return (w1_row, b1_row, wh, bh, w5_row, b5_val)


def pinn_forward(t, prepped):
    """t: (N, 1) float32.  Returns (N, 1) float32, matching PINN.forward."""
    w1_row, b1_row, wh, bh, w5_row, b5_val = prepped
    n = t.shape[0]
    tm, steps, n_pad = _choose_tiling(n, _num_tensorcores())

    t = t.astype(jnp.float32)
    # Skip the wrapper pad op entirely when the batch already fits the tiling
    # (e.g. N=600 on v5e/v6e: 600 % 8 == 0, single 600-row step, zero padding).
    t_pad = t if n_pad == n else jnp.pad(t, ((0, n_pad - n), (0, 0)))

    const = lambda *_: (0, 0)
    # Weight BlockSpecs use constant index_maps, so Pallas keeps them resident
    # in VMEM across grid steps (no re-DMA); total weight VMEM is ~200 KiB.
    out = pl.pallas_call(
        _pinn_kernel,
        out_shape=jax.ShapeDtypeStruct((n_pad, 1), jnp.float32),
        grid_spec=pltpu.PrefetchScalarGridSpec(
            num_scalar_prefetch=0,
            grid=(steps,),
            in_specs=[
                pl.BlockSpec((tm, 1), lambda i: (i, 0)),            # t
                pl.BlockSpec((1, PAD), const),                      # w1 row
                pl.BlockSpec((1, PAD), const),                      # b1 row
                pl.BlockSpec((3, PAD, PAD), lambda i: (0, 0, 0)),   # w2..w4
                pl.BlockSpec((3, 1, PAD), lambda i: (0, 0, 0)),     # b2..b4
                pl.BlockSpec((1, PAD), const),                      # w5 row
                pl.BlockSpec((1, 1), const),                        # b5
            ],
            out_specs=pl.BlockSpec((tm, 1), lambda i: (i, 0)),
        ),
        compiler_params=pltpu.CompilerParams(
            dimension_semantics=("parallel",)),   # shards steps across TCs on v7x
    )(t_pad, w1_row, b1_row, wh, bh, w5_row, b5_val)

    return out if n_pad == n else out[:n]


def init_params(key):
    """Deterministic init mimicking nn.Linear defaults (U[-1/sqrt(fan_in), +])."""
    dims = [(1, HID), (HID, HID), (HID, HID), (HID, HID), (HID, 1)]
    params = []
    for (fan_in, fan_out) in dims:
        key, kw, kb = jax.random.split(key, 3)
        bound = 1.0 / jnp.sqrt(float(fan_in))
        # stored as (in, out) so the kernel does x @ W  (== PyTorch x @ W.T)
        w = jax.random.uniform(kw, (fan_in, fan_out), jnp.float32, -bound, bound)
        b = jax.random.uniform(kb, (fan_out,), jnp.float32, -bound, bound)
        params.append((w, b))
    return params


def pinn_reference(t, params):
    h = t
    for i, (w, b) in enumerate(params):
        h = h @ w + b
        if i < len(params) - 1:
            h = jnp.maximum(h, 0.0)
    return h


if __name__ == "__main__":
    key = jax.random.PRNGKey(0)
    params = init_params(key)
    prepped = jax.tree_util.tree_map(jax.block_until_ready, prepare_params(params))

    # Time samples consistent with the module's t = np.linspace(0, 6, 600).
    n = 600
    t = jnp.linspace(0.0, 6.0, n, dtype=jnp.float32).reshape(n, 1)

    # get_params() equivalent (abs of the learnable scalars) — trivial, kept in JAX.
    k_param = jnp.abs(jnp.float32(10000.0))
    d_param = jnp.abs(jnp.float32(1000.0))

    out = pinn_forward(t, prepped)
    out = jax.block_until_ready(out)

    ref = pinn_reference(t, params)
    assert out.shape == (n, 1)
    assert jnp.allclose(out, ref, atol=1e-4, rtol=1e-4), "mismatch vs JAX reference"

    print("KERNEL_OK")
</pallas_src>

<mosaic_0001>
module attributes {stable_mosaic.version = 11 : i64} {
  func.func @_pinn_kernel(%arg0: i32, %arg1: memref<600x1xf32, #tpu.memory_space<vmem>>, %arg2: memref<1x128xf32, #tpu.memory_space<vmem>>, %arg3: memref<1x128xf32, #tpu.memory_space<vmem>>, %arg4: memref<3x128x128xf32, #tpu.memory_space<vmem>>, %arg5: memref<3x1x128xf32, #tpu.memory_space<vmem>>, %arg6: memref<1x128xf32, #tpu.memory_space<vmem>>, %arg7: memref<1x1xf32, #tpu.memory_space<vmem>>, %arg8: memref<600x1xf32, #tpu.memory_space<vmem>>) attributes {dimension_semantics = [#tpu.dimension_semantics<parallel>], iteration_bounds = array<i64: 1>, scalar_prefetch = 0 : i64, scratch_operands = 0 : i64, tpu.core_type = #tpu.core_type<tc>, window_params = [{transform_indices = @transform_0, window_bounds = array<i64: 600, 1>}, {pipeline_mode = #tpu.pipeline_mode<synchronous>, transform_indices = @transform_1, window_bounds = array<i64: 1, 128>}, {pipeline_mode = #tpu.pipeline_mode<synchronous>, transform_indices = @transform_2, window_bounds = array<i64: 1, 128>}, {pipeline_mode = #tpu.pipeline_mode<synchronous>, transform_indices = @transform_3, window_bounds = array<i64: 3, 128, 128>}, {pipeline_mode = #tpu.pipeline_mode<synchronous>, transform_indices = @transform_4, window_bounds = array<i64: 3, 1, 128>}, {pipeline_mode = #tpu.pipeline_mode<synchronous>, transform_indices = @transform_5, window_bounds = array<i64: 1, 128>}, {pipeline_mode = #tpu.pipeline_mode<synchronous>, transform_indices = @transform_6, window_bounds = array<i64: 1, 1>}, {transform_indices = @transform_7, window_bounds = array<i64: 600, 1>}]} {
    %c0 = arith.constant 0 : index
    %c0_0 = arith.constant 0 : index
    %0 = vector.load %arg1[%c0, %c0_0] : memref<600x1xf32, #tpu.memory_space<vmem>>, vector<600x1xf32>
    %c0_1 = arith.constant 0 : index
    %c0_2 = arith.constant 0 : index
    %1 = vector.load %arg2[%c0_1, %c0_2] : memref<1x128xf32, #tpu.memory_space<vmem>>, vector<1x128xf32>
    %2 = vector.broadcast %0 : vector<600x1xf32> to vector<600x128xf32>
    %3 = vector.broadcast %1 : vector<1x128xf32> to vector<600x128xf32>
    %4 = arith.mulf %2, %3 : vector<600x128xf32>
    %c0_3 = arith.constant 0 : index
    %c0_4 = arith.constant 0 : index
    %5 = vector.load %arg3[%c0_3, %c0_4] : memref<1x128xf32, #tpu.memory_space<vmem>>, vector<1x128xf32>
    %6 = vector.broadcast %5 : vector<1x128xf32> to vector<600x128xf32>
    %7 = arith.addf %4, %6 : vector<600x128xf32>
    %cst = arith.constant 0.000000e+00 : f32
    %8 = vector.broadcast %cst : f32 to vector<600x128xf32>
    %9 = arith.maximumf %7, %8 : vector<600x128xf32>
    %c0_5 = arith.constant 0 : index
    %c0_6 = arith.constant 0 : index
    %c0_7 = arith.constant 0 : index
    %10 = vector.load %arg4[%c0_5, %c0_6, %c0_7] : memref<3x128x128xf32, #tpu.memory_space<vmem>>, vector<1x128x128xf32>
    %11 = vector.shape_cast %10 : vector<1x128x128xf32> to vector<128x128xf32>
    %cst_8 = arith.constant dense<0.000000e+00> : vector<600x128xf32>
    %12 = tpu.matmul %9, %11, %cst_8 {dimension_numbers = #tpu.dot_dimension_numbers<[1], [0], [0], [1], [0, 0, 1, 1], [], []>} : vector<600x128xf32>, vector<128x128xf32>, vector<600x128xf32> -> vector<600x128xf32>
    %c0_9 = arith.constant 0 : index
    %c0_10 = arith.constant 0 : index
    %c0_11 = arith.constant 0 : index
    %13 = vector.load %arg5[%c0_9, %c0_10, %c0_11] : memref<3x1x128xf32, #tpu.memory_space<vmem>>, vector<1x1x128xf32>
    %14 = vector.shape_cast %13 : vector<1x1x128xf32> to vector<1x128xf32>
    %15 = vector.broadcast %14 : vector<1x128xf32> to vector<600x128xf32>
    %16 = arith.addf %12, %15 : vector<600x128xf32>
    %cst_12 = arith.constant 0.000000e+00 : f32
    %17 = vector.broadcast %cst_12 : f32 to vector<600x128xf32>
    %18 = arith.maximumf %16, %17 : vector<600x128xf32>
    %c1 = arith.constant 1 : index
    %c0_13 = arith.constant 0 : index
    %c0_14 = arith.constant 0 : index
    %19 = vector.load %arg4[%c1, %c0_13, %c0_14] : memref<3x128x128xf32, #tpu.memory_space<vmem>>, vector<1x128x128xf32>
    %20 = vector.shape_cast %19 : vector<1x128x128xf32> to vector<128x128xf32>
    %cst_15 = arith.constant dense<0.000000e+00> : vector<600x128xf32>
    %21 = tpu.matmul %18, %20, %cst_15 {dimension_numbers = #tpu.dot_dimension_numbers<[1], [0], [0], [1], [0, 0, 1, 1], [], []>} : vector<600x128xf32>, vector<128x128xf32>, vector<600x128xf32> -> vector<600x128xf32>
    %c1_16 = arith.constant 1 : index
    %c0_17 = arith.constant 0 : index
    %c0_18 = arith.constant 0 : index
    %22 = vector.load %arg5[%c1_16, %c0_17, %c0_18] : memref<3x1x128xf32, #tpu.memory_space<vmem>>, vector<1x1x128xf32>
    %23 = vector.shape_cast %22 : vector<1x1x128xf32> to vector<1x128xf32>
    %24 = vector.broadcast %23 : vector<1x128xf32> to vector<600x128xf32>
    %25 = arith.addf %21, %24 : vector<600x128xf32>
    %cst_19 = arith.constant 0.000000e+00 : f32
    %26 = vector.broadcast %cst_19 : f32 to vector<600x128xf32>
    %27 = arith.maximumf %25, %26 : vector<600x128xf32>
    %c2 = arith.constant 2 : index
    %c0_20 = arith.constant 0 : index
    %c0_21 = arith.constant 0 : index
    %28 = vector.load %arg4[%c2, %c0_20, %c0_21] : memref<3x128x128xf32, #tpu.memory_space<vmem>>, vector<1x128x128xf32>
    %29 = vector.shape_cast %28 : vector<1x128x128xf32> to vector<128x128xf32>
    %cst_22 = arith.constant dense<0.000000e+00> : vector<600x128xf32>
    %30 = tpu.matmul %27, %29, %cst_22 {dimension_numbers = #tpu.dot_dimension_numbers<[1], [0], [0], [1], [0, 0, 1, 1], [], []>} : vector<600x128xf32>, vector<128x128xf32>, vector<600x128xf32> -> vector<600x128xf32>
    %c2_23 = arith.constant 2 : index
    %c0_24 = arith.constant 0 : index
    %c0_25 = arith.constant 0 : index
    %31 = vector.load %arg5[%c2_23, %c0_24, %c0_25] : memref<3x1x128xf32, #tpu.memory_space<vmem>>, vector<1x1x128xf32>
    %32 = vector.shape_cast %31 : vector<1x1x128xf32> to vector<1x128xf32>
    %33 = vector.broadcast %32 : vector<1x128xf32> to vector<600x128xf32>
    %34 = arith.addf %30, %33 : vector<600x128xf32>
    %cst_26 = arith.constant 0.000000e+00 : f32
    %35 = vector.broadcast %cst_26 : f32 to vector<600x128xf32>
    %36 = arith.maximumf %34, %35 : vector<600x128xf32>
    %c0_27 = arith.constant 0 : index
    %c0_28 = arith.constant 0 : index
    %37 = vector.load %arg6[%c0_27, %c0_28] : memref<1x128xf32, #tpu.memory_space<vmem>>, vector<1x128xf32>
    %38 = vector.broadcast %37 : vector<1x128xf32> to vector<600x128xf32>
    %39 = arith.mulf %36, %38 : vector<600x128xf32>
    %cst_29 = arith.constant dense<0.000000e+00> : vector<600xf32>
    %40 = vector.multi_reduction <add>, %39, %cst_29 [1] : vector<600x128xf32> to vector<600xf32>
    %41 = vector.shape_cast %40 : vector<600xf32> to vector<600x1xf32>
    %c0_30 = arith.constant 0 : index
    %c0_31 = arith.constant 0 : index
    %42 = vector.load %arg7[%c0_30, %c0_31] : memref<1x1xf32, #tpu.memory_space<vmem>>, vector<1x1xf32>
    %43 = vector.broadcast %42 : vector<1x1xf32> to vector<600x1xf32>
    %44 = arith.addf %41, %43 : vector<600x1xf32>
    %c0_32 = arith.constant 0 : index
    %c0_33 = arith.constant 0 : index
    %45 = vector.load %arg8[%c0_32, %c0_33] : memref<600x1xf32, #tpu.memory_space<vmem>>, vector<600x1xf32>
    tpu.vector_store %arg8[%c0_32, %c0_33], %44 {strides = array<i32>} : memref<600x1xf32, #tpu.memory_space<vmem>>, vector<600x1xf32>,
    return
  }
  func.func @transform_0(%arg0: i32) -> (i32, i32) {
    %c0_i32 = arith.constant 0 : i32
    %c0_i32_0 = arith.constant 0 : i32
    return %arg0, %c0_i32 : i32, i32
  }
  func.func @transform_1(%arg0: i32) -> (i32, i32) {
    %c0_i32 = arith.constant 0 : i32
    %c0_i32_0 = arith.constant 0 : i32
    %c0_i32_1 = arith.constant 0 : i32
    return %c0_i32, %c0_i32_0 : i32, i32
  }
  func.func @transform_2(%arg0: i32) -> (i32, i32) {
    %c0_i32 = arith.constant 0 : i32
    %c0_i32_0 = arith.constant 0 : i32
    %c0_i32_1 = arith.constant 0 : i32
    return %c0_i32, %c0_i32_0 : i32, i32
  }
  func.func @transform_3(%arg0: i32) -> (i32, i32, i32) {
    %c0_i32 = arith.constant 0 : i32
    %c0_i32_0 = arith.constant 0 : i32
    %c0_i32_1 = arith.constant 0 : i32
    %c0_i32_2 = arith.constant 0 : i32
    return %c0_i32, %c0_i32_0, %c0_i32_1 : i32, i32, i32
  }
  func.func @transform_4(%arg0: i32) -> (i32, i32, i32) {
    %c0_i32 = arith.constant 0 : i32
    %c0_i32_0 = arith.constant 0 : i32
    %c0_i32_1 = arith.constant 0 : i32
    %c0_i32_2 = arith.constant 0 : i32
    return %c0_i32, %c0_i32_0, %c0_i32_1 : i32, i32, i32
  }
  func.func @transform_5(%arg0: i32) -> (i32, i32) {
    %c0_i32 = arith.constant 0 : i32
    %c0_i32_0 = arith.constant 0 : i32
    %c0_i32_1 = arith.constant 0 : i32
    return %c0_i32, %c0_i32_0 : i32, i32
  }
  func.func @transform_6(%arg0: i32) -> (i32, i32) {
    %c0_i32 = arith.constant 0 : i32
    %c0_i32_0 = arith.constant 0 : i32
    %c0_i32_1 = arith.constant 0 : i32
    return %c0_i32, %c0_i32_0 : i32, i32
  }
  func.func @transform_7(%arg0: i32) -> (i32, i32) {
    %c0_i32 = arith.constant 0 : i32
    %c0_i32_0 = arith.constant 0 : i32
    return %arg0, %c0_i32 : i32, i32
  }
}

</mosaic_0001>

<bundles_post_ra>
// kernel: tpu_custom_call.1
= control target key start
LH: loop header
LB: loop body
LE: loop exit
PB: predicated region body
PF: predicated region fallthrough
CT: control target
= control target key end

     0   :  { %v3857_v0 = vmov 0   ;;  %v3858_v5 = vmov 0.0   ;;  %vm3859_vm0 = vmmov 0   ;;  %vm2649_vm1 = vcmask 7168   ;;  %s5846_s0 = inlined_call_operand.vmem [shape: f32[600,1], index: 0, kind: input, shape index: {}]   ;;  %s5847_s3 = inlined_call_operand.vmem [shape: f32[3,128,128], index: 3, kind: input, shape index: {}]   ;;  %s5848_s1 = inlined_call_operand.vmem [shape: f32[1,128], index: 1, kind: input, shape index: {}]   ;;  %s5849_s2 = inlined_call_operand.vmem [shape: f32[1,128], index: 2, kind: input, shape index: {}]   ;;  %s5850_s4 = inlined_call_operand.vmem [shape: f32[3,1,128], index: 4, kind: input, shape index: {}]   ;;  %s5851_s5 = inlined_call_operand.vmem [shape: f32[1,128], index: 5, kind: input, shape index: {}]   ;;  %s5852_s6 = inlined_call_operand.<no memory space> [shape: f32[1,1], index: 6, kind: input, shape index: {}]   ;;  %s5853_s7 = inlined_call_operand.vmem [shape: f32[600,1], index: 7, kind: output, shape index: {}]  }
   0x1   :  { %3850 = vset.pattern.permute.xlu1 %v3857_v0  ;;  %3849 = vset.pattern.permute.xlu0 %v3857_v0  ;;  %v30_v1 = vld [vmem:[%s5846_s0 + $0x10] sm:$0xff]  ;;  %v28_v2 = vld [vmem:[%s5846_s0] sm:$0xff]  ;;  %v31_v3 = vld [vmem:[%s5846_s0 + $0x18] sm:$0xff] }
   0x2   :  { %116 = vperm.xlu1 %3850, %v30_v1   ;;  %106 = vperm.xlu0 %3849, %v28_v2   ;;  %v29_v4 = vld [vmem:[%s5846_s0 + $0x8] sm:$0xff]  ;;  %v32_v7 = vld [vmem:[%s5846_s0 + $0x20] sm:$0xff]  ;;  %v35_v8 = vld [vmem:[%s5846_s0 + $0x38] sm:$0xff] }
   0x3   :  { %3043 = vmatprep.subr.mxu0 %v3858_v5  ;;  %3814 = vmatprep.subr.mxu1 %v3858_v5  ;;  %v33_v6 = vld [vmem:[%s5846_s0 + $0x28] sm:$0xff]  ;;  %v34_v9 = vld [vmem:[%s5846_s0 + $0x30] sm:$0xff]  ;;  %v36_v11 = vld [vmem:[%s5846_s0 + $0x40] sm:$0xff] }
   0x4   :  { %3075 = vmatprep.mubr.msk.f32.mxu0 %vm3859_vm0, %v3858_v5  ;;  %3189 = vmatprep.mubr.msk.f32.mxu1 %vm3859_vm0, %v3858_v5  ;;  %v37_v10 = vld [vmem:[%s5846_s0 + $0x48] sm:$0xff]  ;;  %v732_v12 = vld [vmem:[%s5847_s3 + $0x78] sm:$0xff]  ;;  %v731_v13 = vld [vmem:[%s5847_s3 + $0x70] sm:$0xff] }
   0x5   :  { %v39_v14 = vld [vmem:[%s5846_s0 + $0x58] sm:$0xff]  ;;  %v38_v15 = vld [vmem:[%s5846_s0 + $0x50] sm:$0xff]  ;;  %3044 = vmatpush3.msra.mxu0 %v732_v12  ;;  %3830 = vmatpush3.msra.mxu1 %v732_v12  ;;  %v730_v16 = vld [vmem:[%s5847_s3 + $0x68] sm:$0xff] }
   0x6   :  { %121 = vperm.xlu1 %3850, %v31_v3   ;;  %111 = vperm.xlu0 %3849, %v29_v4   ;;  %v66_v17 = vld [vmem:[%s5846_s0 + $0x130] sm:$0xff]  ;;  %v40_v18 = vld [vmem:[%s5846_s0 + $0x60] sm:$0xff]  ;;  %v728_v20 = vld [vmem:[%s5847_s3 + $0x58] sm:$0xff] }
   0x7   :  { %3045 = vmatprep.subr.mxu0 %v3858_v5  ;;  %3815 = vmatprep.subr.mxu1 %v3858_v5  ;;  %v729_v19 = vld [vmem:[%s5847_s3 + $0x60] sm:$0xff]  ;;  %v67_v21 = vld [vmem:[%s5846_s0 + $0x138] sm:$0xff]  ;;  %v41_v22 = vld [vmem:[%s5846_s0 + $0x68] sm:$0xff] }
   0x8   :  { %3046 = vmatpush3.msra.mxu0 %v731_v13  ;;  %3831 = vmatpush3.msra.mxu1 %v731_v13  ;;  %v727_v23 = vld [vmem:[%s5847_s3 + $0x50] sm:$0xff]  ;;  %v68_v24 = vld [vmem:[%s5846_s0 + $0x140] sm:$0xff]  ;;  %v726_v26 = vld [vmem:[%s5847_s3 + $0x48] sm:$0xff] }
   0x9   :  { %3047 = vmatprep.subr.mxu0 %v3858_v5  ;;  %3816 = vmatprep.subr.mxu1 %v3858_v5  ;;  %v42_v25 = vld [vmem:[%s5846_s0 + $0x70] sm:$0xff]  ;;  %v725_v27 = vld [vmem:[%s5847_s3 + $0x40] sm:$0xff]  ;;  %v69_v28 = vld [vmem:[%s5846_s0 + $0x148] sm:$0xff] }
   0xa   :  { %131 = vperm.xlu1 %3850, %v33_v6   ;;  %126 = vperm.xlu0 %3849, %v32_v7   ;;  %v43_v29 = vld [vmem:[%s5846_s0 + $0x78] sm:$0xff]  ;;  %v70_v31 = vld [vmem:[%s5846_s0 + $0x150] sm:$0xff]  ;;  %v44_v32 = vld [vmem:[%s5846_s0 + $0x80] sm:$0xff] }
   0xb   :  { %3048 = vmatpush3.msra.mxu0 %v730_v16  ;;  %3832 = vmatpush3.msra.mxu1 %v730_v16  ;;  %v724_v30 = vld [vmem:[%s5847_s3 + $0x38] sm:$0xff]  ;;  %v723_v33 = vld [vmem:[%s5847_s3 + $0x30] sm:$0xff]  ;;  %v722_v34 = vld [vmem:[%s5847_s3 + $0x28] sm:$0xff] }
   0xc   :  { %3049 = vmatprep.subr.mxu0 %v3858_v5  ;;  %3817 = vmatprep.subr.mxu1 %v3858_v5  ;;  %v71_v35 = vld [vmem:[%s5846_s0 + $0x158] sm:$0xff]  ;;  %v45_v36 = vld [vmem:[%s5846_s0 + $0x88] sm:$0xff]  ;;  %v721_v37 = vld [vmem:[%s5847_s3 + $0x20] sm:$0xff] }
   0xd   :  { %3050 = vmatpush3.msra.mxu0 %v729_v19  ;;  %3833 = vmatpush3.msra.mxu1 %v729_v19  ;;  %v72_v38 = vld [vmem:[%s5846_s0 + $0x160] sm:$0xff]  ;;  %v46_v39 = vld [vmem:[%s5846_s0 + $0x90] sm:$0xff]  ;;  %v720_v40 = vld [vmem:[%s5847_s3 + $0x18] sm:$0xff] }
   0xe   :  { %141 = vperm.xlu1 %3850, %v35_v8   ;;  %136 = vperm.xlu0 %3849, %v34_v9   ;;  %v719_v41 = vld [vmem:[%s5847_s3 + $0x10] sm:$0xff]  ;;  %v73_v42 = vld [vmem:[%s5846_s0 + $0x168] sm:$0xff]  ;;  %v47_v43 = vld [vmem:[%s5846_s0 + $0x98] sm:$0xff] }
   0xf   :  { %3051 = vmatprep.subr.mxu0 %v3858_v5  ;;  %3818 = vmatprep.subr.mxu1 %v3858_v5  ;;  %v718_v44 = vld [vmem:[%s5847_s3 + $0x8] sm:$0xff]  ;;  %v74_v45 = vld [vmem:[%s5846_s0 + $0x170] sm:$0xff]  ;;  %v48_v46 = vld [vmem:[%s5846_s0 + $0xa0] sm:$0xff] }
  0x10   :  { %3052 = vmatpush3.msra.mxu0 %v728_v20  ;;  %3834 = vmatpush3.msra.mxu1 %v728_v20  ;;  %v717_v47 = vld [vmem:[%s5847_s3] sm:$0xff]  ;;  %v75_v48 = vld [vmem:[%s5846_s0 + $0x178] sm:$0xff]  ;;  %v49_v49 = vld [vmem:[%s5846_s0 + $0xa8] sm:$0xff] }
  0x11   :  { %3053 = vmatprep.subr.mxu0 %v3858_v5  ;;  %3819 = vmatprep.subr.mxu1 %v3858_v5  ;;  %v76_v50 = vld [vmem:[%s5846_s0 + $0x180] sm:$0xff]  ;;  %v50_v51 = vld [vmem:[%s5846_s0 + $0xb0] sm:$0xff]  ;;  %v77_v52 = vld [vmem:[%s5846_s0 + $0x188] sm:$0xff] }
  0x12   :  { %151 = vperm.xlu1 %3850, %v37_v10   ;;  %146 = vperm.xlu0 %3849, %v36_v11   ;;  %v51_v53 = vld [vmem:[%s5846_s0 + $0xb8] sm:$0xff]  ;;  %v78_v54 = vld [vmem:[%s5846_s0 + $0x190] sm:$0xff]  ;;  %v52_v55 = vld [vmem:[%s5846_s0 + $0xc0] sm:$0xff] }
  0x13   :  { %3054 = vmatpush3.msra.mxu0 %v727_v23  ;;  %3835 = vmatpush3.msra.mxu1 %v727_v23  ;;  %v79_v56 = vld [vmem:[%s5846_s0 + $0x198] sm:$0xff]  ;;  %v53_v57 = vld [vmem:[%s5846_s0 + $0xc8] sm:$0xff]  ;;  %v80_v58 = vld [vmem:[%s5846_s0 + $0x1a0] sm:$0xff] }
  0x14   :  { %3055 = vmatprep.subr.mxu0 %v3858_v5  ;;  %3820 = vmatprep.subr.mxu1 %v3858_v5  ;;  %v54_v59 = vld [vmem:[%s5846_s0 + $0xd0] sm:$0xff]  ;;  %v81_v60 = vld [vmem:[%s5846_s0 + $0x1a8] sm:$0xff]  ;;  %v55_v61 = vld [vmem:[%s5846_s0 + $0xd8] sm:$0xff] }
  0x15   :  { %3056 = vmatpush3.msra.mxu0 %v726_v26  ;;  %3836 = vmatpush3.msra.mxu1 %v726_v26  ;;  %v82_v62 = vld [vmem:[%s5846_s0 + $0x1b0] sm:$0xff]  ;;  %v56_v63 = vld [vmem:[%s5846_s0 + $0xe0] sm:$0xff]  ;;  %v83_v0 = vld [vmem:[%s5846_s0 + $0x1b8] sm:$0xff] }
  0x16   :  { %161 = vperm.xlu1 %3850, %v39_v14   ;;  %156 = vperm.xlu0 %3849, %v38_v15   ;;  %v57_v1 = vld [vmem:[%s5846_s0 + $0xe8] sm:$0xff]  ;;  %v84_v2 = vld [vmem:[%s5846_s0 + $0x1c0] sm:$0xff]  ;;  %v58_v3 = vld [vmem:[%s5846_s0 + $0xf0] sm:$0xff] }
  0x17   :  { %3057 = vmatprep.subr.mxu0 %v3858_v5  ;;  %3821 = vmatprep.subr.mxu1 %v3858_v5  ;;  %v85_v4 = vld [vmem:[%s5846_s0 + $0x1c8] sm:$0xff]  ;;  %v59_v6 = vld [vmem:[%s5846_s0 + $0xf8] sm:$0xff]  ;;  %v86_v7 = vld [vmem:[%s5846_s0 + $0x1d0] sm:$0xff] }
  0x18   :  { %3058 = vmatpush3.msra.mxu0 %v725_v27  ;;  %3837 = vmatpush3.msra.mxu1 %v725_v27  ;;  %v60_v8 = vld [vmem:[%s5846_s0 + $0x100] sm:$0xff]  ;;  %v87_v9 = vld [vmem:[%s5846_s0 + $0x1d8] sm:$0xff]  ;;  %v61_v10 = vld [vmem:[%s5846_s0 + $0x108] sm:$0xff] }
  0x19   :  { %3059 = vmatprep.subr.mxu0 %v3858_v5  ;;  %3822 = vmatprep.subr.mxu1 %v3858_v5  ;;  %v88_v11 = vld [vmem:[%s5846_s0 + $0x1e0] sm:$0xff]  ;;  %v62_v12 = vld [vmem:[%s5846_s0 + $0x110] sm:$0xff]  ;;  %v89_v13 = vld [vmem:[%s5846_s0 + $0x1e8] sm:$0xff] }
  0x1a   :  { %296 = vperm.xlu1 %3850, %v66_v17   ;;  %166 = vperm.xlu0 %3849, %v40_v18   ;;  %v63_v14 = vld [vmem:[%s5846_s0 + $0x118] sm:$0xff]  ;;  %v90_v15 = vld [vmem:[%s5846_s0 + $0x1f0] sm:$0xff]  ;;  %v64_v16 = vld [vmem:[%s5846_s0 + $0x120] sm:$0xff] }
  0x1b   :  { %3060 = vmatpush3.msra.mxu0 %v724_v30  ;;  %3838 = vmatpush3.msra.mxu1 %v724_v30  ;;  %v4175_v17 = vld [vmem:[%s5848_s1] ss:$0 sm:$0xff]  ;;  %v91_v18 = vld [vmem:[%s5846_s0 + $0x1f8] sm:$0xff]  ;;  %v65_v19 = vld [vmem:[%s5846_s0 + $0x128] sm:$0xff] }
  0x1c   :  { %3061 = vmatprep.subr.mxu0 %v3858_v5  ;;  %3823 = vmatprep.subr.mxu1 %v3858_v5  ;;  %v4186_v20 = vld [vmem:[%s5849_s2] ss:$0 sm:$0xff] }
  0x1d   :  { %3062 = vmatpush3.msra.mxu0 %v723_v33  ;;  %3839 = vmatpush3.msra.mxu1 %v723_v33  ;;  %v94_v33 = vld [vmem:[%s5846_s0 + $0x210] sm:$0xff] }
  0x1e   :  { %301 = vperm.xlu1 %3850, %v67_v21   ;;  %171 = vperm.xlu0 %3849, %v41_v22  }
  0x1f   :  { %3063 = vmatprep.subr.mxu0 %v3858_v5  ;;  %3824 = vmatprep.subr.mxu1 %v3858_v5 }
  0x20   :  { %3064 = vmatpush3.msra.mxu0 %v722_v34  ;;  %3840 = vmatpush3.msra.mxu1 %v722_v34 }
  0x21   :  { %3065 = vmatprep.subr.mxu0 %v3858_v5  ;;  %3825 = vmatprep.subr.mxu1 %v3858_v5 }
  0x22   :  { %306 = vperm.xlu1 %3850, %v68_v24   ;;  %176 = vperm.xlu0 %3849, %v42_v25   ;;  %v93_v24 = vld [vmem:[%s5846_s0 + $0x208] sm:$0xff]  ;;  %v92_v25 = vld [vmem:[%s5846_s0 + $0x200] sm:$0xff] }
  0x23   :  { %3066 = vmatpush3.msra.mxu0 %v721_v37  ;;  %3841 = vmatpush3.msra.mxu1 %v721_v37 }
  0x24   :  { %3067 = vmatprep.subr.mxu0 %v3858_v5  ;;  %3826 = vmatprep.subr.mxu1 %v3858_v5 }
  0x25   :  { %3068 = vmatpush3.msra.mxu0 %v720_v40  ;;  %3842 = vmatpush3.msra.mxu1 %v720_v40  ;;  %v97_v40 = vld [vmem:[%s5846_s0 + $0x228] sm:$0xff] }
  0x26   :  { %311 = vperm.xlu1 %3850, %v69_v28   ;;  %181 = vperm.xlu0 %3849, %v43_v29  }
  0x27   :  { %3069 = vmatprep.subr.mxu0 %v3858_v5  ;;  %3827 = vmatprep.subr.mxu1 %v3858_v5 }
  0x28   :  { %3070 = vmatpush3.msra.mxu0 %v719_v41  ;;  %3843 = vmatpush3.msra.mxu1 %v719_v41  ;;  %v96_v41 = vld [vmem:[%s5846_s0 + $0x220] sm:$0xff] }
  0x29   :  { %3071 = vmatprep.subr.mxu0 %v3858_v5  ;;  %3828 = vmatprep.subr.mxu1 %v3858_v5 }
  0x2a   :  { %316 = vperm.xlu1 %3850, %v70_v31   ;;  %186 = vperm.xlu0 %3849, %v44_v32   ;;  %v95_v32 = vld [vmem:[%s5846_s0 + $0x218] sm:$0xff] }
  0x2b   :  { %3072 = vmatpush3.msra.mxu0 %v718_v44  ;;  %3844 = vmatpush3.msra.mxu1 %v718_v44 }
  0x2c   :  { %3073 = vmatprep.subr.mxu0 %v3858_v5  ;;  %3829 = vmatprep.subr.mxu1 %v3858_v5 }
  0x2d   :  { %3074 = vmatpush3.msra.mxu0 %v717_v47  ;;  %3845 = vmatpush3.msra.mxu1 %v717_v47  ;;  %v99_v47 = vld [vmem:[%s5846_s0 + $0x238] sm:$0xff] }
  0x2e   :  { %321 = vperm.xlu1 %3850, %v71_v35   ;;  %191 = vperm.xlu0 %3849, %v45_v36  }
  0x2f   :  { %3300 = vmatprep.subr.mxu1 %v3858_v5  ;;  %3557 = vmatprep.subr.mxu0 %v3858_v5 }
  0x32   :  { %326 = vperm.xlu1 %3850, %v72_v38   ;;  %196 = vperm.xlu0 %3849, %v46_v39  }
  0x36   :  { %331 = vperm.xlu1 %3850, %v73_v42   ;;  %201 = vperm.xlu0 %3849, %v47_v43  }
  0x3a   :  { %336 = vperm.xlu1 %3850, %v74_v45   ;;  %206 = vperm.xlu0 %3849, %v48_v46  }
  0x3e   :  { %341 = vperm.xlu1 %3850, %v75_v48   ;;  %211 = vperm.xlu0 %3849, %v49_v49   ;;  %v98_v48 = vld [vmem:[%s5846_s0 + $0x230] sm:$0xff] }
  0x42   :  { %346 = vperm.xlu1 %3850, %v76_v50   ;;  %216 = vperm.xlu0 %3849, %v50_v51  }
  0x46   :  { %351 = vperm.xlu1 %3850, %v77_v52   ;;  %221 = vperm.xlu0 %3849, %v51_v53  }
  0x4a   :  { %356 = vperm.xlu1 %3850, %v78_v54   ;;  %226 = vperm.xlu0 %3849, %v52_v55   ;;  %v101_v54 = vld [vmem:[%s5846_s0 + $0x248] sm:$0xff]  ;;  %v100_v55 = vld [vmem:[%s5846_s0 + $0x240] sm:$0xff] }
  0x4e   :  { %361 = vperm.xlu1 %3850, %v79_v56   ;;  %231 = vperm.xlu0 %3849, %v53_v57  }
  0x52   :  { %366 = vperm.xlu1 %3850, %v80_v58   ;;  %236 = vperm.xlu0 %3849, %v54_v59  }
  0x56   :  { %371 = vperm.xlu1 %3850, %v81_v60   ;;  %241 = vperm.xlu0 %3849, %v55_v61   ;;  %v102_v61 = vld [vmem:[%s5846_s0 + $0x250] sm:$0xff] }
  0x5a   :  { %376 = vperm.xlu1 %3850, %v82_v62   ;;  %246 = vperm.xlu0 %3849, %v56_v63  }
  0x5e   :  { %381 = vperm.xlu1 %3850, %v83_v0   ;;  %251 = vperm.xlu0 %3849, %v57_v1  }
  0x62   :  { %386 = vperm.xlu1 %3850, %v84_v2   ;;  %256 = vperm.xlu0 %3849, %v58_v3  }
  0x66   :  { %391 = vperm.xlu1 %3850, %v85_v4   ;;  %261 = vperm.xlu0 %3849, %v59_v6  }
  0x6a   :  { %396 = vperm.xlu1 %3850, %v86_v7   ;;  %266 = vperm.xlu0 %3849, %v60_v8  }
  0x6e   :  { %401 = vperm.xlu1 %3850, %v87_v9   ;;  %271 = vperm.xlu0 %3849, %v61_v10  }
  0x72   :  { %406 = vperm.xlu1 %3850, %v88_v11   ;;  %276 = vperm.xlu0 %3849, %v62_v12  }
  0x76   :  { %411 = vperm.xlu1 %3850, %v89_v13   ;;  %281 = vperm.xlu0 %3849, %v63_v14   ;;  %v2747_v13 = vld [vmem:[%s5847_s3 + $0xf8] sm:$0xff] }
  0x7a   :  { %416 = vperm.xlu1 %3850, %v90_v15   ;;  %286 = vperm.xlu0 %3849, %v64_v16  }
  0x7d   :  { %v117_v21 = vpop.permute.xlu1 %116  ;;  %v107_v22 = vpop.permute.xlu0 %106 }
  0x7e   :  { %v485_v23 = vmul.f32 %v4175_v17, %v107_v22  ;;  %421 = vperm.xlu1 %3850, %v91_v18   ;;  %291 = vperm.xlu0 %3849, %v65_v19   ;;  %v487_v26 = vmul.f32 %v4175_v17, %v117_v21 }
  0x80   :  { %v567_v27 = vadd.f32 %v4186_v20, %v485_v23  ;;  %v569_v34 = vadd.f32 %v4186_v20, %v487_v26 }
  0x81   :  { %v122_v28 = vpop.permute.xlu1 %121  ;;  %v112_v29 = vpop.permute.xlu0 %111 }
  0x82   :  { %v486_v30 = vmul.f32 %v4175_v17, %v112_v29  ;;  %431 = vperm.xlu1 %3850, %v93_v24   ;;  %426 = vperm.xlu0 %3849, %v92_v25   ;;  %v642_v31 = vmax.f32 %v567_v27, 0.0  ;;  %v488_v38 = vmul.f32 %v4175_v17, %v122_v28  ;;  %v644_v42 = vmax.f32 %v569_v34, 0.0  ;;  %v2746_v24 = vld [vmem:[%s5847_s3 + $0xf0] sm:$0xff] }
  0x84   :  { %v568_v35 = vadd.f32 %v4186_v20, %v486_v30  ;;  %3076 = vmatmul.mubr.f32.vlgmr.msra.gmra.mxu0 %v642_v31  ;;  %v570_v45 = vadd.f32 %v4186_v20, %v488_v38 }
  0x85   :  { %v132_v36 = vpop.permute.xlu1 %131  ;;  %v127_v37 = vpop.permute.xlu0 %126  ;;  %3078 = vmatprep.mubr.msk.f32.mxu0 %vm3859_vm0, %v3858_v5 }
  0x86   :  { %441 = vperm.xlu1 %3850, %v95_v32   ;;  %436 = vperm.xlu0 %3849, %v94_v33   ;;  %v643_v39 = vmax.f32 %v568_v35, 0.0  ;;  %v489_v46 = vmul.f32 %v4175_v17, %v127_v37  ;;  %v490_v51 = vmul.f32 %v4175_v17, %v132_v36  ;;  %v645_v53 = vmax.f32 %v570_v45, 0.0  ;;  %v2745_v33 = vld [vmem:[%s5847_s3 + $0xe8] sm:$0xff] }
  0x88   :  { %3079 = vmatmul.mubr.f32.gmra.mxu0 %v643_v39  ;;  %v571_v52 = vadd.f32 %v4186_v20, %v489_v46  ;;  %v572_v58 = vadd.f32 %v4186_v20, %v490_v51  ;;  %v2743_v51 = vld [vmem:[%s5847_s3 + $0xd8] sm:$0xff] }
  0x89   :  { %v142_v43 = vpop.permute.xlu1 %141  ;;  %v137_v44 = vpop.permute.xlu0 %136  ;;  %3081 = vmatprep.mubr.msk.f32.mxu0 %vm3859_vm0, %v3858_v5 }
  0x8a   :  { %451 = vperm.xlu1 %3850, %v97_v40   ;;  %446 = vperm.xlu0 %3849, %v96_v41   ;;  %v491_v59 = vmul.f32 %v4175_v17, %v137_v44  ;;  %v646_v60 = vmax.f32 %v571_v52, 0.0  ;;  %v492_v62 = vmul.f32 %v4175_v17, %v142_v43  ;;  %v647_v3 = vmax.f32 %v572_v58, 0.0 }
  0x8c   :  { %3082 = vmatmul.mubr.f32.gmra.mxu0 %v644_v42  ;;  %v573_v1 = vadd.f32 %v4186_v20, %v491_v59  ;;  %v574_v6 = vadd.f32 %v4186_v20, %v492_v62  ;;  %v2744_v42 = vld [vmem:[%s5847_s3 + $0xe0] sm:$0xff] }
  0x8d   :  { %v152_v49 = vpop.permute.xlu1 %151  ;;  %v147_v50 = vpop.permute.xlu0 %146  ;;  %3084 = vmatprep.mubr.msk.f32.mxu0 %vm3859_vm0, %v3858_v5 }
  0x8e   :  { %461 = vperm.xlu1 %3850, %v99_v47   ;;  %456 = vperm.xlu0 %3849, %v98_v48   ;;  %v493_v9 = vmul.f32 %v4175_v17, %v147_v50  ;;  %v648_v11 = vmax.f32 %v573_v1, 0.0  ;;  %v494_v15 = vmul.f32 %v4175_v17, %v152_v49  ;;  %v649_v22 = vmax.f32 %v574_v6, 0.0  ;;  %v2741_v6 = vld [vmem:[%s5847_s3 + $0xc8] sm:$0xff] }
  0x90   :  { %3085 = vmatmul.mubr.f32.gmra.mxu0 %v645_v53  ;;  %v575_v19 = vadd.f32 %v4186_v20, %v493_v9  ;;  %v576_v26 = vadd.f32 %v4186_v20, %v494_v15  ;;  %v2740_v15 = vld [vmem:[%s5847_s3 + $0xc0] sm:$0xff] }
  0x91   :  { %v162_v56 = vpop.permute.xlu1 %161  ;;  %v157_v57 = vpop.permute.xlu0 %156  ;;  %3087 = vmatprep.mubr.msk.f32.mxu0 %vm3859_vm0, %v3858_v5 }
  0x92   :  { %471 = vperm.xlu1 %3850, %v101_v54   ;;  %466 = vperm.xlu0 %3849, %v100_v55   ;;  %v495_v29 = vmul.f32 %v4175_v17, %v157_v57  ;;  %v650_v31 = vmax.f32 %v575_v19, 0.0  ;;  %v496_v35 = vmul.f32 %v4175_v17, %v162_v56  ;;  %v651_v40 = vmax.f32 %v576_v26, 0.0  ;;  %v2739_v26 = vld [vmem:[%s5847_s3 + $0xb8] sm:$0xff] }
  0x94   :  { %3088 = vmatmul.mubr.f32.gmra.mxu0 %v646_v60  ;;  %v577_v38 = vadd.f32 %v4186_v20, %v495_v29  ;;  %v578_v44 = vadd.f32 %v4186_v20, %v496_v35  ;;  %v2742_v60 = vld [vmem:[%s5847_s3 + $0xd0] sm:$0xff] }
  0x95   :  { %v297_v63 = vpop.permute.xlu1 %296  ;;  %v4243_v0 = vpop.permute.xlu0 %166  ;;  %3090 = vmatprep.mubr.msk.f32.mxu0 %vm3859_vm0, %v3858_v5  ;;  %v2738_v35 = vld [vmem:[%s5847_s3 + $0xb0] sm:$0xff] }
  0x96   :  { %v523_v2 = vmul.f32 %v4175_v17, %v297_v63  ;;  %476 = vperm.xlu0 %3849, %v102_v61   ;;  %v497_v47 = vmul.f32 %v4175_v17, %v4243_v0  ;;  %v652_v49 = vmax.f32 %v577_v38, 0.0  ;;  %v653_v55 = vmax.f32 %v578_v44, 0.0  ;;  %v2737_v44 = vld [vmem:[%s5847_s3 + $0xa8] sm:$0xff] }
  0x98   :  { %v605_v4 = vadd.f32 %v4186_v20, %v523_v2  ;;  %3091 = vmatmul.mubr.f32.gmra.mxu0 %v647_v3  ;;  %v579_v56 = vadd.f32 %v4186_v20, %v497_v47 }
  0x99   :  { %v302_v7 = vpop.permute.xlu1 %301  ;;  %v4251_v8 = vpop.permute.xlu0 %171  ;;  %3093 = vmatprep.mubr.msk.f32.mxu0 %vm3859_vm0, %v3858_v5 }
  0x9a   :  { %v524_v10 = vmul.f32 %v4175_v17, %v302_v7  ;;  %v680_v12 = vmax.f32 %v605_v4, 0.0  ;;  %v498_v57 = vmul.f32 %v4175_v17, %v4251_v8  ;;  %v654_v3 = vmax.f32 %v579_v56, 0.0 }
  0x9c   :  { %v606_v14 = vadd.f32 %v4186_v20, %v524_v10  ;;  %3094 = vmatmul.mubr.f32.gmra.mxu0 %v648_v11  ;;  %3190 = vmatmul.mubr.f32.vlgmr.msra.gmra.mxu1 %v680_v12  ;;  %v580_v1 = vadd.f32 %v4186_v20, %v498_v57 }
  0x9d   :  { %v307_v16 = vpop.permute.xlu1 %306  ;;  %v4262_v18 = vpop.permute.xlu0 %176  ;;  %3096 = vmatprep.mubr.msk.f32.mxu0 %vm3859_vm0, %v3858_v5  ;;  %3192 = vmatprep.mubr.msk.f32.mxu1 %vm3859_vm0, %v3858_v5 }
  0x9e   :  { %v525_v21 = vmul.f32 %v4175_v17, %v307_v16  ;;  %v681_v23 = vmax.f32 %v606_v14, 0.0  ;;  %3301 = vmatpush3.msra.mxu1 %v2747_v13  ;;  %v499_v62 = vmul.f32 %v4175_v17, %v4262_v18  ;;  %v655_v13 = vmax.f32 %v580_v1, 0.0 }
  0x9f   :  { %3302 = vmatprep.subr.mxu1 %v3858_v5 }
  0xa0   :  { %v607_v25 = vadd.f32 %v4186_v20, %v525_v21  ;;  %3097 = vmatmul.mubr.f32.gmra.mxu0 %v649_v22  ;;  %3193 = vmatmul.mubr.f32.gmra.mxu1 %v681_v23  ;;  %v581_v8 = vadd.f32 %v4186_v20, %v499_v62  ;;  %v2735_v62 = vld [vmem:[%s5847_s3 + $0x98] sm:$0xff] }
  0xa1   :  { %v312_v27 = vpop.permute.xlu1 %311  ;;  %v4276_v28 = vpop.permute.xlu0 %181  ;;  %3099 = vmatprep.mubr.msk.f32.mxu0 %vm3859_vm0, %v3858_v5  ;;  %3195 = vmatprep.mubr.msk.f32.mxu1 %vm3859_vm0, %v3858_v5 }
  0xa2   :  { %v526_v30 = vmul.f32 %v4175_v17, %v312_v27  ;;  %v682_v32 = vmax.f32 %v607_v25, 0.0  ;;  %3303 = vmatpush3.msra.mxu1 %v2746_v24  ;;  %v500_v11 = vmul.f32 %v4175_v17, %v4276_v28  ;;  %v656_v21 = vmax.f32 %v581_v8, 0.0  ;;  %v2734_v8 = vld [vmem:[%s5847_s3 + $0x90] sm:$0xff] }
  0xa3   :  { %3304 = vmatprep.subr.mxu1 %v3858_v5 }
  0xa4   :  { %v608_v34 = vadd.f32 %v4186_v20, %v526_v30  ;;  %3100 = vmatmul.mubr.f32.gmra.mxu0 %v650_v31  ;;  %3196 = vmatmul.mubr.f32.gmra.mxu1 %v682_v32  ;;  %v582_v22 = vadd.f32 %v4186_v20, %v500_v11 }
  0xa5   :  { %v317_v36 = vpop.permute.xlu1 %316  ;;  %v4290_v37 = vpop.permute.xlu0 %186  ;;  %3102 = vmatprep.mubr.msk.f32.mxu0 %vm3859_vm0, %v3858_v5  ;;  %3198 = vmatprep.mubr.msk.f32.mxu1 %vm3859_vm0, %v3858_v5 }
  0xa6   :  { %v527_v39 = vmul.f32 %v4175_v17, %v317_v36  ;;  %v683_v41 = vmax.f32 %v608_v34, 0.0  ;;  %3305 = vmatpush3.msra.mxu1 %v2745_v33  ;;  %v501_v23 = vmul.f32 %v4175_v17, %v4290_v37  ;;  %v657_v33 = vmax.f32 %v582_v22, 0.0 }
  0xa7   :  { %3306 = vmatprep.subr.mxu1 %v3858_v5 }
  0xa8   :  { %v609_v43 = vadd.f32 %v4186_v20, %v527_v39  ;;  %3103 = vmatmul.mubr.f32.gmra.mxu0 %v651_v40  ;;  %3199 = vmatmul.mubr.f32.gmra.mxu1 %v683_v41  ;;  %v583_v31 = vadd.f32 %v4186_v20, %v501_v23 }
  0xa9   :  { %v322_v45 = vpop.permute.xlu1 %321  ;;  %v4304_v46 = vpop.permute.xlu0 %191  ;;  %3105 = vmatprep.mubr.msk.f32.mxu0 %vm3859_vm0, %v3858_v5  ;;  %3201 = vmatprep.mubr.msk.f32.mxu1 %vm3859_vm0, %v3858_v5 }
  0xaa   :  { %v528_v48 = vmul.f32 %v4175_v17, %v322_v45  ;;  %v684_v50 = vmax.f32 %v609_v43, 0.0  ;;  %3307 = vmatpush3.msra.mxu1 %v2744_v42  ;;  %v502_v28 = vmul.f32 %v4175_v17, %v4304_v46  ;;  %v658_v42 = vmax.f32 %v583_v31, 0.0 }
  0xab   :  { %3308 = vmatprep.subr.mxu1 %v3858_v5 }
  0xac   :  { %v610_v52 = vadd.f32 %v4186_v20, %v528_v48  ;;  %3106 = vmatmul.mubr.f32.gmra.mxu0 %v652_v49  ;;  %3202 = vmatmul.mubr.f32.gmra.mxu1 %v684_v50  ;;  %v584_v37 = vadd.f32 %v4186_v20, %v502_v28  ;;  %v2732_v28 = vld [vmem:[%s5847_s3 + $0x80] sm:$0xff] }
  0xad   :  { %v327_v53 = vpop.permute.xlu1 %326  ;;  %v4318_v54 = vpop.permute.xlu0 %196  ;;  %3108 = vmatprep.mubr.msk.f32.mxu0 %vm3859_vm0, %v3858_v5  ;;  %3204 = vmatprep.mubr.msk.f32.mxu1 %vm3859_vm0, %v3858_v5 }
  0xae   :  { %v529_v58 = vmul.f32 %v4175_v17, %v327_v53  ;;  %v685_v59 = vmax.f32 %v610_v52, 0.0  ;;  %3309 = vmatpush3.msra.mxu1 %v2743_v51  ;;  %v503_v40 = vmul.f32 %v4175_v17, %v4318_v54  ;;  %v659_v48 = vmax.f32 %v584_v37, 0.0  ;;  %v2736_v53 = vld [vmem:[%s5847_s3 + $0xa0] sm:$0xff] }
  0xaf   :  { %3310 = vmatprep.subr.mxu1 %v3858_v5 }
  0xb0   :  { %v611_v61 = vadd.f32 %v4186_v20, %v529_v58  ;;  %3109 = vmatmul.mubr.f32.gmra.mxu0 %v653_v55  ;;  %3205 = vmatmul.mubr.f32.gmra.mxu1 %v685_v59  ;;  %v585_v49 = vadd.f32 %v4186_v20, %v503_v40 }
  0xb1   :  { %v332_v63 = vpop.permute.xlu1 %331  ;;  %v4335_v0 = vpop.permute.xlu0 %201  ;;  %3111 = vmatprep.mubr.msk.f32.mxu0 %vm3859_vm0, %v3858_v5  ;;  %3207 = vmatprep.mubr.msk.f32.mxu1 %vm3859_vm0, %v3858_v5 }
  0xb2   :  { %v530_v2 = vmul.f32 %v4175_v17, %v332_v63  ;;  %v686_v4 = vmax.f32 %v611_v61, 0.0  ;;  %3311 = vmatpush3.msra.mxu1 %v2742_v60  ;;  %v504_v50 = vmul.f32 %v4175_v17, %v4335_v0  ;;  %v660_v60 = vmax.f32 %v585_v49, 0.0 }
  0xb3   :  { %3312 = vmatprep.subr.mxu1 %v3858_v5 }
  0xb4   :  { %v612_v7 = vadd.f32 %v4186_v20, %v530_v2  ;;  %3112 = vmatmul.mubr.f32.gmra.mxu0 %v654_v3  ;;  %3208 = vmatmul.mubr.f32.gmra.mxu1 %v686_v4  ;;  %v586_v58 = vadd.f32 %v4186_v20, %v504_v50 }
  0xb5   :  { %v337_v9 = vpop.permute.xlu1 %336  ;;  %v4349_v10 = vpop.permute.xlu0 %206  ;;  %3114 = vmatprep.mubr.msk.f32.mxu0 %vm3859_vm0, %v3858_v5  ;;  %3210 = vmatprep.mubr.msk.f32.mxu1 %vm3859_vm0, %v3858_v5 }
  0xb6   :  { %v531_v12 = vmul.f32 %v4175_v17, %v337_v9  ;;  %v687_v14 = vmax.f32 %v612_v7, 0.0  ;;  %3313 = vmatpush3.msra.mxu1 %v2741_v6  ;;  %v505_v55 = vmul.f32 %v4175_v17, %v4349_v10  ;;  %v661_v6 = vmax.f32 %v586_v58, 0.0 }
  0xb7   :  { %3314 = vmatprep.subr.mxu1 %v3858_v5 }
  0xb8   :  { %v613_v16 = vadd.f32 %v4186_v20, %v531_v12  ;;  %3115 = vmatmul.mubr.f32.gmra.mxu0 %v655_v13  ;;  %3211 = vmatmul.mubr.f32.gmra.mxu1 %v687_v14  ;;  %v587_v0 = vadd.f32 %v4186_v20, %v505_v55 }
  0xb9   :  { %v342_v18 = vpop.permute.xlu1 %341  ;;  %v4363_v19 = vpop.permute.xlu0 %211  ;;  %3117 = vmatprep.mubr.msk.f32.mxu0 %vm3859_vm0, %v3858_v5  ;;  %3213 = vmatprep.mubr.msk.f32.mxu1 %vm3859_vm0, %v3858_v5 }
  0xba   :  { %v532_v24 = vmul.f32 %v4175_v17, %v342_v18  ;;  %v688_v25 = vmax.f32 %v613_v16, 0.0  ;;  %3315 = vmatpush3.msra.mxu1 %v2740_v15  ;;  %v506_v3 = vmul.f32 %v4175_v17, %v4363_v19  ;;  %v662_v12 = vmax.f32 %v587_v0, 0.0  ;;  %v2733_v18 = vld [vmem:[%s5847_s3 + $0x88] sm:$0xff] }
  0xbb   :  { %3316 = vmatprep.subr.mxu1 %v3858_v5 }
  0xbc   :  { %v614_v27 = vadd.f32 %v4186_v20, %v532_v24  ;;  %3118 = vmatmul.mubr.f32.gmra.mxu0 %v656_v21  ;;  %3214 = vmatmul.mubr.f32.gmra.mxu1 %v688_v25  ;;  %v588_v13 = vadd.f32 %v4186_v20, %v506_v3 }
  0xbd   :  { %v347_v29 = vpop.permute.xlu1 %346  ;;  %v4380_v30 = vpop.permute.xlu0 %216  ;;  %3120 = vmatprep.mubr.msk.f32.mxu0 %vm3859_vm0, %v3858_v5  ;;  %3216 = vmatprep.mubr.msk.f32.mxu1 %vm3859_vm0, %v3858_v5 }
  0xbe   :  { %v533_v32 = vmul.f32 %v4175_v17, %v347_v29  ;;  %v689_v34 = vmax.f32 %v614_v27, 0.0  ;;  %3317 = vmatpush3.msra.mxu1 %v2739_v26  ;;  %v507_v14 = vmul.f32 %v4175_v17, %v4380_v30  ;;  %v663_v26 = vmax.f32 %v588_v13, 0.0 }
  0xbf   :  { %3318 = vmatprep.subr.mxu1 %v3858_v5 }
  0xc0   :  { %v615_v36 = vadd.f32 %v4186_v20, %v533_v32  ;;  %3121 = vmatmul.mubr.f32.gmra.mxu0 %v657_v33  ;;  %3217 = vmatmul.mubr.f32.gmra.mxu1 %v689_v34  ;;  %v589_v24 = vadd.f32 %v4186_v20, %v507_v14 }
  0xc1   :  { %v352_v38 = vpop.permute.xlu1 %351  ;;  %v4394_v39 = vpop.permute.xlu0 %221  ;;  %3123 = vmatprep.mubr.msk.f32.mxu0 %vm3859_vm0, %v3858_v5  ;;  %3219 = vmatprep.mubr.msk.f32.mxu1 %vm3859_vm0, %v3858_v5 }
  0xc2   :  { %v534_v41 = vmul.f32 %v4175_v17, %v352_v38  ;;  %v690_v43 = vmax.f32 %v615_v36, 0.0  ;;  %3319 = vmatpush3.msra.mxu1 %v2738_v35  ;;  %v508_v21 = vmul.f32 %v4175_v17, %v4394_v39  ;;  %v664_v35 = vmax.f32 %v589_v24, 0.0 }
  0xc3   :  { %3320 = vmatprep.subr.mxu1 %v3858_v5 }
  0xc4   :  { %v616_v45 = vadd.f32 %v4186_v20, %v534_v41  ;;  %3124 = vmatmul.mubr.f32.gmra.mxu0 %v658_v42  ;;  %3220 = vmatmul.mubr.f32.gmra.mxu1 %v690_v43  ;;  %v590_v30 = vadd.f32 %v4186_v20, %v508_v21 }
  0xc5   :  { %v357_v46 = vpop.permute.xlu1 %356  ;;  %v4408_v47 = vpop.permute.xlu0 %226  ;;  %3126 = vmatprep.mubr.msk.f32.mxu0 %vm3859_vm0, %v3858_v5  ;;  %3222 = vmatprep.mubr.msk.f32.mxu1 %vm3859_vm0, %v3858_v5 }
  0xc6   :  { %v535_v51 = vmul.f32 %v4175_v17, %v357_v46  ;;  %v691_v52 = vmax.f32 %v616_v45, 0.0  ;;  %3321 = vmatpush3.msra.mxu1 %v2737_v44  ;;  %v509_v33 = vmul.f32 %v4175_v17, %v4408_v47  ;;  %v665_v40 = vmax.f32 %v590_v30, 0.0 }
  0xc7   :  { %3322 = vmatprep.subr.mxu1 %v3858_v5 }
  0xc8   :  { %v617_v54 = vadd.f32 %v4186_v20, %v535_v51  ;;  %3127 = vmatmul.mubr.f32.gmra.mxu0 %v659_v48  ;;  %3223 = vmatmul.mubr.f32.gmra.mxu1 %v691_v52  ;;  %v591_v41 = vadd.f32 %v4186_v20, %v509_v33 }
  0xc9   :  { %v362_v56 = vpop.permute.xlu1 %361  ;;  %v4425_v57 = vpop.permute.xlu0 %231  ;;  %3129 = vmatprep.mubr.msk.f32.mxu0 %vm3859_vm0, %v3858_v5  ;;  %3225 = vmatprep.mubr.msk.f32.mxu1 %vm3859_vm0, %v3858_v5 }
  0xca   :  { %v536_v59 = vmul.f32 %v4175_v17, %v362_v56  ;;  %v692_v61 = vmax.f32 %v617_v54, 0.0  ;;  %3323 = vmatpush3.msra.mxu1 %v2736_v53  ;;  %v510_v42 = vmul.f32 %v4175_v17, %v4425_v57  ;;  %v666_v51 = vmax.f32 %v591_v41, 0.0 }
  0xcb   :  { %3324 = vmatprep.subr.mxu1 %v3858_v5 }
  0xcc   :  { %v618_v63 = vadd.f32 %v4186_v20, %v536_v59  ;;  %3130 = vmatmul.mubr.f32.gmra.mxu0 %v660_v60  ;;  %3226 = vmatmul.mubr.f32.gmra.mxu1 %v692_v61  ;;  %v592_v49 = vadd.f32 %v4186_v20, %v510_v42 }
  0xcd   :  { %v367_v1 = vpop.permute.xlu1 %366  ;;  %v4439_v2 = vpop.permute.xlu0 %236  ;;  %3132 = vmatprep.mubr.msk.f32.mxu0 %vm3859_vm0, %v3858_v5  ;;  %3228 = vmatprep.mubr.msk.f32.mxu1 %vm3859_vm0, %v3858_v5 }
  0xce   :  { %v537_v4 = vmul.f32 %v4175_v17, %v367_v1  ;;  %v693_v7 = vmax.f32 %v618_v63, 0.0  ;;  %3325 = vmatpush3.msra.mxu1 %v2735_v62  ;;  %v511_v46 = vmul.f32 %v4175_v17, %v4439_v2  ;;  %v667_v60 = vmax.f32 %v592_v49, 0.0 }
  0xcf   :  { %3326 = vmatprep.subr.mxu1 %v3858_v5 }
  0xd0   :  { %v619_v9 = vadd.f32 %v4186_v20, %v537_v4  ;;  %3133 = vmatmul.mubr.f32.gmra.mxu0 %v661_v6  ;;  %3229 = vmatmul.mubr.f32.gmra.mxu1 %v693_v7  ;;  %v593_v54 = vadd.f32 %v4186_v20, %v511_v46 }
  0xd1   :  { %v372_v10 = vpop.permute.xlu1 %371  ;;  %v4453_v11 = vpop.permute.xlu0 %241  ;;  %3135 = vmatprep.mubr.msk.f32.mxu0 %vm3859_vm0, %v3858_v5  ;;  %3231 = vmatprep.mubr.msk.f32.mxu1 %vm3859_vm0, %v3858_v5 }
  0xd2   :  { %v538_v15 = vmul.f32 %v4175_v17, %v372_v10  ;;  %v694_v16 = vmax.f32 %v619_v9, 0.0  ;;  %3327 = vmatpush3.msra.mxu1 %v2734_v8  ;;  %v512_v57 = vmul.f32 %v4175_v17, %v4453_v11  ;;  %v668_v0 = vmax.f32 %v593_v54, 0.0 }
  0xd3   :  { %3328 = vmatprep.subr.mxu1 %v3858_v5 }
  0xd4   :  { %v620_v19 = vadd.f32 %v4186_v20, %v538_v15  ;;  %3136 = vmatmul.mubr.f32.gmra.mxu0 %v662_v12  ;;  %3232 = vmatmul.mubr.f32.gmra.mxu1 %v694_v16  ;;  %v594_v1 = vadd.f32 %v4186_v20, %v512_v57 }
  0xd5   :  { %v377_v22 = vpop.permute.xlu1 %376  ;;  %v4470_v23 = vpop.permute.xlu0 %246  ;;  %3138 = vmatprep.mubr.msk.f32.mxu0 %vm3859_vm0, %v3858_v5  ;;  %3234 = vmatprep.mubr.msk.f32.mxu1 %vm3859_vm0, %v3858_v5 }
  0xd6   :  { %v539_v25 = vmul.f32 %v4175_v17, %v377_v22  ;;  %v695_v27 = vmax.f32 %v620_v19, 0.0  ;;  %3329 = vmatpush3.msra.mxu1 %v2733_v18  ;;  %v513_v2 = vmul.f32 %v4175_v17, %v4470_v23  ;;  %v669_v13 = vmax.f32 %v594_v1, 0.0 }
  0xd7   :  { %3330 = vmatprep.subr.mxu1 %v3858_v5 }
  0xd8   :  { %v621_v29 = vadd.f32 %v4186_v20, %v539_v25  ;;  %3139 = vmatmul.mubr.f32.gmra.mxu0 %v663_v26  ;;  %3235 = vmatmul.mubr.f32.gmra.mxu1 %v695_v27  ;;  %v595_v10 = vadd.f32 %v4186_v20, %v513_v2 }
  0xd9   :  { %v382_v31 = vpop.permute.xlu1 %381  ;;  %v252_v32 = vpop.permute.xlu0 %251  ;;  %3141 = vmatprep.mubr.msk.f32.mxu0 %vm3859_vm0, %v3858_v5  ;;  %3237 = vmatprep.mubr.msk.f32.mxu1 %vm3859_vm0, %v3858_v5 }
  0xda   :  { %v540_v34 = vmul.f32 %v4175_v17, %v382_v31  ;;  %v696_v36 = vmax.f32 %v621_v29, 0.0  ;;  %3331 = vmatpush3.msra.mxu1 %v2732_v28  ;;  %v514_v7 = vmul.f32 %v4175_v17, %v252_v32  ;;  %v670_v23 = vmax.f32 %v595_v10, 0.0  ;;  %v2765_v32 = vld [vmem:[%s5847_s3 + $0x178] sm:$0xff] }
  0xdb   :  { %3558 = vmatpush3.msra.mxu0 %v2765_v32 }
  0xdc   :  { %v622_v37 = vadd.f32 %v4186_v20, %v540_v34  ;;  %3142 = vmatmul.mubr.f32.gmra.mxu0 %v664_v35  ;;  %3238 = vmatmul.mubr.f32.gmra.mxu1 %v696_v36  ;;  %v596_v15 = vadd.f32 %v4186_v20, %v514_v7 }
  0xdd   :  { %v387_v38 = vpop.permute.xlu1 %386  ;;  %v4492_v39 = vpop.permute.xlu0 %256  ;;  %3144 = vmatprep.mubr.msk.f32.mxu0 %vm3859_vm0, %v3858_v5  ;;  %3240 = vmatprep.mubr.msk.f32.mxu1 %vm3859_vm0, %v3858_v5 }
  0xde   :  { %v541_v43 = vmul.f32 %v4175_v17, %v387_v38  ;;  %v697_v44 = vmax.f32 %v622_v37, 0.0  ;;  %v515_v19 = vmul.f32 %v4175_v17, %v4492_v39  ;;  %v671_v27 = vmax.f32 %v596_v15, 0.0  ;;  %3559 = vmatprep.subr.mxu0 %v3858_v5 }
  0xe0   :  { %v623_v45 = vadd.f32 %v4186_v20, %v541_v43  ;;  %3145 = vmatmul.mubr.f32.gmra.mxu0 %v665_v40  ;;  %3241 = vmatmul.mubr.f32.gmra.mxu1 %v697_v44  ;;  %v597_v28 = vadd.f32 %v4186_v20, %v515_v19 }
  0xe1   :  { %v392_v47 = vpop.permute.xlu1 %391  ;;  %v4505_v48 = vpop.permute.xlu0 %261  ;;  %3147 = vmatprep.mubr.msk.f32.mxu0 %vm3859_vm0, %v3858_v5  ;;  %3243 = vmatprep.mubr.msk.f32.mxu1 %vm3859_vm0, %v3858_v5 }
  0xe2   :  { %v542_v50 = vmul.f32 %v4175_v17, %v392_v47  ;;  %v698_v52 = vmax.f32 %v623_v45, 0.0  ;;  %v516_v29 = vmul.f32 %v4175_v17, %v4505_v48  ;;  %v672_v40 = vmax.f32 %v597_v28, 0.0 }
  0xe4   :  { %v624_v53 = vadd.f32 %v4186_v20, %v542_v50  ;;  %3148 = vmatmul.mubr.f32.gmra.mxu0 %v666_v51  ;;  %3244 = vmatmul.mubr.f32.gmra.mxu1 %v698_v52  ;;  %v598_v37 = vadd.f32 %v4186_v20, %v516_v29 }
  0xe5   :  { %v397_v55 = vpop.permute.xlu1 %396  ;;  %v267_v56 = vpop.permute.xlu0 %266  ;;  %3150 = vmatprep.mubr.msk.f32.mxu0 %vm3859_vm0, %v3858_v5  ;;  %3246 = vmatprep.mubr.msk.f32.mxu1 %vm3859_vm0, %v3858_v5 }
  0xe6   :  { %v699_v58 = vmax.f32 %v624_v53, 0.0  ;;  %v543_v59 = vmul.f32 %v4175_v17, %v397_v55  ;;  %v517_v34 = vmul.f32 %v4175_v17, %v267_v56  ;;  %v673_v49 = vmax.f32 %v598_v37, 0.0 }
  0xe8   :  { %v625_v61 = vadd.f32 %v4186_v20, %v543_v59  ;;  %3151 = vmatmul.mubr.f32.gmra.mxu0 %v667_v60  ;;  %3247 = vmatmul.mubr.f32.gmra.mxu1 %v699_v58  ;;  %v599_v42 = vadd.f32 %v4186_v20, %v517_v34  ;;  %v2764_v59 = vld [vmem:[%s5847_s3 + $0x170] sm:$0xff] }
  0xe9   :  { %v402_v62 = vpop.permute.xlu1 %401  ;;  %v4523_v63 = vpop.permute.xlu0 %271  ;;  %3153 = vmatprep.mubr.msk.f32.mxu0 %vm3859_vm0, %v3858_v5  ;;  %3249 = vmatprep.mubr.msk.f32.mxu1 %vm3859_vm0, %v3858_v5 }
  0xea   :  { %v700_v3 = vmax.f32 %v625_v61, 0.0  ;;  %v544_v4 = vmul.f32 %v4175_v17, %v402_v62  ;;  %v518_v43 = vmul.f32 %v4175_v17, %v4523_v63  ;;  %v674_v53 = vmax.f32 %v599_v42, 0.0  ;;  %3560 = vmatpush3.msra.mxu0 %v2764_v59 }
  0xeb   :  { %3561 = vmatprep.subr.mxu0 %v3858_v5 }
  0xec   :  { %v626_v6 = vadd.f32 %v4186_v20, %v544_v4  ;;  %3154 = vmatmul.mubr.f32.gmra.mxu0 %v668_v0  ;;  %3250 = vmatmul.mubr.f32.gmra.mxu1 %v700_v3  ;;  %v600_v51 = vadd.f32 %v4186_v20, %v518_v43 }
  0xed   :  { %v407_v8 = vpop.permute.xlu1 %406  ;;  %v4535_v9 = vpop.permute.xlu0 %276  ;;  %3156 = vmatprep.mubr.msk.f32.mxu0 %vm3859_vm0, %v3858_v5  ;;  %3252 = vmatprep.mubr.msk.f32.mxu1 %vm3859_vm0, %v3858_v5 }
  0xee   :  { %v701_v11 = vmax.f32 %v626_v6, 0.0  ;;  %v545_v12 = vmul.f32 %v4175_v17, %v407_v8  ;;  %v519_v54 = vmul.f32 %v4175_v17, %v4535_v9  ;;  %v675_v60 = vmax.f32 %v600_v51, 0.0  ;;  %v4691_v51 = vld [vmem:[%s5850_s4] ss:$0 sm:$0xff] }
  0xf0   :  { %v627_v14 = vadd.f32 %v4186_v20, %v545_v12  ;;  %3157 = vmatmul.mubr.f32.gmra.mxu0 %v669_v13  ;;  %3253 = vmatmul.mubr.f32.gmra.mxu1 %v701_v11  ;;  %v601_v62 = vadd.f32 %v4186_v20, %v519_v54  ;;  %v2763_v11 = vld [vmem:[%s5847_s3 + $0x168] sm:$0xff] }
  0xf1   :  { %v412_v16 = vpop.permute.xlu1 %411  ;;  %v4545_v18 = vpop.permute.xlu0 %281  ;;  %3159 = vmatprep.mubr.msk.f32.mxu0 %vm3859_vm0, %v3858_v5  ;;  %3255 = vmatprep.mubr.msk.f32.mxu1 %vm3859_vm0, %v3858_v5 }
  0xf2   :  { %v702_v21 = vmax.f32 %v627_v14, 0.0  ;;  %v546_v22 = vmul.f32 %v4175_v17, %v412_v16  ;;  %v520_v61 = vmul.f32 %v4175_v17, %v4545_v18  ;;  %v676_v6 = vmax.f32 %v601_v62, 0.0  ;;  %3562 = vmatpush3.msra.mxu0 %v2763_v11  ;;  %v2755_v11 = vld [vmem:[%s5847_s3 + $0x128] sm:$0xff] }
  0xf3   :  { %3563 = vmatprep.subr.mxu0 %v3858_v5 }
  0xf4   :  { %v628_v24 = vadd.f32 %v4186_v20, %v546_v22  ;;  %3160 = vmatmul.mubr.f32.gmra.mxu0 %v670_v23  ;;  %3256 = vmatmul.mubr.f32.gmra.mxu1 %v702_v21  ;;  %v602_v3 = vadd.f32 %v4186_v20, %v520_v61 }
  0xf5   :  { %v417_v25 = vpop.permute.xlu1 %416  ;;  %v4555_v26 = vpop.permute.xlu0 %286  ;;  %3162 = vmatprep.mubr.msk.f32.mxu0 %vm3859_vm0, %v3858_v5  ;;  %3258 = vmatprep.mubr.msk.f32.mxu1 %vm3859_vm0, %v3858_v5 }
  0xf6   :  { %v703_v30 = vmax.f32 %v628_v24, 0.0  ;;  %v547_v31 = vmul.f32 %v4175_v17, %v417_v25  ;;  %v521_v4 = vmul.f32 %v4175_v17, %v4555_v26  ;;  %v677_v12 = vmax.f32 %v602_v3, 0.0 }
  0xf8   :  { %v629_v33 = vadd.f32 %v4186_v20, %v547_v31  ;;  %3163 = vmatmul.mubr.f32.gmra.mxu0 %v671_v27  ;;  %3259 = vmatmul.mubr.f32.gmra.mxu1 %v703_v30  ;;  %v603_v13 = vadd.f32 %v4186_v20, %v521_v4  ;;  %v2762_v27 = vld [vmem:[%s5847_s3 + $0x160] sm:$0xff] }
  0xf9   :  { %v422_v35 = vpop.permute.xlu1 %421  ;;  %v4570_v36 = vpop.permute.xlu0 %291  ;;  %3165 = vmatprep.mubr.msk.f32.mxu0 %vm3859_vm0, %v3858_v5  ;;  %3261 = vmatprep.mubr.msk.f32.mxu1 %vm3859_vm0, %v3858_v5 }
  0xfa   :  { %v704_v38 = vmax.f32 %v629_v33, 0.0  ;;  %v548_v39 = vmul.f32 %v4175_v17, %v422_v35  ;;  %v522_v14 = vmul.f32 %v4175_v17, %v4570_v36  ;;  %v678_v21 = vmax.f32 %v603_v13, 0.0  ;;  %3564 = vmatpush3.msra.mxu0 %v2762_v27 }
  0xfb   :  { %3565 = vmatprep.subr.mxu0 %v3858_v5 }
  0xfc   :  { %v630_v41 = vadd.f32 %v4186_v20, %v548_v39  ;;  %3166 = vmatmul.mubr.f32.gmra.mxu0 %v672_v40  ;;  %3262 = vmatmul.mubr.f32.gmra.mxu1 %v704_v38  ;;  %v604_v22 = vadd.f32 %v4186_v20, %v522_v14  ;;  %v3852_v39 = vld [vmem:[%s5849_s2] ss:$0 sm:$0xff] }
  0xfd   :  { %v432_v44 = vpop.permute.xlu1 %431  ;;  %v427_v45 = vpop.permute.xlu0 %426  ;;  %3168 = vmatprep.mubr.msk.f32.mxu0 %vm3859_vm0, %v3858_v5  ;;  %3264 = vmatprep.mubr.msk.f32.mxu1 %vm3859_vm0, %v3858_v5 }
  0xfe   :  { %v705_v46 = vmax.f32 %v630_v41, 0.0  ;;  %v550_v47 = vmul.f32 %v4175_v17, %v432_v44  ;;  %v549_v48 = vmul.f32 %v4175_v17, %v427_v45  ;;  %v679_v28 = vmax.f32 %v604_v22, 0.0 }
 0x100   :  { %v631_v50 = vadd.f32 %v4186_v20, %v549_v48  ;;  %3169 = vmatmul.mubr.f32.gmra.mxu0 %v673_v49  ;;  %3265 = vmatmul.mubr.f32.gmra.mxu1 %v705_v46  ;;  %v632_v55 = vadd.f32 %v4186_v20, %v550_v47  ;;  %v2760_v47 = vld [vmem:[%s5847_s3 + $0x150] sm:$0xff]  ;;  %v2759_v49 = vld [vmem:[%s5847_s3 + $0x148] sm:$0xff] }
 0x101   :  { %v437_v52 = vpop.permute.xlu0 %436  ;;  %3171 = vmatprep.mubr.msk.f32.mxu0 %vm3859_vm0, %v3858_v5  ;;  %3267 = vmatprep.mubr.msk.f32.mxu1 %vm3859_vm0, %v3858_v5  ;;  %v442_v58 = vpop.permute.xlu1 %441 }
 0x102   :  { %v706_v56 = vmax.f32 %v631_v50, 0.0  ;;  %v551_v57 = vmul.f32 %v4175_v17, %v437_v52  ;;  %v707_v63 = vmax.f32 %v632_v55, 0.0  ;;  %v552_v0 = vmul.f32 %v4175_v17, %v442_v58  ;;  %v2758_v50 = vld [vmem:[%s5847_s3 + $0x140] sm:$0xff]  ;;  %v2757_v52 = vld [vmem:[%s5847_s3 + $0x138] sm:$0xff] }
 0x104   :  { %3172 = vmatmul.mubr.f32.gmra.mxu0 %v674_v53  ;;  %3268 = vmatmul.mubr.f32.gmra.mxu1 %v706_v56  ;;  %v633_v1 = vadd.f32 %v4186_v20, %v551_v57  ;;  %v634_v7 = vadd.f32 %v4186_v20, %v552_v0 }
 0x105   :  { %3174 = vmatprep.mubr.msk.f32.mxu0 %vm3859_vm0, %v3858_v5  ;;  %3270 = vmatprep.mubr.msk.f32.mxu1 %vm3859_vm0, %v3858_v5  ;;  %v447_v2 = vpop.permute.xlu0 %446  ;;  %v452_v10 = vpop.permute.xlu1 %451 }
 0x106   :  { %v708_v8 = vmax.f32 %v633_v1, 0.0  ;;  %v553_v9 = vmul.f32 %v4175_v17, %v447_v2  ;;  %v709_v15 = vmax.f32 %v634_v7, 0.0  ;;  %v554_v16 = vmul.f32 %v4175_v17, %v452_v10  ;;  %v2756_v1 = vld [vmem:[%s5847_s3 + $0x130] sm:$0xff] }
 0x108   :  { %3175 = vmatmul.mubr.f32.gmra.mxu0 %v675_v60  ;;  %3271 = vmatmul.mubr.f32.gmra.mxu1 %v707_v63  ;;  %v635_v18 = vadd.f32 %v4186_v20, %v553_v9  ;;  %v636_v23 = vadd.f32 %v4186_v20, %v554_v16 }
 0x109   :  { %3177 = vmatprep.mubr.msk.f32.mxu0 %vm3859_vm0, %v3858_v5  ;;  %3273 = vmatprep.mubr.msk.f32.mxu1 %vm3859_vm0, %v3858_v5  ;;  %v457_v19 = vpop.permute.xlu0 %456  ;;  %v462_v26 = vpop.permute.xlu1 %461 }
 0x10a   :  { %v710_v24 = vmax.f32 %v635_v18, 0.0  ;;  %v555_v25 = vmul.f32 %v4175_v17, %v457_v19  ;;  %v711_v29 = vmax.f32 %v636_v23, 0.0  ;;  %v556_v30 = vmul.f32 %v4175_v17, %v462_v26  ;;  %v3851_v17 = vld [vmem:[%s5848_s1] ss:$0 sm:$0xff] }
 0x10c   :  { %3178 = vmatmul.mubr.f32.gmra.mxu0 %v676_v6  ;;  %3274 = vmatmul.mubr.f32.gmra.mxu1 %v708_v8  ;;  %v637_v31 = vadd.f32 %v4186_v20, %v555_v25  ;;  %v638_v33 = vadd.f32 %v4186_v20, %v556_v30  ;;  %v2761_v20 = vld [vmem:[%s5847_s3 + $0x158] sm:$0xff] }
 0x10d   :  { %3180 = vmatprep.mubr.msk.f32.mxu0 %vm3859_vm0, %v3858_v5  ;;  %3276 = vmatprep.mubr.msk.f32.mxu1 %vm3859_vm0, %v3858_v5  ;;  %v467_v32 = vpop.permute.xlu0 %466  ;;  %v472_v36 = vpop.permute.xlu1 %471 }
 0x10e   :  { %v712_v34 = vmax.f32 %v637_v31, 0.0  ;;  %v557_v35 = vmul.f32 %v3851_v17, %v467_v32  ;;  %v713_v37 = vmax.f32 %v638_v33, 0.0  ;;  %v558_v38 = vmul.f32 %v3851_v17, %v472_v36  ;;  %3566 = vmatpush3.msra.mxu0 %v2761_v20  ;;  %v2753_v20 = vld [vmem:[%s5847_s3 + $0x118] sm:$0xff] }
 0x10f   :  { %3567 = vmatprep.subr.mxu0 %v3858_v5 }
 0x110   :  { %3181 = vmatmul.mubr.f32.gmra.mxu0 %v677_v12  ;;  %3277 = vmatmul.mubr.f32.gmra.mxu1 %v709_v15  ;;  %v639_v40 = vadd.f32 %v3852_v39, %v557_v35  ;;  %v640_v42 = vadd.f32 %v3852_v39, %v558_v38 }
 0x111   :  { %3183 = vmatprep.mubr.msk.f32.mxu0 %vm3859_vm0, %v3858_v5  ;;  %3279 = vmatprep.mubr.msk.f32.mxu1 %vm3859_vm0, %v3858_v5  ;;  %v477_v41 = vpop.permute.xlu0 %476 }
 0x112   :  { %v714_v43 = vmax.f32 %v639_v40, 0.0  ;;  %v559_v44 = vmul.f32 %v3851_v17, %v477_v41  ;;  %v715_v45 = vmax.f32 %v640_v42, 0.0  ;;  %3568 = vmatpush3.msra.mxu0 %v2760_v47 }
 0x113   :  { %3569 = vmatprep.subr.mxu0 %v3858_v5 }
 0x114   :  { %3184 = vmatmul.mubr.f32.gmra.mxu0 %v678_v21  ;;  %3280 = vmatmul.mubr.f32.gmra.mxu1 %v710_v24  ;;  %v641_v46 = vadd.f32 %v3852_v39, %v559_v44  ;;  %v2754_v24 = vld [vmem:[%s5847_s3 + $0x120] sm:$0xff] }
 0x115   :  { %3186 = vmatprep.mubr.msk.f32.mxu0 %vm3859_vm0, %v3858_v5  ;;  %3282 = vmatprep.mubr.msk.f32.mxu1 %vm3859_vm0, %v3858_v5 }
 0x116   :  { %v716_v48 = vmax.f32 %v641_v46, 0.0  ;;  %3570 = vmatpush3.msra.mxu0 %v2759_v49 }
 0x117   :  { %3571 = vmatprep.subr.mxu0 %v3858_v5 }
 0x118   :  { %3187 = vmatmul.mubr.f32.gmra.mxu0 %v679_v28  ;;  %3283 = vmatmul.mubr.f32.gmra.mxu1 %v711_v29 }
 0x119   :  { %3285 = vmatprep.mubr.msk.f32.mxu1 %vm3859_vm0, %v3858_v5  ;;  %3589 = vmatprep.mubr.msk.f32.mxu0 %vm3859_vm0, %v3858_v5 }
 0x11a   :  { %3572 = vmatpush3.msra.mxu0 %v2758_v50 }
 0x11b   :  { %3573 = vmatprep.subr.mxu0 %v3858_v5 }
 0x11c   :  { %3286 = vmatmul.mubr.f32.gmra.mxu1 %v712_v34  ;;  %3574 = vmatpush3.msra.mxu0 %v2757_v52  ;;  %v2752_v52 = vld [vmem:[%s5847_s3 + $0x110] sm:$0xff] }
 0x11d   :  { %3288 = vmatprep.mubr.msk.f32.mxu1 %vm3859_vm0, %v3858_v5  ;;  %3575 = vmatprep.subr.mxu0 %v3858_v5 }
 0x11e   :  { %3576 = vmatpush3.msra.mxu0 %v2756_v1  ;;  %v2751_v1 = vld [vmem:[%s5847_s3 + $0x108] sm:$0xff] }
 0x11f   :  { %3577 = vmatprep.subr.mxu0 %v3858_v5 }
 0x120   :  { %3289 = vmatmul.mubr.f32.gmra.mxu1 %v713_v37  ;;  %3578 = vmatpush3.msra.mxu0 %v2755_v11 }
 0x121   :  { %3291 = vmatprep.mubr.msk.f32.mxu1 %vm3859_vm0, %v3858_v5  ;;  %3579 = vmatprep.subr.mxu0 %v3858_v5 }
 0x122   :  { %3580 = vmatpush3.msra.mxu0 %v2754_v24  ;;  %v2750_v24 = vld [vmem:[%s5847_s3 + $0x100] sm:$0xff] }
 0x123   :  { %3581 = vmatprep.subr.mxu0 %v3858_v5 }
 0x124   :  { %3292 = vmatmul.mubr.f32.gmra.mxu1 %v714_v43  ;;  %3582 = vmatpush3.msra.mxu0 %v2753_v20 }
 0x125   :  { %3294 = vmatprep.mubr.msk.f32.mxu1 %vm3859_vm0, %v3858_v5  ;;  %3583 = vmatprep.subr.mxu0 %v3858_v5 }
 0x126   :  { %3584 = vmatpush3.msra.mxu0 %v2752_v52 }
 0x127   :  { %3585 = vmatprep.subr.mxu0 %v3858_v5 }
 0x128   :  { %3295 = vmatmul.mubr.f32.gmra.mxu1 %v715_v45  ;;  %3586 = vmatpush3.msra.mxu0 %v2751_v1 }
 0x129   :  { %3297 = vmatprep.mubr.msk.f32.mxu1 %vm3859_vm0, %v3858_v5  ;;  %3587 = vmatprep.subr.mxu0 %v3858_v5 }
 0x12a   :  { %3588 = vmatpush3.msra.mxu0 %v2750_v24 }
 0x12c   :  { %3298 = vmatmul.mubr.f32.gmra.mxu1 %v716_v48 }
 0x12d   :  { %3332 = vmatprep.mubr.msk.f32.mxu1 %vm3859_vm0, %v3858_v5 }
 0x144   :  { %v806_v53 = vpop.f32.mrf.mxu0 }
 0x145   :  { %v807_v54 = vadd.f32 %v4691_v51, %v806_v53 }
 0x146   :  { %v3077_v55 = vpop.f32.mrf.mxu0 }
 0x147   :  { %v1180_v56 = vmax.f32 %v807_v54, 0.0 }
 0x148   :  { %v811_v57 = vpop.f32.mrf.mxu0 }
 0x149   :  { %v812_v58 = vadd.f32 %v4691_v51, %v811_v57  ;;  %3333 = vmatmul.mubr.f32.vlgmr.msra.gmra.mxu1 %v1180_v56 }
 0x14a   :  { %v3080_v59 = vpop.f32.mrf.mxu0  ;;  %3335 = vmatprep.mubr.msk.f32.mxu1 %vm3859_vm0, %v3858_v5 }
 0x14b   :  { %v1181_v60 = vmax.f32 %v812_v58, 0.0 }
 0x14c   :  { %v816_v61 = vpop.f32.mrf.mxu0 }
 0x14d   :  { %v817_v62 = vadd.f32 %v4691_v51, %v816_v61  ;;  %3336 = vmatmul.mubr.f32.gmra.mxu1 %v1181_v60 }
 0x14e   :  { %v3083_v63 = vpop.f32.mrf.mxu0  ;;  %3338 = vmatprep.mubr.msk.f32.mxu1 %vm3859_vm0, %v3858_v5 }
 0x14f   :  { %v1182_v0 = vmax.f32 %v817_v62, 0.0 }
 0x150   :  { %v821_v2 = vpop.f32.mrf.mxu0 }
 0x151   :  { %v822_v3 = vadd.f32 %v4691_v51, %v821_v2  ;;  %3339 = vmatmul.mubr.f32.gmra.mxu1 %v1182_v0 }
 0x152   :  { %v3086_v4 = vpop.f32.mrf.mxu0  ;;  %3341 = vmatprep.mubr.msk.f32.mxu1 %vm3859_vm0, %v3858_v5 }
 0x153   :  { %v1183_v6 = vmax.f32 %v822_v3, 0.0 }
 0x154   :  { %v826_v7 = vpop.f32.mrf.mxu0 }
 0x155   :  { %v827_v8 = vadd.f32 %v4691_v51, %v826_v7  ;;  %3342 = vmatmul.mubr.f32.gmra.mxu1 %v1183_v6 }
 0x156   :  { %v3089_v9 = vpop.f32.mrf.mxu0  ;;  %3344 = vmatprep.mubr.msk.f32.mxu1 %vm3859_vm0, %v3858_v5 }
 0x157   :  { %v1184_v10 = vmax.f32 %v827_v8, 0.0 }
 0x158   :  { %v831_v12 = vpop.f32.mrf.mxu0 }
 0x159   :  { %v832_v13 = vadd.f32 %v4691_v51, %v831_v12  ;;  %3345 = vmatmul.mubr.f32.gmra.mxu1 %v1184_v10 }
 0x15a   :  { %v3092_v14 = vpop.f32.mrf.mxu0  ;;  %3347 = vmatprep.mubr.msk.f32.mxu1 %vm3859_vm0, %v3858_v5 }
 0x15b   :  { %v1185_v15 = vmax.f32 %v832_v13, 0.0 }
 0x15c   :  { %v836_v16 = vpop.f32.mrf.mxu0  ;;  %v4721_v18 = vpop.f32.mrf.mxu1 }
 0x15d   :  { %v837_v19 = vadd.f32 %v4691_v51, %v836_v16  ;;  %3348 = vmatmul.mubr.f32.gmra.mxu1 %v1185_v15 }
 0x15e   :  { %v3095_v21 = vpop.f32.mrf.mxu0  ;;  %v3191_v22 = vpop.f32.mrf.mxu1  ;;  %3350 = vmatprep.mubr.msk.f32.mxu1 %vm3859_vm0, %v3858_v5 }
 0x15f   :  { %v1186_v23 = vmax.f32 %v837_v19, 0.0 }
 0x160   :  { %v841_v25 = vpop.f32.mrf.mxu0  ;;  %v4729_v26 = vpop.f32.mrf.mxu1 }
 0x161   :  { %v842_v27 = vadd.f32 %v4691_v51, %v841_v25  ;;  %3351 = vmatmul.mubr.f32.gmra.mxu1 %v1186_v23 }
 0x162   :  { %v3098_v28 = vpop.f32.mrf.mxu0  ;;  %v3194_v29 = vpop.f32.mrf.mxu1  ;;  %3353 = vmatprep.mubr.msk.f32.mxu1 %vm3859_vm0, %v3858_v5 }
 0x163   :  { %v1187_v30 = vmax.f32 %v842_v27, 0.0 }
 0x164   :  { %v846_v31 = vpop.f32.mrf.mxu0  ;;  %v4735_v32 = vpop.f32.mrf.mxu1 }
 0x165   :  { %v847_v33 = vadd.f32 %v4691_v51, %v846_v31  ;;  %3354 = vmatmul.mubr.f32.gmra.mxu1 %v1187_v30 }
 0x166   :  { %v3101_v34 = vpop.f32.mrf.mxu0  ;;  %v3197_v17 = vpop.f32.mrf.mxu1  ;;  %3356 = vmatprep.mubr.msk.f32.mxu1 %vm3859_vm0, %v3858_v5 }
 0x167   :  { %v1188_v35 = vmax.f32 %v847_v33, 0.0 }
 0x168   :  { %v851_v36 = vpop.f32.mrf.mxu0  ;;  %v4740_v37 = vpop.f32.mrf.mxu1 }
 0x169   :  { %v852_v38 = vadd.f32 %v4691_v51, %v851_v36  ;;  %3357 = vmatmul.mubr.f32.gmra.mxu1 %v1188_v35 }
 0x16a   :  { %v3104_v39 = vpop.f32.mrf.mxu0  ;;  %v3200_v40 = vpop.f32.mrf.mxu1  ;;  %3359 = vmatprep.mubr.msk.f32.mxu1 %vm3859_vm0, %v3858_v5 }
 0x16b   :  { %v1189_v41 = vmax.f32 %v852_v38, 0.0 }
 0x16c   :  { %v856_v42 = vpop.f32.mrf.mxu0  ;;  %v4748_v43 = vpop.f32.mrf.mxu1 }
 0x16d   :  { %v857_v44 = vadd.f32 %v4691_v51, %v856_v42  ;;  %3360 = vmatmul.mubr.f32.gmra.mxu1 %v1189_v41 }
 0x16e   :  { %v3107_v45 = vpop.f32.mrf.mxu0  ;;  %v3203_v46 = vpop.f32.mrf.mxu1  ;;  %3362 = vmatprep.mubr.msk.f32.mxu1 %vm3859_vm0, %v3858_v5 }
 0x16f   :  { %v1190_v47 = vmax.f32 %v857_v44, 0.0 }
 0x170   :  { %v861_v48 = vpop.f32.mrf.mxu0  ;;  %v4754_v49 = vpop.f32.mrf.mxu1 }
 0x171   :  { %v862_v50 = vadd.f32 %v4691_v51, %v861_v48  ;;  %3363 = vmatmul.mubr.f32.gmra.mxu1 %v1190_v47 }
 0x172   :  { %v3110_v53 = vpop.f32.mrf.mxu0  ;;  %v3206_v54 = vpop.f32.mrf.mxu1  ;;  %3365 = vmatprep.mubr.msk.f32.mxu1 %vm3859_vm0, %v3858_v5 }
 0x173   :  { %v1191_v55 = vmax.f32 %v862_v50, 0.0 }
 0x174   :  { %v866_v56 = vpop.f32.mrf.mxu0  ;;  %v4763_v57 = vpop.f32.mrf.mxu1 }
 0x175   :  { %v867_v58 = vadd.f32 %v4691_v51, %v866_v56  ;;  %3366 = vmatmul.mubr.f32.gmra.mxu1 %v1191_v55 }
 0x176   :  { %v3113_v59 = vpop.f32.mrf.mxu0  ;;  %v3209_v60 = vpop.f32.mrf.mxu1  ;;  %3368 = vmatprep.mubr.msk.f32.mxu1 %vm3859_vm0, %v3858_v5 }
 0x177   :  { %v1192_v61 = vmax.f32 %v867_v58, 0.0 }
 0x178   :  { %v871_v62 = vpop.f32.mrf.mxu0  ;;  %v4768_v63 = vpop.f32.mrf.mxu1 }
 0x179   :  { %v872_v0 = vadd.f32 %v4691_v51, %v871_v62  ;;  %3369 = vmatmul.mubr.f32.gmra.mxu1 %v1192_v61 }
 0x17a   :  { %v3116_v2 = vpop.f32.mrf.mxu0  ;;  %v3212_v3 = vpop.f32.mrf.mxu1  ;;  %3371 = vmatprep.mubr.msk.f32.mxu1 %vm3859_vm0, %v3858_v5 }
 0x17b   :  { %v1193_v4 = vmax.f32 %v872_v0, 0.0 }
 0x17c   :  { %v876_v6 = vpop.f32.mrf.mxu0  ;;  %v4777_v7 = vpop.f32.mrf.mxu1 }
 0x17d   :  { %v877_v8 = vadd.f32 %v4691_v51, %v876_v6  ;;  %3372 = vmatmul.mubr.f32.gmra.mxu1 %v1193_v4 }
 0x17e   :  { %v3119_v9 = vpop.f32.mrf.mxu0  ;;  %v3215_v10 = vpop.f32.mrf.mxu1  ;;  %3374 = vmatprep.mubr.msk.f32.mxu1 %vm3859_vm0, %v3858_v5 }
 0x17f   :  { %v1194_v11 = vmax.f32 %v877_v8, 0.0 }
 0x180   :  { %v881_v12 = vpop.f32.mrf.mxu0  ;;  %v4782_v13 = vpop.f32.mrf.mxu1 }
 0x181   :  { %v882_v14 = vadd.f32 %v4691_v51, %v881_v12  ;;  %3375 = vmatmul.mubr.f32.gmra.mxu1 %v1194_v11 }
 0x182   :  { %v3122_v15 = vpop.f32.mrf.mxu0  ;;  %v3218_v16 = vpop.f32.mrf.mxu1  ;;  %3377 = vmatprep.mubr.msk.f32.mxu1 %vm3859_vm0, %v3858_v5 }
 0x183   :  { %v1195_v19 = vmax.f32 %v882_v14, 0.0 }
 0x184   :  { %v886_v21 = vpop.f32.mrf.mxu0  ;;  %v4787_v22 = vpop.f32.mrf.mxu1 }
 0x185   :  { %v887_v23 = vadd.f32 %v4691_v51, %v886_v21  ;;  %3378 = vmatmul.mubr.f32.gmra.mxu1 %v1195_v19 }
 0x186   :  { %v3125_v25 = vpop.f32.mrf.mxu0  ;;  %v3221_v27 = vpop.f32.mrf.mxu1  ;;  %3380 = vmatprep.mubr.msk.f32.mxu1 %vm3859_vm0, %v3858_v5 }
 0x187   :  { %v1196_v28 = vmax.f32 %v887_v23, 0.0 }
 0x188   :  { %v891_v29 = vpop.f32.mrf.mxu0  ;;  %v4795_v30 = vpop.f32.mrf.mxu1 }
 0x189   :  { %v892_v31 = vadd.f32 %v4691_v51, %v891_v29  ;;  %3381 = vmatmul.mubr.f32.gmra.mxu1 %v1196_v28 }
 0x18a   :  { %v3128_v33 = vpop.f32.mrf.mxu0  ;;  %v3224_v34 = vpop.f32.mrf.mxu1  ;;  %3383 = vmatprep.mubr.msk.f32.mxu1 %vm3859_vm0, %v3858_v5 }
 0x18b   :  { %v1197_v17 = vmax.f32 %v892_v31, 0.0 }
 0x18c   :  { %v896_v35 = vpop.f32.mrf.mxu0  ;;  %v4800_v36 = vpop.f32.mrf.mxu1 }
 0x18d   :  { %v897_v38 = vadd.f32 %v4691_v51, %v896_v35  ;;  %3384 = vmatmul.mubr.f32.gmra.mxu1 %v1197_v17 }
 0x18e   :  { %v3131_v39 = vpop.f32.mrf.mxu0  ;;  %v3227_v40 = vpop.f32.mrf.mxu1  ;;  %3386 = vmatprep.mubr.msk.f32.mxu1 %vm3859_vm0, %v3858_v5 }
 0x18f   :  { %v1198_v41 = vmax.f32 %v897_v38, 0.0 }
 0x190   :  { %v901_v20 = vpop.f32.mrf.mxu0  ;;  %v4805_v42 = vpop.f32.mrf.mxu1 }
 0x191   :  { %v902_v44 = vadd.f32 %v4691_v51, %v901_v20  ;;  %3387 = vmatmul.mubr.f32.gmra.mxu1 %v1198_v41 }
 0x192   :  { %v3134_v45 = vpop.f32.mrf.mxu0  ;;  %v3230_v46 = vpop.f32.mrf.mxu1  ;;  %3389 = vmatprep.mubr.msk.f32.mxu1 %vm3859_vm0, %v3858_v5 }
 0x193   :  { %v1199_v47 = vmax.f32 %v902_v44, 0.0 }
 0x194   :  { %v906_v48 = vpop.f32.mrf.mxu0  ;;  %v4810_v50 = vpop.f32.mrf.mxu1 }
 0x195   :  { %v907_v52 = vadd.f32 %v4691_v51, %v906_v48  ;;  %3390 = vmatmul.mubr.f32.gmra.mxu1 %v1199_v47 }
 0x196   :  { %v3137_v53 = vpop.f32.mrf.mxu0  ;;  %v3233_v54 = vpop.f32.mrf.mxu1  ;;  %3392 = vmatprep.mubr.msk.f32.mxu1 %vm3859_vm0, %v3858_v5 }
 0x197   :  { %v1200_v55 = vmax.f32 %v907_v52, 0.0 }
 0x198   :  { %v911_v56 = vpop.f32.mrf.mxu0  ;;  %v4815_v58 = vpop.f32.mrf.mxu1 }
 0x199   :  { %v912_v59 = vadd.f32 %v4691_v51, %v911_v56  ;;  %3393 = vmatmul.mubr.f32.gmra.mxu1 %v1200_v55 }
 0x19a   :  { %v3140_v60 = vpop.f32.mrf.mxu0  ;;  %v3236_v61 = vpop.f32.mrf.mxu1  ;;  %3395 = vmatprep.mubr.msk.f32.mxu1 %vm3859_vm0, %v3858_v5 }
 0x19b   :  { %v1201_v62 = vmax.f32 %v912_v59, 0.0 }
 0x19c   :  { %v916_v0 = vpop.f32.mrf.mxu0  ;;  %v4820_v1 = vpop.f32.mrf.mxu1 }
 0x19d   :  { %v917_v2 = vadd.f32 %v4691_v51, %v916_v0  ;;  %3396 = vmatmul.mubr.f32.gmra.mxu1 %v1201_v62 }
 0x19e   :  { %v3143_v3 = vpop.f32.mrf.mxu0  ;;  %v3239_v4 = vpop.f32.mrf.mxu1  ;;  %3398 = vmatprep.mubr.msk.f32.mxu1 %vm3859_vm0, %v3858_v5 }
 0x19f   :  { %v1202_v6 = vmax.f32 %v917_v2, 0.0 }
 0x1a0   :  { %v921_v8 = vpop.f32.mrf.mxu0  ;;  %v4825_v9 = vpop.f32.mrf.mxu1 }
 0x1a1   :  { %v922_v10 = vadd.f32 %v4691_v51, %v921_v8  ;;  %3399 = vmatmul.mubr.f32.gmra.mxu1 %v1202_v6 }
 0x1a2   :  { %v3146_v11 = vpop.f32.mrf.mxu0  ;;  %v3242_v12 = vpop.f32.mrf.mxu1  ;;  %3401 = vmatprep.mubr.msk.f32.mxu1 %vm3859_vm0, %v3858_v5 }
 0x1a3   :  { %v1203_v14 = vmax.f32 %v922_v10, 0.0 }
 0x1a4   :  { %v926_v15 = vpop.f32.mrf.mxu0  ;;  %v4830_v16 = vpop.f32.mrf.mxu1 }
 0x1a5   :  { %v927_v19 = vadd.f32 %v4691_v51, %v926_v15  ;;  %3402 = vmatmul.mubr.f32.gmra.mxu1 %v1203_v14 }
 0x1a6   :  { %v3149_v21 = vpop.f32.mrf.mxu0  ;;  %v3245_v23 = vpop.f32.mrf.mxu1  ;;  %3404 = vmatprep.mubr.msk.f32.mxu1 %vm3859_vm0, %v3858_v5 }
 0x1a7   :  { %v1204_v24 = vmax.f32 %v927_v19, 0.0 }
 0x1a8   :  { %v931_v25 = vpop.f32.mrf.mxu0  ;;  %v4835_v27 = vpop.f32.mrf.mxu1 }
 0x1a9   :  { %v932_v28 = vadd.f32 %v4691_v51, %v931_v25  ;;  %3405 = vmatmul.mubr.f32.gmra.mxu1 %v1204_v24 }
 0x1aa   :  { %v3152_v29 = vpop.f32.mrf.mxu0  ;;  %v3248_v31 = vpop.f32.mrf.mxu1  ;;  %3407 = vmatprep.mubr.msk.f32.mxu1 %vm3859_vm0, %v3858_v5 }
 0x1ab   :  { %v1205_v33 = vmax.f32 %v932_v28, 0.0 }
 0x1ac   :  { %v936_v34 = vpop.f32.mrf.mxu0  ;;  %v4840_v17 = vpop.f32.mrf.mxu1 }
 0x1ad   :  { %v937_v35 = vadd.f32 %v4691_v51, %v936_v34  ;;  %3408 = vmatmul.mubr.f32.gmra.mxu1 %v1205_v33 }
 0x1ae   :  { %v3155_v38 = vpop.f32.mrf.mxu0  ;;  %v3251_v39 = vpop.f32.mrf.mxu1  ;;  %3410 = vmatprep.mubr.msk.f32.mxu1 %vm3859_vm0, %v3858_v5 }
 0x1af   :  { %v1206_v40 = vmax.f32 %v937_v35, 0.0 }
 0x1b0   :  { %v941_v41 = vpop.f32.mrf.mxu0  ;;  %v4845_v20 = vpop.f32.mrf.mxu1 }
 0x1b1   :  { %v942_v44 = vadd.f32 %v4691_v51, %v941_v41  ;;  %3411 = vmatmul.mubr.f32.gmra.mxu1 %v1206_v40 }
 0x1b2   :  { %v3158_v45 = vpop.f32.mrf.mxu0  ;;  %v3254_v46 = vpop.f32.mrf.mxu1  ;;  %3413 = vmatprep.mubr.msk.f32.mxu1 %vm3859_vm0, %v3858_v5 }
 0x1b3   :  { %v1207_v47 = vmax.f32 %v942_v44, 0.0 }
 0x1b4   :  { %v946_v48 = vpop.f32.mrf.mxu0  ;;  %v4850_v52 = vpop.f32.mrf.mxu1 }
 0x1b5   :  { %v947_v53 = vadd.f32 %v4691_v51, %v946_v48  ;;  %3414 = vmatmul.mubr.f32.gmra.mxu1 %v1207_v47 }
 0x1b6   :  { %v3161_v54 = vpop.f32.mrf.mxu0  ;;  %v3257_v55 = vpop.f32.mrf.mxu1  ;;  %3416 = vmatprep.mubr.msk.f32.mxu1 %vm3859_vm0, %v3858_v5 }
 0x1b7   :  { %v1208_v56 = vmax.f32 %v947_v53, 0.0 }
 0x1b8   :  { %v951_v59 = vpop.f32.mrf.mxu0  ;;  %v4855_v60 = vpop.f32.mrf.mxu1 }
 0x1b9   :  { %v952_v61 = vadd.f32 %v4691_v51, %v951_v59  ;;  %3417 = vmatmul.mubr.f32.gmra.mxu1 %v1208_v56 }
 0x1ba   :  { %v3164_v62 = vpop.f32.mrf.mxu0  ;;  %v3260_v0 = vpop.f32.mrf.mxu1  ;;  %3419 = vmatprep.mubr.msk.f32.mxu1 %vm3859_vm0, %v3858_v5 }
 0x1bb   :  { %v1209_v2 = vmax.f32 %v952_v61, 0.0 }
 0x1bc   :  { %v956_v3 = vpop.f32.mrf.mxu0  ;;  %v4860_v4 = vpop.f32.mrf.mxu1 }
 0x1bd   :  { %v957_v6 = vadd.f32 %v4691_v51, %v956_v3  ;;  %3420 = vmatmul.mubr.f32.gmra.mxu1 %v1209_v2 }
 0x1be   :  { %v3167_v8 = vpop.f32.mrf.mxu0  ;;  %v3263_v10 = vpop.f32.mrf.mxu1  ;;  %3422 = vmatprep.mubr.msk.f32.mxu1 %vm3859_vm0, %v3858_v5 }
 0x1bf   :  { %v1210_v11 = vmax.f32 %v957_v6, 0.0 }
 0x1c0   :  { %v961_v12 = vpop.f32.mrf.mxu0  ;;  %v4865_v14 = vpop.f32.mrf.mxu1 }
 0x1c1   :  { %v962_v15 = vadd.f32 %v4691_v51, %v961_v12  ;;  %3423 = vmatmul.mubr.f32.gmra.mxu1 %v1210_v11 }
 0x1c2   :  { %v3170_v19 = vpop.f32.mrf.mxu0  ;;  %v3266_v21 = vpop.f32.mrf.mxu1  ;;  %3425 = vmatprep.mubr.msk.f32.mxu1 %vm3859_vm0, %v3858_v5 }
 0x1c3   :  { %v1211_v23 = vmax.f32 %v962_v15, 0.0 }
 0x1c4   :  { %v966_v24 = vpop.f32.mrf.mxu0  ;;  %v4870_v25 = vpop.f32.mrf.mxu1 }
 0x1c5   :  { %v967_v28 = vadd.f32 %v4691_v51, %v966_v24  ;;  %3426 = vmatmul.mubr.f32.gmra.mxu1 %v1211_v23  ;;  %v997_v23 = vadd.f32 %v4691_v51, %v4721_v18 }
 0x1c6   :  { %v3173_v29 = vpop.f32.mrf.mxu0  ;;  %v3269_v31 = vpop.f32.mrf.mxu1  ;;  %3428 = vmatprep.mubr.msk.f32.mxu1 %vm3859_vm0, %v3858_v5 }
 0x1c7   :  { %v1212_v33 = vmax.f32 %v967_v28, 0.0  ;;  %v1218_v31 = vmax.f32 %v997_v23, 0.0 }
 0x1c8   :  { %v971_v34 = vpop.f32.mrf.mxu0  ;;  %v4875_v35 = vpop.f32.mrf.mxu1 }
 0x1c9   :  { %v972_v38 = vadd.f32 %v4691_v51, %v971_v34  ;;  %3429 = vmatmul.mubr.f32.gmra.mxu1 %v1212_v33  ;;  %v1002_v33 = vadd.f32 %v4691_v51, %v4729_v26  ;;  %v1012_v26 = vadd.f32 %v4691_v51, %v4740_v37  ;;  %v1022_v37 = vadd.f32 %v4691_v51, %v4754_v49 }
 0x1ca   :  { %v3176_v39 = vpop.f32.mrf.mxu0  ;;  %v3272_v40 = vpop.f32.mrf.mxu1  ;;  %3431 = vmatprep.mubr.msk.f32.mxu1 %vm3859_vm0, %v3858_v5 }
 0x1cb   :  { %v1213_v41 = vmax.f32 %v972_v38, 0.0  ;;  %v1219_v18 = vmax.f32 %v1002_v33, 0.0  ;;  %v1007_v39 = vadd.f32 %v4691_v51, %v4735_v32  ;;  %v1017_v32 = vadd.f32 %v4691_v51, %v4748_v43 }
 0x1cc   :  { %v976_v44 = vpop.f32.mrf.mxu0  ;;  %v4880_v45 = vpop.f32.mrf.mxu1 }
 0x1cd   :  { %v977_v46 = vadd.f32 %v4691_v51, %v976_v44  ;;  %3432 = vmatmul.mubr.f32.gmra.mxu1 %v1213_v41  ;;  %v1220_v44 = vmax.f32 %v1007_v39, 0.0  ;;  %v1067_v39 = vadd.f32 %v4691_v51, %v4810_v50 }
 0x1ce   :  { %v3179_v47 = vpop.f32.mrf.mxu0  ;;  %v3275_v48 = vpop.f32.mrf.mxu1  ;;  %3434 = vmatprep.mubr.msk.f32.mxu1 %vm3859_vm0, %v3858_v5 }
 0x1cf   :  { %v1214_v53 = vmax.f32 %v977_v46, 0.0  ;;  %v1221_v48 = vmax.f32 %v1012_v26, 0.0 }
 0x1d0   :  { %v981_v54 = vpop.f32.mrf.mxu0  ;;  %v4885_v55 = vpop.f32.mrf.mxu1 }
 0x1d1   :  { %v982_v56 = vadd.f32 %v4691_v51, %v981_v54  ;;  %3435 = vmatmul.mubr.f32.gmra.mxu1 %v1214_v53 }
 0x1d2   :  { %v3182_v59 = vpop.f32.mrf.mxu0  ;;  %v3278_v61 = vpop.f32.mrf.mxu1  ;;  %3437 = vmatprep.mubr.msk.f32.mxu1 %vm3859_vm0, %v3858_v5 }
 0x1d3   :  { %v1215_v62 = vmax.f32 %v982_v56, 0.0  ;;  %v1222_v56 = vmax.f32 %v1017_v32, 0.0  ;;  %v1223_v59 = vmax.f32 %v1022_v37, 0.0  ;;  %v1027_v61 = vadd.f32 %v4691_v51, %v4763_v57 }
 0x1d4   :  { %v986_v0 = vpop.f32.mrf.mxu0  ;;  %v4890_v2 = vpop.f32.mrf.mxu1 }
 0x1d5   :  { %v987_v3 = vadd.f32 %v4691_v51, %v986_v0  ;;  %3438 = vmatmul.mubr.f32.gmra.mxu1 %v1215_v62  ;;  %v1224_v43 = vmax.f32 %v1027_v61, 0.0  ;;  %v1032_v62 = vadd.f32 %v4691_v51, %v4768_v63  ;;  %v1037_v0 = vadd.f32 %v4691_v51, %v4777_v7 }
 0x1d6   :  { %v3185_v6 = vpop.f32.mrf.mxu0  ;;  %v3281_v8 = vpop.f32.mrf.mxu1  ;;  %3440 = vmatprep.mubr.msk.f32.mxu1 %vm3859_vm0, %v3858_v5 }
 0x1d7   :  { %v1216_v10 = vmax.f32 %v987_v3, 0.0  ;;  %v1225_v49 = vmax.f32 %v1032_v62, 0.0  ;;  %v1226_v57 = vmax.f32 %v1037_v0, 0.0  ;;  %v1042_v3 = vadd.f32 %v4691_v51, %v4782_v13  ;;  %v4959_v13 = vld [vmem:[%s5850_s4 + $0x1] ss:$0 sm:$0xff] }
 0x1d8   :  { %v991_v11 = vpop.f32.mrf.mxu0  ;;  %v4895_v12 = vpop.f32.mrf.mxu1  ;;  %v1047_v6 = vadd.f32 %v4691_v51, %v4787_v22  ;;  %v1052_v8 = vadd.f32 %v4691_v51, %v4795_v30  ;;  %v1082_v0 = vadd.f32 %v4691_v51, %v4825_v9 }
 0x1d9   :  { %v992_v15 = vadd.f32 %v4691_v51, %v991_v11  ;;  %3441 = vmatmul.mubr.f32.gmra.mxu1 %v1216_v10  ;;  %v1227_v63 = vmax.f32 %v1042_v3, 0.0 }
 0x1da   :  { %v3188_v19 = vpop.f32.mrf.mxu0  ;;  %v3284_v21 = vpop.f32.mrf.mxu1  ;;  %3443 = vmatprep.mubr.msk.f32.mxu1 %vm3859_vm0, %v3858_v5  ;;  %v1228_v7 = vmax.f32 %v1047_v6, 0.0  ;;  %v1229_v22 = vmax.f32 %v1052_v8, 0.0  ;;  %v1235_v6 = vmax.f32 %v1082_v0, 0.0  ;;  %v1122_v0 = vadd.f32 %v4691_v51, %v4865_v14 }
 0x1db   :  { %v1217_v24 = vmax.f32 %v992_v15, 0.0  ;;  %v1057_v15 = vadd.f32 %v4691_v51, %v4800_v36 }
 0x1dc   :  { %v4902_v28 = vpop.f32.mrf.mxu1 }
 0x1dd   :  { %3444 = vmatmul.mubr.f32.gmra.mxu1 %v1217_v24  ;;  %v1230_v24 = vmax.f32 %v1057_v15, 0.0  ;;  %v1092_v15 = vadd.f32 %v4691_v51, %v4835_v27 }
 0x1de   :  { %v3287_v29 = vpop.f32.mrf.mxu1  ;;  %3446 = vmatprep.mubr.msk.f32.mxu1 %vm3859_vm0, %v3858_v5 }
 0x1df   :  { %v1062_v29 = vadd.f32 %v4691_v51, %v4805_v42 }
 0x1e0   :  { %v4908_v34 = vpop.f32.mrf.mxu1 }
 0x1e1   :  { %3447 = vmatmul.mubr.f32.gmra.mxu1 %v1218_v31 }
 0x1e2   :  { %v3290_v38 = vpop.f32.mrf.mxu1  ;;  %3449 = vmatprep.mubr.msk.f32.mxu1 %vm3859_vm0, %v3858_v5 }
 0x1e4   :  { %v4914_v40 = vpop.f32.mrf.mxu1 }
 0x1e5   :  { %3450 = vmatmul.mubr.f32.gmra.mxu1 %v1219_v18  ;;  %v1231_v18 = vmax.f32 %v1062_v29, 0.0 }
 0x1e6   :  { %v3293_v41 = vpop.f32.mrf.mxu1  ;;  %3452 = vmatprep.mubr.msk.f32.mxu1 %vm3859_vm0, %v3858_v5 }
 0x1e8   :  { %v4920_v46 = vpop.f32.mrf.mxu1 }
 0x1e9   :  { %3453 = vmatmul.mubr.f32.gmra.mxu1 %v1220_v44 }
 0x1ea   :  { %v3296_v47 = vpop.f32.mrf.mxu1  ;;  %3455 = vmatprep.mubr.msk.f32.mxu1 %vm3859_vm0, %v3858_v5 }
 0x1eb   :  { %v1232_v47 = vmax.f32 %v1067_v39, 0.0 }
 0x1ec   :  { %v4926_v53 = vpop.f32.mrf.mxu1 }
 0x1ed   :  { %3456 = vmatmul.mubr.f32.gmra.mxu1 %v1221_v48  ;;  %v1072_v48 = vadd.f32 %v4691_v51, %v4815_v58 }
 0x1ee   :  { %v3299_v54 = vpop.f32.mrf.mxu1  ;;  %3458 = vmatprep.mubr.msk.f32.mxu1 %vm3859_vm0, %v3858_v5 }
 0x1ef   :  { %v1233_v37 = vmax.f32 %v1072_v48, 0.0 }
 0x1f1   :  { %3459 = vmatmul.mubr.f32.gmra.mxu1 %v1222_v56 }
 0x1f2   :  { %3461 = vmatprep.mubr.msk.f32.mxu1 %vm3859_vm0, %v3858_v5 }
 0x1f5   :  { %3462 = vmatmul.mubr.f32.gmra.mxu1 %v1223_v59  ;;  %v1077_v59 = vadd.f32 %v4691_v51, %v4820_v1 }
 0x1f6   :  { %3464 = vmatprep.mubr.msk.f32.mxu1 %vm3859_vm0, %v3858_v5 }
 0x1f9   :  { %3465 = vmatmul.mubr.f32.gmra.mxu1 %v1224_v43 }
 0x1fa   :  { %3467 = vmatprep.mubr.msk.f32.mxu1 %vm3859_vm0, %v3858_v5 }
 0x1fd   :  { %3468 = vmatmul.mubr.f32.gmra.mxu1 %v1225_v49  ;;  %v1234_v49 = vmax.f32 %v1077_v59, 0.0 }
 0x1fe   :  { %3470 = vmatprep.mubr.msk.f32.mxu1 %vm3859_vm0, %v3858_v5 }
 0x201   :  { %3471 = vmatmul.mubr.f32.gmra.mxu1 %v1226_v57 }
 0x202   :  { %3473 = vmatprep.mubr.msk.f32.mxu1 %vm3859_vm0, %v3858_v5 }
 0x205   :  { %3474 = vmatmul.mubr.f32.gmra.mxu1 %v1227_v63 }
 0x206   :  { %3476 = vmatprep.mubr.msk.f32.mxu1 %vm3859_vm0, %v3858_v5 }
 0x209   :  { %v1346_v10 = vpop.f32.mrf.mxu1  ;;  %3477 = vmatmul.mubr.f32.gmra.mxu1 %v1228_v7  ;;  %v1087_v7 = vadd.f32 %v4691_v51, %v4830_v16 }
 0x20a   :  { %v1347_v11 = vadd.f32 %v4959_v13, %v1346_v10  ;;  %3479 = vmatprep.mubr.msk.f32.mxu1 %vm3859_vm0, %v3858_v5 }
 0x20b   :  { %v3334_v19 = vpop.f32.mrf.mxu1 }
 0x20c   :  { %v1720_v21 = vmax.f32 %v1347_v11, 0.0 }
 0x20d   :  { %v1351_v23 = vpop.f32.mrf.mxu1  ;;  %3480 = vmatmul.mubr.f32.gmra.mxu1 %v1229_v22  ;;  %v1236_v22 = vmax.f32 %v1087_v7, 0.0 }
 0x20e   :  { %v1352_v30 = vadd.f32 %v4959_v13, %v1351_v23  ;;  %3590 = vmatmul.mubr.f32.vlgmr.msra.gmra.mxu0 %v1720_v21  ;;  %3482 = vmatprep.mubr.msk.f32.mxu1 %vm3859_vm0, %v3858_v5 }
 0x20f   :  { %v3337_v31 = vpop.f32.mrf.mxu1  ;;  %3592 = vmatprep.mubr.msk.f32.mxu0 %vm3859_vm0, %v3858_v5 }
 0x210   :  { %v1721_v33 = vmax.f32 %v1352_v30, 0.0  ;;  %v1237_v30 = vmax.f32 %v1092_v15, 0.0 }
 0x211   :  { %v1356_v36 = vpop.f32.mrf.mxu1  ;;  %3483 = vmatmul.mubr.f32.gmra.mxu1 %v1230_v24  ;;  %v1097_v24 = vadd.f32 %v4691_v51, %v4840_v17 }
 0x212   :  { %v1357_v38 = vadd.f32 %v4959_v13, %v1356_v36  ;;  %3593 = vmatmul.mubr.f32.gmra.mxu0 %v1721_v33  ;;  %3485 = vmatprep.mubr.msk.f32.mxu1 %vm3859_vm0, %v3858_v5 }
 0x213   :  { %v3340_v41 = vpop.f32.mrf.mxu1  ;;  %3595 = vmatprep.mubr.msk.f32.mxu0 %vm3859_vm0, %v3858_v5  ;;  %v1238_v36 = vmax.f32 %v1097_v24, 0.0 }
 0x214   :  { %v1722_v42 = vmax.f32 %v1357_v38, 0.0  ;;  %v1102_v38 = vadd.f32 %v4691_v51, %v4845_v20 }
 0x215   :  { %v1361_v44 = vpop.f32.mrf.mxu1  ;;  %3486 = vmatmul.mubr.f32.gmra.mxu1 %v1231_v18 }
 0x216   :  { %v1362_v26 = vadd.f32 %v4959_v13, %v1361_v44  ;;  %3596 = vmatmul.mubr.f32.gmra.mxu0 %v1722_v42  ;;  %3488 = vmatprep.mubr.msk.f32.mxu1 %vm3859_vm0, %v3858_v5  ;;  %v1239_v42 = vmax.f32 %v1102_v38, 0.0  ;;  %v1107_v44 = vadd.f32 %v4691_v51, %v4850_v52 }
 0x217   :  { %v3343_v32 = vpop.f32.mrf.mxu1  ;;  %3598 = vmatprep.mubr.msk.f32.mxu0 %vm3859_vm0, %v3858_v5 }
 0x218   :  { %v1723_v50 = vmax.f32 %v1362_v26, 0.0  ;;  %v1240_v32 = vmax.f32 %v1107_v44, 0.0 }
 0x219   :  { %v1366_v54 = vpop.f32.mrf.mxu1  ;;  %3489 = vmatmul.mubr.f32.gmra.mxu1 %v1232_v47 }
 0x21a   :  { %v1367_v56 = vadd.f32 %v4959_v13, %v1366_v54  ;;  %3599 = vmatmul.mubr.f32.gmra.mxu0 %v1723_v50  ;;  %3491 = vmatprep.mubr.msk.f32.mxu1 %vm3859_vm0, %v3858_v5  ;;  %v1112_v50 = vadd.f32 %v4691_v51, %v4855_v60 }
 0x21b   :  { %v3346_v61 = vpop.f32.mrf.mxu1  ;;  %3601 = vmatprep.mubr.msk.f32.mxu0 %vm3859_vm0, %v3858_v5 }
 0x21c   :  { %v1724_v58 = vmax.f32 %v1367_v56, 0.0  ;;  %v1241_v59 = vmax.f32 %v1112_v50, 0.0  ;;  %v1117_v61 = vadd.f32 %v4691_v51, %v4860_v4 }
 0x21d   :  { %v1371_v43 = vpop.f32.mrf.mxu1  ;;  %3492 = vmatmul.mubr.f32.gmra.mxu1 %v1233_v37 }
 0x21e   :  { %v1372_v62 = vadd.f32 %v4959_v13, %v1371_v43  ;;  %3602 = vmatmul.mubr.f32.gmra.mxu0 %v1724_v58  ;;  %3494 = vmatprep.mubr.msk.f32.mxu1 %vm3859_vm0, %v3858_v5 }
 0x21f   :  { %v3349_v57 = vpop.f32.mrf.mxu1  ;;  %3604 = vmatprep.mubr.msk.f32.mxu0 %vm3859_vm0, %v3858_v5 }
 0x220   :  { %v1725_v1 = vmax.f32 %v1372_v62, 0.0 }
 0x221   :  { %v1376_v3 = vpop.f32.mrf.mxu1  ;;  %3495 = vmatmul.mubr.f32.gmra.mxu1 %v1234_v49  ;;  %v1242_v49 = vmax.f32 %v1117_v61, 0.0 }
 0x222   :  { %v1377_v63 = vadd.f32 %v4959_v13, %v1376_v3  ;;  %3605 = vmatmul.mubr.f32.gmra.mxu0 %v1725_v1  ;;  %3497 = vmatprep.mubr.msk.f32.mxu1 %vm3859_vm0, %v3858_v5 }
 0x223   :  { %v3352_v8 = vpop.f32.mrf.mxu1  ;;  %3607 = vmatprep.mubr.msk.f32.mxu0 %vm3859_vm0, %v3858_v5 }
 0x224   :  { %v1726_v9 = vmax.f32 %v1377_v63, 0.0  ;;  %v1243_v63 = vmax.f32 %v1122_v0, 0.0 }
 0x225   :  { %v1381_v10 = vpop.f32.mrf.mxu1  ;;  %3498 = vmatmul.mubr.f32.gmra.mxu1 %v1235_v6  ;;  %v5063_v6 = vld [vmem:[%s5850_s4] ss:$0 sm:$0xff] }
 0x226   :  { %v1382_v11 = vadd.f32 %v4959_v13, %v1381_v10  ;;  %3608 = vmatmul.mubr.f32.gmra.mxu0 %v1726_v9  ;;  %3500 = vmatprep.mubr.msk.f32.mxu1 %vm3859_vm0, %v3858_v5  ;;  %v1127_v51 = vadd.f32 %v5063_v6, %v4870_v25  ;;  %v1152_v44 = vadd.f32 %v5063_v6, %v4895_v12 }
 0x227   :  { %v3355_v19 = vpop.f32.mrf.mxu1  ;;  %3610 = vmatprep.mubr.msk.f32.mxu0 %vm3859_vm0, %v3858_v5 }
 0x228   :  { %v1727_v16 = vmax.f32 %v1382_v11, 0.0  ;;  %v1244_v10 = vmax.f32 %v1127_v51, 0.0  ;;  %v1132_v11 = vadd.f32 %v5063_v6, %v4875_v35 }
 0x229   :  { %v1386_v21 = vpop.f32.mrf.mxu1  ;;  %3501 = vmatmul.mubr.f32.gmra.mxu1 %v1236_v22 }
 0x22a   :  { %v1387_v23 = vadd.f32 %v4959_v13, %v1386_v21  ;;  %3611 = vmatmul.mubr.f32.gmra.mxu0 %v1727_v16  ;;  %3503 = vmatprep.mubr.msk.f32.mxu1 %vm3859_vm0, %v3858_v5  ;;  %v1245_v16 = vmax.f32 %v1132_v11, 0.0  ;;  %v1137_v21 = vadd.f32 %v5063_v6, %v4880_v45 }
 0x22b   :  { %v3358_v29 = vpop.f32.mrf.mxu1  ;;  %3613 = vmatprep.mubr.msk.f32.mxu0 %vm3859_vm0, %v3858_v5 }
 0x22c   :  { %v1728_v27 = vmax.f32 %v1387_v23, 0.0  ;;  %v1246_v29 = vmax.f32 %v1137_v21, 0.0 }
 0x22d   :  { %v1391_v31 = vpop.f32.mrf.mxu1  ;;  %3504 = vmatmul.mubr.f32.gmra.mxu1 %v1237_v30 }
 0x22e   :  { %v1392_v33 = vadd.f32 %v4959_v13, %v1391_v31  ;;  %3614 = vmatmul.mubr.f32.gmra.mxu0 %v1728_v27  ;;  %3506 = vmatprep.mubr.msk.f32.mxu1 %vm3859_vm0, %v3858_v5  ;;  %v1142_v27 = vadd.f32 %v5063_v6, %v4885_v55 }
 0x22f   :  { %v3361_v18 = vpop.f32.mrf.mxu1  ;;  %3616 = vmatprep.mubr.msk.f32.mxu0 %vm3859_vm0, %v3858_v5 }
 0x230   :  { %v1729_v17 = vmax.f32 %v1392_v33, 0.0  ;;  %v1247_v38 = vmax.f32 %v1142_v27, 0.0  ;;  %v1147_v18 = vadd.f32 %v5063_v6, %v4890_v2 }
 0x231   :  { %v1396_v39 = vpop.f32.mrf.mxu1  ;;  %3507 = vmatmul.mubr.f32.gmra.mxu1 %v1238_v36 }
 0x232   :  { %v1397_v41 = vadd.f32 %v4959_v13, %v1396_v39  ;;  %3617 = vmatmul.mubr.f32.gmra.mxu0 %v1729_v17  ;;  %3509 = vmatprep.mubr.msk.f32.mxu1 %vm3859_vm0, %v3858_v5 }
 0x233   :  { %v3364_v26 = vpop.f32.mrf.mxu1  ;;  %3619 = vmatprep.mubr.msk.f32.mxu0 %vm3859_vm0, %v3858_v5 }
 0x234   :  { %v1730_v20 = vmax.f32 %v1397_v41, 0.0 }
 0x235   :  { %v1401_v47 = vpop.f32.mrf.mxu1  ;;  %3510 = vmatmul.mubr.f32.gmra.mxu1 %v1239_v42  ;;  %v1248_v42 = vmax.f32 %v1147_v18, 0.0 }
 0x236   :  { %v1402_v48 = vadd.f32 %v4959_v13, %v1401_v47  ;;  %3620 = vmatmul.mubr.f32.gmra.mxu0 %v1730_v20  ;;  %3512 = vmatprep.mubr.msk.f32.mxu1 %vm3859_vm0, %v3858_v5 }
 0x237   :  { %v3367_v54 = vpop.f32.mrf.mxu1  ;;  %3622 = vmatprep.mubr.msk.f32.mxu0 %vm3859_vm0, %v3858_v5 }
 0x238   :  { %v1731_v52 = vmax.f32 %v1402_v48, 0.0  ;;  %v1249_v48 = vmax.f32 %v1152_v44, 0.0 }
 0x239   :  { %v1406_v56 = vpop.f32.mrf.mxu1  ;;  %3513 = vmatmul.mubr.f32.gmra.mxu1 %v1240_v32  ;;  %v1157_v32 = vadd.f32 %v5063_v6, %v4902_v28 }
 0x23a   :  { %v1407_v37 = vadd.f32 %v4959_v13, %v1406_v56  ;;  %3623 = vmatmul.mubr.f32.gmra.mxu0 %v1731_v52  ;;  %3515 = vmatprep.mubr.msk.f32.mxu1 %vm3859_vm0, %v3858_v5 }
 0x23b   :  { %v3370_v58 = vpop.f32.mrf.mxu1  ;;  %3625 = vmatprep.mubr.msk.f32.mxu0 %vm3859_vm0, %v3858_v5  ;;  %v1250_v56 = vmax.f32 %v1157_v32, 0.0 }
 0x23c   :  { %v1732_v60 = vmax.f32 %v1407_v37, 0.0  ;;  %v1162_v37 = vadd.f32 %v5063_v6, %v4908_v34 }
 0x23d   :  { %v1411_v43 = vpop.f32.mrf.mxu1  ;;  %3516 = vmatmul.mubr.f32.gmra.mxu1 %v1241_v59 }
 0x23e   :  { %v1412_v62 = vadd.f32 %v4959_v13, %v1411_v43  ;;  %3626 = vmatmul.mubr.f32.gmra.mxu0 %v1732_v60  ;;  %3518 = vmatprep.mubr.msk.f32.mxu1 %vm3859_vm0, %v3858_v5  ;;  %v1251_v60 = vmax.f32 %v1162_v37, 0.0  ;;  %v1167_v43 = vadd.f32 %v5063_v6, %v4914_v40 }
 0x23f   :  { %v3373_v57 = vpop.f32.mrf.mxu1  ;;  %3628 = vmatprep.mubr.msk.f32.mxu0 %vm3859_vm0, %v3858_v5 }
 0x240   :  { %v1733_v4 = vmax.f32 %v1412_v62, 0.0  ;;  %v1252_v57 = vmax.f32 %v1167_v43, 0.0 }
 0x241   :  { %v1416_v1 = vpop.f32.mrf.mxu1  ;;  %3519 = vmatmul.mubr.f32.gmra.mxu1 %v1242_v49 }
 0x242   :  { %v1417_v3 = vadd.f32 %v4959_v13, %v1416_v1  ;;  %3629 = vmatmul.mubr.f32.gmra.mxu0 %v1733_v4  ;;  %3521 = vmatprep.mubr.msk.f32.mxu1 %vm3859_vm0, %v3858_v5  ;;  %v1172_v4 = vadd.f32 %v5063_v6, %v4920_v46 }
 0x243   :  { %v3376_v14 = vpop.f32.mrf.mxu1  ;;  %3631 = vmatprep.mubr.msk.f32.mxu0 %vm3859_vm0, %v3858_v5 }
 0x244   :  { %v1734_v7 = vmax.f32 %v1417_v3, 0.0  ;;  %v1253_v51 = vmax.f32 %v1172_v4, 0.0  ;;  %v1177_v14 = vadd.f32 %v5063_v6, %v4926_v53 }
 0x245   :  { %v1421_v8 = vpop.f32.mrf.mxu1  ;;  %3522 = vmatmul.mubr.f32.gmra.mxu1 %v1243_v63 }
 0x246   :  { %v1422_v9 = vadd.f32 %v4959_v13, %v1421_v8  ;;  %3632 = vmatmul.mubr.f32.gmra.mxu0 %v1734_v7  ;;  %3524 = vmatprep.mubr.msk.f32.mxu1 %vm3859_vm0, %v3858_v5 }
 0x247   :  { %v3379_v22 = vpop.f32.mrf.mxu1  ;;  %3634 = vmatprep.mubr.msk.f32.mxu0 %vm3859_vm0, %v3858_v5 }
 0x248   :  { %v1735_v25 = vmax.f32 %v1422_v9, 0.0 }
 0x249   :  { %v1426_v15 = vpop.f32.mrf.mxu1  ;;  %3525 = vmatmul.mubr.f32.gmra.mxu1 %v1244_v10  ;;  %v1254_v10 = vmax.f32 %v1177_v14, 0.0 }
 0x24a   :  { %v1427_v19 = vadd.f32 %v4959_v13, %v1426_v15  ;;  %3635 = vmatmul.mubr.f32.gmra.mxu0 %v1735_v25  ;;  %3527 = vmatprep.mubr.msk.f32.mxu1 %vm3859_vm0, %v3858_v5 }
 0x24b   :  { %v3382_v23 = vpop.f32.mrf.mxu1  ;;  %3637 = vmatprep.mubr.msk.f32.mxu0 %vm3859_vm0, %v3858_v5 }
 0x24c   :  { %v1736_v35 = vmax.f32 %v1427_v19, 0.0 }
 0x24d   :  { %v1431_v30 = vpop.f32.mrf.mxu1  ;;  %3528 = vmatmul.mubr.f32.gmra.mxu1 %v1245_v16 }
 0x24e   :  { %v1432_v24 = vadd.f32 %v4959_v13, %v1431_v30  ;;  %3638 = vmatmul.mubr.f32.gmra.mxu0 %v1736_v35  ;;  %3530 = vmatprep.mubr.msk.f32.mxu1 %vm3859_vm0, %v3858_v5 }
 0x24f   :  { %v3385_v31 = vpop.f32.mrf.mxu1  ;;  %3640 = vmatprep.mubr.msk.f32.mxu0 %vm3859_vm0, %v3858_v5 }
 0x250   :  { %v1737_v45 = vmax.f32 %v1432_v24, 0.0 }
 0x251   :  { %v1436_v33 = vpop.f32.mrf.mxu1  ;;  %3531 = vmatmul.mubr.f32.gmra.mxu1 %v1246_v29 }
 0x252   :  { %v1437_v36 = vadd.f32 %v4959_v13, %v1436_v33  ;;  %3641 = vmatmul.mubr.f32.gmra.mxu0 %v1737_v45  ;;  %3533 = vmatprep.mubr.msk.f32.mxu1 %vm3859_vm0, %v3858_v5 }
 0x253   :  { %v3388_v17 = vpop.f32.mrf.mxu1  ;;  %3643 = vmatprep.mubr.msk.f32.mxu0 %vm3859_vm0, %v3858_v5 }
 0x254   :  { %v1738_v55 = vmax.f32 %v1437_v36, 0.0 }
 0x255   :  { %v1441_v39 = vpop.f32.mrf.mxu1  ;;  %3534 = vmatmul.mubr.f32.gmra.mxu1 %v1247_v38 }
 0x256   :  { %v1442_v41 = vadd.f32 %v4959_v13, %v1441_v39  ;;  %3644 = vmatmul.mubr.f32.gmra.mxu0 %v1738_v55  ;;  %3536 = vmatprep.mubr.msk.f32.mxu1 %vm3859_vm0, %v3858_v5 }
 0x257   :  { %v3391_v26 = vpop.f32.mrf.mxu1  ;;  %3646 = vmatprep.mubr.msk.f32.mxu0 %vm3859_vm0, %v3858_v5 }
 0x258   :  { %v1739_v2 = vmax.f32 %v1442_v41, 0.0 }
 0x259   :  { %v1446_v20 = vpop.f32.mrf.mxu1  ;;  %3537 = vmatmul.mubr.f32.gmra.mxu1 %v1248_v42 }
 0x25a   :  { %v1447_v47 = vadd.f32 %v4959_v13, %v1446_v20  ;;  %3647 = vmatmul.mubr.f32.gmra.mxu0 %v1739_v2  ;;  %3539 = vmatprep.mubr.msk.f32.mxu1 %vm3859_vm0, %v3858_v5 }
 0x25b   :  { %v3394_v50 = vpop.f32.mrf.mxu1  ;;  %3649 = vmatprep.mubr.msk.f32.mxu0 %vm3859_vm0, %v3858_v5 }
 0x25c   :  { %v1740_v12 = vmax.f32 %v1447_v47, 0.0 }
 0x25d   :  { %v1451_v54 = vpop.f32.mrf.mxu1  ;;  %3540 = vmatmul.mubr.f32.gmra.mxu1 %v1249_v48 }
 0x25e   :  { %v1452_v52 = vadd.f32 %v4959_v13, %v1451_v54  ;;  %3650 = vmatmul.mubr.f32.gmra.mxu0 %v1740_v12  ;;  %3542 = vmatprep.mubr.msk.f32.mxu1 %vm3859_vm0, %v3858_v5 }
 0x25f   :  { %v3397_v59 = vpop.f32.mrf.mxu1  ;;  %3652 = vmatprep.mubr.msk.f32.mxu0 %vm3859_vm0, %v3858_v5 }
 0x260   :  { %v1741_v28 = vmax.f32 %v1452_v52, 0.0 }
 0x261   :  { %v1456_v61 = vpop.f32.mrf.mxu1  ;;  %3543 = vmatmul.mubr.f32.gmra.mxu1 %v1250_v56 }
 0x262   :  { %v1457_v58 = vadd.f32 %v4959_v13, %v1456_v61  ;;  %3653 = vmatmul.mubr.f32.gmra.mxu0 %v1741_v28  ;;  %3545 = vmatprep.mubr.msk.f32.mxu1 %vm3859_vm0, %v3858_v5 }
 0x263   :  { %v3400_v62 = vpop.f32.mrf.mxu1  ;;  %3655 = vmatprep.mubr.msk.f32.mxu0 %vm3859_vm0, %v3858_v5 }
 0x264   :  { %v1742_v34 = vmax.f32 %v1457_v58, 0.0 }
 0x265   :  { %v1461_v49 = vpop.f32.mrf.mxu1  ;;  %3546 = vmatmul.mubr.f32.gmra.mxu1 %v1251_v60 }
 0x266   :  { %v1462_v0 = vadd.f32 %v4959_v13, %v1461_v49  ;;  %3656 = vmatmul.mubr.f32.gmra.mxu0 %v1742_v34  ;;  %3548 = vmatprep.mubr.msk.f32.mxu1 %vm3859_vm0, %v3858_v5 }
 0x267   :  { %v3403_v1 = vpop.f32.mrf.mxu1  ;;  %3658 = vmatprep.mubr.msk.f32.mxu0 %vm3859_vm0, %v3858_v5 }
 0x268   :  { %v1743_v40 = vmax.f32 %v1462_v0, 0.0 }
 0x269   :  { %v1466_v3 = vpop.f32.mrf.mxu1  ;;  %3549 = vmatmul.mubr.f32.gmra.mxu1 %v1252_v57 }
 0x26a   :  { %v1467_v63 = vadd.f32 %v4959_v13, %v1466_v3  ;;  %3659 = vmatmul.mubr.f32.gmra.mxu0 %v1743_v40  ;;  %3551 = vmatprep.mubr.msk.f32.mxu1 %vm3859_vm0, %v3858_v5 }
 0x26b   :  { %v3406_v7 = vpop.f32.mrf.mxu1  ;;  %3661 = vmatprep.mubr.msk.f32.mxu0 %vm3859_vm0, %v3858_v5 }
 0x26c   :  { %v1744_v46 = vmax.f32 %v1467_v63, 0.0 }
 0x26d   :  { %v1471_v8 = vpop.f32.mrf.mxu1  ;;  %3552 = vmatmul.mubr.f32.gmra.mxu1 %v1253_v51 }
 0x26e   :  { %v1472_v9 = vadd.f32 %v4959_v13, %v1471_v8  ;;  %3662 = vmatmul.mubr.f32.gmra.mxu0 %v1744_v46  ;;  %3554 = vmatprep.mubr.msk.f32.mxu1 %vm3859_vm0, %v3858_v5 }
 0x26f   :  { %v3409_v11 = vpop.f32.mrf.mxu1  ;;  %3664 = vmatprep.mubr.msk.f32.mxu0 %vm3859_vm0, %v3858_v5 }
 0x270   :  { %v1745_v22 = vmax.f32 %v1472_v9, 0.0 }
 0x271   :  { %v1476_v53 = vpop.f32.mrf.mxu1  ;;  %3555 = vmatmul.mubr.f32.gmra.mxu1 %v1254_v10 }
 0x272   :  { %v1477_v6 = vadd.f32 %v4959_v13, %v1476_v53  ;;  %3665 = vmatmul.mubr.f32.gmra.mxu0 %v1745_v22 }
 0x273   :  { %v3412_v25 = vpop.f32.mrf.mxu1  ;;  %3667 = vmatprep.mubr.msk.f32.mxu0 %vm3859_vm0, %v3858_v5 }
 0x274   :  { %v1746_v15 = vmax.f32 %v1477_v6, 0.0 }
 0x275   :  { %v1481_v19 = vpop.f32.mrf.mxu1 }
 0x276   :  { %v1482_v16 = vadd.f32 %v4959_v13, %v1481_v19  ;;  %3668 = vmatmul.mubr.f32.gmra.mxu0 %v1746_v15 }
 0x277   :  { %v3415_v21 = vpop.f32.mrf.mxu1  ;;  %3670 = vmatprep.mubr.msk.f32.mxu0 %vm3859_vm0, %v3858_v5 }
 0x278   :  { %v1747_v23 = vmax.f32 %v1482_v16, 0.0 }
 0x279   :  { %v1486_v35 = vpop.f32.mrf.mxu1 }
 0x27a   :  { %v1487_v30 = vadd.f32 %v4959_v13, %v1486_v35  ;;  %3671 = vmatmul.mubr.f32.gmra.mxu0 %v1747_v23 }
 0x27b   :  { %v3418_v24 = vpop.f32.mrf.mxu1  ;;  %3673 = vmatprep.mubr.msk.f32.mxu0 %vm3859_vm0, %v3858_v5 }
 0x27c   :  { %v1748_v29 = vmax.f32 %v1487_v30, 0.0 }
 0x27d   :  { %v1491_v27 = vpop.f32.mrf.mxu1 }
 0x27e   :  { %v1492_v31 = vadd.f32 %v4959_v13, %v1491_v27  ;;  %3674 = vmatmul.mubr.f32.gmra.mxu0 %v1748_v29 }
 0x27f   :  { %v3421_v45 = vpop.f32.mrf.mxu1  ;;  %3676 = vmatprep.mubr.msk.f32.mxu0 %vm3859_vm0, %v3858_v5 }
 0x280   :  { %v1749_v33 = vmax.f32 %v1492_v31, 0.0 }
 0x281   :  { %v1496_v36 = vpop.f32.mrf.mxu1 }
 0x282   :  { %v1497_v38 = vadd.f32 %v4959_v13, %v1496_v36  ;;  %3677 = vmatmul.mubr.f32.gmra.mxu0 %v1749_v33 }
 0x283   :  { %v3424_v18 = vpop.f32.mrf.mxu1  ;;  %3679 = vmatprep.mubr.msk.f32.mxu0 %vm3859_vm0, %v3858_v5 }
 0x284   :  { %v1750_v17 = vmax.f32 %v1497_v38, 0.0 }
 0x285   :  { %v1501_v55 = vpop.f32.mrf.mxu1 }
 0x286   :  { %v1502_v39 = vadd.f32 %v4959_v13, %v1501_v55  ;;  %3680 = vmatmul.mubr.f32.gmra.mxu0 %v1750_v17 }
 0x287   :  { %v3427_v41 = vpop.f32.mrf.mxu1  ;;  %3682 = vmatprep.mubr.msk.f32.mxu0 %vm3859_vm0, %v3858_v5 }
 0x288   :  { %v1751_v42 = vmax.f32 %v1502_v39, 0.0 }
 0x289   :  { %v1506_v44 = vpop.f32.mrf.mxu1 }
 0x28a   :  { %v1507_v26 = vadd.f32 %v4959_v13, %v1506_v44  ;;  %3683 = vmatmul.mubr.f32.gmra.mxu0 %v1751_v42 }
 0x28b   :  { %v3430_v2 = vpop.f32.mrf.mxu1  ;;  %3685 = vmatprep.mubr.msk.f32.mxu0 %vm3859_vm0, %v3858_v5 }
 0x28c   :  { %v1752_v20 = vmax.f32 %v1507_v26, 0.0 }
 0x28d   :  { %v1511_v47 = vpop.f32.mrf.mxu1 }
 0x28e   :  { %v1512_v48 = vadd.f32 %v4959_v13, %v1511_v47  ;;  %3686 = vmatmul.mubr.f32.gmra.mxu0 %v1752_v20 }
 0x28f   :  { %v3433_v32 = vpop.f32.mrf.mxu1  ;;  %3688 = vmatprep.mubr.msk.f32.mxu0 %vm3859_vm0, %v3858_v5 }
 0x290   :  { %v1753_v50 = vmax.f32 %v1512_v48, 0.0  ;;  %v5216_v32 = vld [vmem:[%s5850_s4 + $0x2] ss:$0 sm:$0xff] }
 0x291   :  { %v1516_v12 = vpop.f32.mrf.mxu1 }
 0x292   :  { %v1517_v54 = vadd.f32 %v4959_v13, %v1516_v12  ;;  %3689 = vmatmul.mubr.f32.gmra.mxu0 %v1753_v50 }
 0x293   :  { %v3436_v52 = vpop.f32.mrf.mxu1  ;;  %3691 = vmatprep.mubr.msk.f32.mxu0 %vm3859_vm0, %v3858_v5 }
 0x294   :  { %v1754_v56 = vmax.f32 %v1517_v54, 0.0 }
 0x295   :  { %v1521_v37 = vpop.f32.mrf.mxu1 }
 0x296   :  { %v1522_v59 = vadd.f32 %v4959_v13, %v1521_v37  ;;  %3692 = vmatmul.mubr.f32.gmra.mxu0 %v1754_v56 }
 0x297   :  { %v3439_v28 = vpop.f32.mrf.mxu1  ;;  %3694 = vmatprep.mubr.msk.f32.mxu0 %vm3859_vm0, %v3858_v5 }
 0x298   :  { %v1755_v61 = vmax.f32 %v1522_v59, 0.0  ;;  %v5225_v28 = vld [vmem:[%s5851_s5] ss:$0 sm:$0xff] }
 0x299   :  { %v1526_v58 = vpop.f32.mrf.mxu1 }
 0x29a   :  { %v1527_v60 = vadd.f32 %v4959_v13, %v1526_v58  ;;  %3695 = vmatmul.mubr.f32.gmra.mxu0 %v1755_v61 }
 0x29b   :  { %v3442_v43 = vpop.f32.mrf.mxu1  ;;  %3697 = vmatprep.mubr.msk.f32.mxu0 %vm3859_vm0, %v3858_v5 }
 0x29c   :  { %v1756_v62 = vmax.f32 %v1527_v60, 0.0 }
 0x29d   :  { %v1531_v34 = vpop.f32.mrf.mxu1 }
 0x29e   :  { %v1532_v49 = vadd.f32 %v4959_v13, %v1531_v34  ;;  %3698 = vmatmul.mubr.f32.gmra.mxu0 %v1756_v62 }
 0x29f   :  { %v3445_v0 = vpop.f32.mrf.mxu1  ;;  %3700 = vmatprep.mubr.msk.f32.mxu0 %vm3859_vm0, %v3858_v5 }
 0x2a0   :  { %v1757_v57 = vmax.f32 %v1532_v49, 0.0 }
 0x2a1   :  { %v1536_v4 = vpop.f32.mrf.mxu1 }
 0x2a2   :  { %v1537_v1 = vadd.f32 %v4959_v13, %v1536_v4  ;;  %3701 = vmatmul.mubr.f32.gmra.mxu0 %v1757_v57 }
 0x2a3   :  { %v3448_v40 = vpop.f32.mrf.mxu1  ;;  %3703 = vmatprep.mubr.msk.f32.mxu0 %vm3859_vm0, %v3858_v5 }
 0x2a4   :  { %v1758_v3 = vmax.f32 %v1537_v1, 0.0 }
 0x2a5   :  { %v1541_v63 = vpop.f32.mrf.mxu1 }
 0x2a6   :  { %v1542_v51 = vadd.f32 %v4959_v13, %v1541_v63  ;;  %3704 = vmatmul.mubr.f32.gmra.mxu0 %v1758_v3  ;;  %v12_v63 = vstv %s5852_s6 }
 0x2a7   :  { %v3451_v14 = vpop.f32.mrf.mxu1  ;;  %3706 = vmatprep.mubr.msk.f32.mxu0 %vm3859_vm0, %v3858_v5  ;;  %13 = vst [vmem:[#allocation2] sm:$0x1] %v12_v63 }
 0x2a8   :  { %v1759_v7 = vmax.f32 %v1542_v51, 0.0 }
 0x2a9   :  { %v1546_v46 = vpop.f32.mrf.mxu1 }
 0x2aa   :  { %v1547_v8 = vadd.f32 %v4959_v13, %v1546_v46  ;;  %3707 = vmatmul.mubr.f32.gmra.mxu0 %v1759_v7 }
 0x2ab   :  { %v3454_v9 = vpop.f32.mrf.mxu1  ;;  %3709 = vmatprep.mubr.msk.f32.mxu0 %vm3859_vm0, %v3858_v5 }
 0x2ac   :  { %v1760_v10 = vmax.f32 %v1547_v8, 0.0 }
 0x2ad   :  { %v1551_v11 = vpop.f32.mrf.mxu1 }
 0x2ae   :  { %v1552_v22 = vadd.f32 %v4959_v13, %v1551_v11  ;;  %3710 = vmatmul.mubr.f32.gmra.mxu0 %v1760_v10 }
 0x2af   :  { %v3457_v53 = vpop.f32.mrf.mxu1  ;;  %3712 = vmatprep.mubr.msk.f32.mxu0 %vm3859_vm0, %v3858_v5 }
 0x2b0   :  { %v1761_v6 = vmax.f32 %v1552_v22, 0.0 }
 0x2b1   :  { %v1556_v25 = vpop.f32.mrf.mxu1 }
 0x2b2   :  { %v1557_v15 = vadd.f32 %v4959_v13, %v1556_v25  ;;  %3713 = vmatmul.mubr.f32.gmra.mxu0 %v1761_v6 }
 0x2b3   :  { %v3460_v19 = vpop.f32.mrf.mxu1  ;;  %3715 = vmatprep.mubr.msk.f32.mxu0 %vm3859_vm0, %v3858_v5 }
 0x2b4   :  { %v1762_v16 = vmax.f32 %v1557_v15, 0.0 }
 0x2b5   :  { %v1561_v21 = vpop.f32.mrf.mxu1 }
 0x2b6   :  { %v1562_v23 = vadd.f32 %v4959_v13, %v1561_v21  ;;  %3716 = vmatmul.mubr.f32.gmra.mxu0 %v1762_v16 }
 0x2b7   :  { %v3463_v35 = vpop.f32.mrf.mxu1  ;;  %3718 = vmatprep.mubr.msk.f32.mxu0 %vm3859_vm0, %v3858_v5 }
 0x2b8   :  { %v1763_v30 = vmax.f32 %v1562_v23, 0.0 }
 0x2b9   :  { %v1566_v24 = vpop.f32.mrf.mxu1 }
 0x2ba   :  { %v1567_v29 = vadd.f32 %v4959_v13, %v1566_v24  ;;  %3719 = vmatmul.mubr.f32.gmra.mxu0 %v1763_v30 }
 0x2bb   :  { %v3466_v27 = vpop.f32.mrf.mxu1  ;;  %3721 = vmatprep.mubr.msk.f32.mxu0 %vm3859_vm0, %v3858_v5 }
 0x2bc   :  { %v1764_v31 = vmax.f32 %v1567_v29, 0.0 }
 0x2bd   :  { %v1571_v45 = vpop.f32.mrf.mxu1 }
 0x2be   :  { %v1572_v33 = vadd.f32 %v4959_v13, %v1571_v45  ;;  %3722 = vmatmul.mubr.f32.gmra.mxu0 %v1764_v31 }
 0x2bf   :  { %v3469_v36 = vpop.f32.mrf.mxu1  ;;  %3724 = vmatprep.mubr.msk.f32.mxu0 %vm3859_vm0, %v3858_v5 }
 0x2c0   :  { %v1765_v38 = vmax.f32 %v1572_v33, 0.0 }
 0x2c1   :  { %v1576_v18 = vpop.f32.mrf.mxu1 }
 0x2c2   :  { %v1577_v17 = vadd.f32 %v4959_v13, %v1576_v18  ;;  %3725 = vmatmul.mubr.f32.gmra.mxu0 %v1765_v38 }
 0x2c3   :  { %v3472_v55 = vpop.f32.mrf.mxu1  ;;  %3727 = vmatprep.mubr.msk.f32.mxu0 %vm3859_vm0, %v3858_v5 }
 0x2c4   :  { %v1766_v39 = vmax.f32 %v1577_v17, 0.0 }
 0x2c5   :  { %v1581_v41 = vpop.f32.mrf.mxu1 }
 0x2c6   :  { %v1582_v42 = vadd.f32 %v4959_v13, %v1581_v41  ;;  %3728 = vmatmul.mubr.f32.gmra.mxu0 %v1766_v39 }
 0x2c7   :  { %v3475_v44 = vpop.f32.mrf.mxu1  ;;  %3730 = vmatprep.mubr.msk.f32.mxu0 %vm3859_vm0, %v3858_v5 }
 0x2c8   :  { %v1767_v26 = vmax.f32 %v1582_v42, 0.0 }
 0x2c9   :  { %v1586_v2 = vpop.f32.mrf.mxu1 }
 0x2ca   :  { %v1587_v20 = vadd.f32 %v4959_v13, %v1586_v2  ;;  %3731 = vmatmul.mubr.f32.gmra.mxu0 %v1767_v26 }
 0x2cb   :  { %v3478_v47 = vpop.f32.mrf.mxu1  ;;  %3733 = vmatprep.mubr.msk.f32.mxu0 %vm3859_vm0, %v3858_v5 }
 0x2cc   :  { %v1768_v48 = vmax.f32 %v1587_v20, 0.0 }
 0x2cd   :  { %v1591_v50 = vpop.f32.mrf.mxu1 }
 0x2ce   :  { %v1592_v12 = vadd.f32 %v4959_v13, %v1591_v50  ;;  %v1886_v54 = vpop.f32.mrf.mxu0  ;;  %3734 = vmatmul.mubr.f32.gmra.mxu0 %v1768_v48 }
 0x2cf   :  { %v1887_v52 = vadd.f32 %v5216_v32, %v1886_v54  ;;  %v3481_v56 = vpop.f32.mrf.mxu1  ;;  %3736 = vmatprep.mubr.msk.f32.mxu0 %vm3859_vm0, %v3858_v5 }
 0x2d0   :  { %v1769_v37 = vmax.f32 %v1592_v12, 0.0  ;;  %v3591_v59 = vpop.f32.mrf.mxu0 }
 0x2d1   :  { %v2260_v61 = vmax.f32 %v1887_v52, 0.0  ;;  %v1596_v58 = vpop.f32.mrf.mxu1 }
 0x2d2   :  { %v1597_v60 = vadd.f32 %v4959_v13, %v1596_v58  ;;  %v1891_v43 = vpop.f32.mrf.mxu0  ;;  %3737 = vmatmul.mubr.f32.gmra.mxu0 %v1769_v37 }
 0x2d3   :  { %v1892_v62 = vadd.f32 %v5216_v32, %v1891_v43  ;;  %v3484_v34 = vpop.f32.mrf.mxu1  ;;  %v2342_v49 = vmul.f32 %v5225_v28, %v2260_v61  ;;  %3739 = vmatprep.mubr.msk.f32.mxu0 %vm3859_vm0, %v3858_v5 }
 0x2d4   :  { %v1770_v0 = vmax.f32 %v1597_v60, 0.0  ;;  %v3594_v57 = vpop.f32.mrf.mxu0 }
 0x2d5   :  { %v2261_v4 = vmax.f32 %v1892_v62, 0.0  ;;  %2417 = vadd.xlane.f32.xlu1 %v2342_v49  ;;  %v1601_v1 = vpop.f32.mrf.mxu1 }
 0x2d6   :  { %v1602_v40 = vadd.f32 %v4959_v13, %v1601_v1  ;;  %v1896_v3 = vpop.f32.mrf.mxu0  ;;  %3740 = vmatmul.mubr.f32.gmra.mxu0 %v1770_v0 }
 0x2d7   :  { %v1897_v51 = vadd.f32 %v5216_v32, %v1896_v3  ;;  %v3487_v14 = vpop.f32.mrf.mxu1  ;;  %v2343_v7 = vmul.f32 %v5225_v28, %v2261_v4  ;;  %3742 = vmatprep.mubr.msk.f32.mxu0 %vm3859_vm0, %v3858_v5 }
 0x2d8   :  { %v1771_v46 = vmax.f32 %v1602_v40, 0.0  ;;  %v3597_v8 = vpop.f32.mrf.mxu0 }
 0x2d9   :  { %v2262_v9 = vmax.f32 %v1897_v51, 0.0  ;;  %2419 = vadd.xlane.f32.xlu0 %v2343_v7  ;;  %v1606_v10 = vpop.f32.mrf.mxu1 }
 0x2da   :  { %v1607_v11 = vadd.f32 %v4959_v13, %v1606_v10  ;;  %v1901_v22 = vpop.f32.mrf.mxu0  ;;  %3743 = vmatmul.mubr.f32.gmra.mxu0 %v1771_v46 }
 0x2db   :  { %v1902_v53 = vadd.f32 %v5216_v32, %v1901_v22  ;;  %v3490_v6 = vpop.f32.mrf.mxu1  ;;  %v2344_v25 = vmul.f32 %v5225_v28, %v2262_v9  ;;  %3745 = vmatprep.mubr.msk.f32.mxu0 %vm3859_vm0, %v3858_v5 }
 0x2dc   :  { %v1772_v15 = vmax.f32 %v1607_v11, 0.0  ;;  %v3600_v19 = vpop.f32.mrf.mxu0  ;;  %v5278_v6 = vld [vmem:[%s5850_s4 + $0x1] ss:$0 sm:$0xff] }
 0x2dd   :  { %v2263_v16 = vmax.f32 %v1902_v53, 0.0  ;;  %2421 = vadd.xlane.f32.xlu0 %v2344_v25  ;;  %v1611_v21 = vpop.f32.mrf.mxu1 }
 0x2de   :  { %v1612_v23 = vadd.f32 %v4959_v13, %v1611_v21  ;;  %v1906_v35 = vpop.f32.mrf.mxu0  ;;  %3746 = vmatmul.mubr.f32.gmra.mxu0 %v1772_v15 }
 0x2df   :  { %v1907_v30 = vadd.f32 %v5216_v32, %v1906_v35  ;;  %v3493_v24 = vpop.f32.mrf.mxu1  ;;  %v2345_v29 = vmul.f32 %v5225_v28, %v2263_v16  ;;  %3748 = vmatprep.mubr.msk.f32.mxu0 %vm3859_vm0, %v3858_v5 }
 0x2e0   :  { %v1773_v27 = vmax.f32 %v1612_v23, 0.0  ;;  %v3603_v31 = vpop.f32.mrf.mxu0 }
 0x2e1   :  { %v2264_v45 = vmax.f32 %v1907_v30, 0.0  ;;  %2423 = vadd.xlane.f32.xlu1 %v2345_v29  ;;  %v1616_v33 = vpop.f32.mrf.mxu1 }
 0x2e2   :  { %v1617_v36 = vadd.f32 %v4959_v13, %v1616_v33  ;;  %v1911_v38 = vpop.f32.mrf.mxu0  ;;  %3749 = vmatmul.mubr.f32.gmra.mxu0 %v1773_v27 }
 0x2e3   :  { %v1912_v18 = vadd.f32 %v5216_v32, %v1911_v38  ;;  %v3496_v17 = vpop.f32.mrf.mxu1  ;;  %v2346_v55 = vmul.f32 %v5225_v28, %v2264_v45  ;;  %3751 = vmatprep.mubr.msk.f32.mxu0 %vm3859_vm0, %v3858_v5 }
 0x2e4   :  { %v1774_v39 = vmax.f32 %v1617_v36, 0.0  ;;  %v3606_v41 = vpop.f32.mrf.mxu0 }
 0x2e5   :  { %v2265_v42 = vmax.f32 %v1912_v18, 0.0  ;;  %2425 = vadd.xlane.f32.xlu0 %v2346_v55  ;;  %v1621_v44 = vpop.f32.mrf.mxu1 }
 0x2e6   :  { %v1622_v26 = vadd.f32 %v4959_v13, %v1621_v44  ;;  %v1916_v2 = vpop.f32.mrf.mxu0  ;;  %3752 = vmatmul.mubr.f32.gmra.mxu0 %v1774_v39 }
 0x2e7   :  { %v1917_v20 = vadd.f32 %v5216_v32, %v1916_v2  ;;  %v3499_v47 = vpop.f32.mrf.mxu1  ;;  %v2347_v48 = vmul.f32 %v5225_v28, %v2265_v42  ;;  %3754 = vmatprep.mubr.msk.f32.mxu0 %vm3859_vm0, %v3858_v5 }
 0x2e8   :  { %v1775_v50 = vmax.f32 %v1622_v26, 0.0  ;;  %v3609_v12 = vpop.f32.mrf.mxu0 }
 0x2e9   :  { %v2266_v54 = vmax.f32 %v1917_v20, 0.0  ;;  %2427 = vadd.xlane.f32.xlu1 %v2347_v48  ;;  %v1626_v52 = vpop.f32.mrf.mxu1 }
 0x2ea   :  { %v1627_v56 = vadd.f32 %v4959_v13, %v1626_v52  ;;  %v1921_v37 = vpop.f32.mrf.mxu0  ;;  %3755 = vmatmul.mubr.f32.gmra.mxu0 %v1775_v50 }
 0x2eb   :  { %v1922_v59 = vadd.f32 %v5216_v32, %v1921_v37  ;;  %v3502_v61 = vpop.f32.mrf.mxu1  ;;  %v2348_v58 = vmul.f32 %v5225_v28, %v2266_v54  ;;  %3757 = vmatprep.mubr.msk.f32.mxu0 %vm3859_vm0, %v3858_v5 }
 0x2ec   :  { %v1776_v60 = vmax.f32 %v1627_v56, 0.0  ;;  %v3612_v43 = vpop.f32.mrf.mxu0 }
 0x2ed   :  { %v2267_v62 = vmax.f32 %v1922_v59, 0.0  ;;  %2429 = vadd.xlane.f32.xlu0 %v2348_v58  ;;  %v1631_v34 = vpop.f32.mrf.mxu1 }
 0x2ee   :  { %v1632_v49 = vadd.f32 %v4959_v13, %v1631_v34  ;;  %v1926_v0 = vpop.f32.mrf.mxu0  ;;  %3758 = vmatmul.mubr.f32.gmra.mxu0 %v1776_v60 }
 0x2ef   :  { %v1927_v57 = vadd.f32 %v5216_v32, %v1926_v0  ;;  %v3505_v4 = vpop.f32.mrf.mxu1  ;;  %v2349_v1 = vmul.f32 %v5225_v28, %v2267_v62  ;;  %3760 = vmatprep.mubr.msk.f32.mxu0 %vm3859_vm0, %v3858_v5 }
 0x2f0   :  { %v1777_v40 = vmax.f32 %v1632_v49, 0.0  ;;  %v3615_v3 = vpop.f32.mrf.mxu0 }
 0x2f1   :  { %v2268_v63 = vmax.f32 %v1927_v57, 0.0  ;;  %2431 = vadd.xlane.f32.xlu1 %v2349_v1  ;;  %v1636_v51 = vpop.f32.mrf.mxu1 }
 0x2f2   :  { %v1637_v14 = vadd.f32 %v4959_v13, %v1636_v51  ;;  %v1931_v7 = vpop.f32.mrf.mxu0  ;;  %3761 = vmatmul.mubr.f32.gmra.mxu0 %v1777_v40 }
 0x2f3   :  { %v1932_v46 = vadd.f32 %v5216_v32, %v1931_v7  ;;  %v3508_v8 = vpop.f32.mrf.mxu1  ;;  %v2350_v9 = vmul.f32 %v5225_v28, %v2268_v63  ;;  %3763 = vmatprep.mubr.msk.f32.mxu0 %vm3859_vm0, %v3858_v5 }
 0x2f4   :  { %v1778_v10 = vmax.f32 %v1637_v14, 0.0  ;;  %v3618_v11 = vpop.f32.mrf.mxu0 }
 0x2f5   :  { %v2269_v22 = vmax.f32 %v1932_v46, 0.0  ;;  %2433 = vadd.xlane.f32.xlu0 %v2350_v9  ;;  %v1641_v53 = vpop.f32.mrf.mxu1 }
 0x2f6   :  { %v1642_v13 = vadd.f32 %v5278_v6, %v1641_v53  ;;  %v1936_v25 = vpop.f32.mrf.mxu0  ;;  %3764 = vmatmul.mubr.f32.gmra.mxu0 %v1778_v10 }
 0x2f7   :  { %v1937_v15 = vadd.f32 %v5216_v32, %v1936_v25  ;;  %v3511_v19 = vpop.f32.mrf.mxu1  ;;  %v2351_v16 = vmul.f32 %v5225_v28, %v2269_v22  ;;  %3766 = vmatprep.mubr.msk.f32.mxu0 %vm3859_vm0, %v3858_v5 }
 0x2f8   :  { %v1779_v21 = vmax.f32 %v1642_v13, 0.0  ;;  %v3621_v23 = vpop.f32.mrf.mxu0 }
 0x2f9   :  { %v2270_v35 = vmax.f32 %v1937_v15, 0.0  ;;  %2435 = vadd.xlane.f32.xlu1 %v2351_v16  ;;  %v1646_v30 = vpop.f32.mrf.mxu1 }
 0x2fa   :  { %v1647_v24 = vadd.f32 %v5278_v6, %v1646_v30  ;;  %v1941_v29 = vpop.f32.mrf.mxu0  ;;  %3767 = vmatmul.mubr.f32.gmra.mxu0 %v1779_v21 }
 0x2fb   :  { %v1942_v27 = vadd.f32 %v5216_v32, %v1941_v29  ;;  %v3514_v31 = vpop.f32.mrf.mxu1  ;;  %v2352_v45 = vmul.f32 %v5225_v28, %v2270_v35  ;;  %3769 = vmatprep.mubr.msk.f32.mxu0 %vm3859_vm0, %v3858_v5 }
 0x2fc   :  { %v1780_v33 = vmax.f32 %v1647_v24, 0.0  ;;  %v3624_v36 = vpop.f32.mrf.mxu0 }
 0x2fd   :  { %v2271_v38 = vmax.f32 %v1942_v27, 0.0  ;;  %2437 = vadd.xlane.f32.xlu0 %v2352_v45  ;;  %v1651_v18 = vpop.f32.mrf.mxu1 }
 0x2fe   :  { %v1652_v17 = vadd.f32 %v5278_v6, %v1651_v18  ;;  %v1946_v55 = vpop.f32.mrf.mxu0  ;;  %3770 = vmatmul.mubr.f32.gmra.mxu0 %v1780_v33 }
 0x2ff   :  { %v1947_v39 = vadd.f32 %v5216_v32, %v1946_v55  ;;  %v3517_v41 = vpop.f32.mrf.mxu1  ;;  %v2353_v42 = vmul.f32 %v5225_v28, %v2271_v38  ;;  %3772 = vmatprep.mubr.msk.f32.mxu0 %vm3859_vm0, %v3858_v5 }
 0x300   :  { %v1781_v44 = vmax.f32 %v1652_v17, 0.0  ;;  %v3627_v26 = vpop.f32.mrf.mxu0 }
 0x301   :  { %v2272_v2 = vmax.f32 %v1947_v39, 0.0  ;;  %2439 = vadd.xlane.f32.xlu1 %v2353_v42  ;;  %v1656_v20 = vpop.f32.mrf.mxu1 }
 0x302   :  { %v1657_v47 = vadd.f32 %v5278_v6, %v1656_v20  ;;  %v1951_v48 = vpop.f32.mrf.mxu0  ;;  %3773 = vmatmul.mubr.f32.gmra.mxu0 %v1781_v44 }
 0x303   :  { %v1952_v50 = vadd.f32 %v5216_v32, %v1951_v48  ;;  %v3520_v12 = vpop.f32.mrf.mxu1  ;;  %v2354_v54 = vmul.f32 %v5225_v28, %v2272_v2  ;;  %3775 = vmatprep.mubr.msk.f32.mxu0 %vm3859_vm0, %v3858_v5 }
 0x304   :  { %v1782_v52 = vmax.f32 %v1657_v47, 0.0  ;;  %v3630_v56 = vpop.f32.mrf.mxu0 }
 0x305   :  { %v2273_v37 = vmax.f32 %v1952_v50, 0.0  ;;  %2441 = vadd.xlane.f32.xlu0 %v2354_v54  ;;  %v1661_v59 = vpop.f32.mrf.mxu1 }
 0x306   :  { %v1662_v61 = vadd.f32 %v5278_v6, %v1661_v59  ;;  %v1956_v58 = vpop.f32.mrf.mxu0  ;;  %3776 = vmatmul.mubr.f32.gmra.mxu0 %v1782_v52 }
 0x307   :  { %v1957_v60 = vadd.f32 %v5216_v32, %v1956_v58  ;;  %v3523_v43 = vpop.f32.mrf.mxu1  ;;  %v2355_v62 = vmul.f32 %v5225_v28, %v2273_v37  ;;  %3778 = vmatprep.mubr.msk.f32.mxu0 %vm3859_vm0, %v3858_v5 }
 0x308   :  { %v1783_v34 = vmax.f32 %v1662_v61, 0.0  ;;  %v3633_v49 = vpop.f32.mrf.mxu0 }
 0x309   :  { %v2274_v0 = vmax.f32 %v1957_v60, 0.0  ;;  %2443 = vadd.xlane.f32.xlu1 %v2355_v62  ;;  %v1666_v57 = vpop.f32.mrf.mxu1 }
 0x30a   :  { %v1667_v4 = vadd.f32 %v5278_v6, %v1666_v57  ;;  %v1961_v1 = vpop.f32.mrf.mxu0  ;;  %3779 = vmatmul.mubr.f32.gmra.mxu0 %v1783_v34 }
 0x30b   :  { %v1962_v40 = vadd.f32 %v5216_v32, %v1961_v1  ;;  %v3526_v3 = vpop.f32.mrf.mxu1  ;;  %v2356_v63 = vmul.f32 %v5225_v28, %v2274_v0  ;;  %3781 = vmatprep.mubr.msk.f32.mxu0 %vm3859_vm0, %v3858_v5 }
 0x30c   :  { %v1784_v51 = vmax.f32 %v1667_v4, 0.0  ;;  %v3636_v14 = vpop.f32.mrf.mxu0 }
 0x30d   :  { %v2275_v7 = vmax.f32 %v1962_v40, 0.0  ;;  %2445 = vadd.xlane.f32.xlu0 %v2356_v63  ;;  %v1671_v46 = vpop.f32.mrf.mxu1 }
 0x30e   :  { %v1672_v8 = vadd.f32 %v5278_v6, %v1671_v46  ;;  %v1966_v9 = vpop.f32.mrf.mxu0  ;;  %3782 = vmatmul.mubr.f32.gmra.mxu0 %v1784_v51 }
 0x30f   :  { %v1967_v10 = vadd.f32 %v5216_v32, %v1966_v9  ;;  %v3529_v11 = vpop.f32.mrf.mxu1  ;;  %v2357_v22 = vmul.f32 %v5225_v28, %v2275_v7  ;;  %3784 = vmatprep.mubr.msk.f32.mxu0 %vm3859_vm0, %v3858_v5 }
 0x310   :  { %v1785_v53 = vmax.f32 %v1672_v8, 0.0  ;;  %v3639_v13 = vpop.f32.mrf.mxu0 }
 0x311   :  { %v2276_v25 = vmax.f32 %v1967_v10, 0.0  ;;  %2447 = vadd.xlane.f32.xlu1 %v2357_v22  ;;  %v1676_v15 = vpop.f32.mrf.mxu1 }
 0x312   :  { %v1677_v19 = vadd.f32 %v5278_v6, %v1676_v15  ;;  %v1971_v16 = vpop.f32.mrf.mxu0  ;;  %3785 = vmatmul.mubr.f32.gmra.mxu0 %v1785_v53 }
 0x313   :  { %v1972_v21 = vadd.f32 %v5216_v32, %v1971_v16  ;;  %v3532_v23 = vpop.f32.mrf.mxu1  ;;  %v2358_v35 = vmul.f32 %v5225_v28, %v2276_v25  ;;  %3787 = vmatprep.mubr.msk.f32.mxu0 %vm3859_vm0, %v3858_v5 }
 0x314   :  { %v1786_v30 = vmax.f32 %v1677_v19, 0.0  ;;  %v3642_v24 = vpop.f32.mrf.mxu0 }
 0x315   :  { %v2277_v29 = vmax.f32 %v1972_v21, 0.0  ;;  %2449 = vadd.xlane.f32.xlu0 %v2358_v35  ;;  %v1681_v27 = vpop.f32.mrf.mxu1 }
 0x316   :  { %v1682_v31 = vadd.f32 %v5278_v6, %v1681_v27  ;;  %v1976_v45 = vpop.f32.mrf.mxu0  ;;  %3788 = vmatmul.mubr.f32.gmra.mxu0 %v1786_v30 }
 0x317   :  { %v1977_v33 = vadd.f32 %v5216_v32, %v1976_v45  ;;  %v3535_v36 = vpop.f32.mrf.mxu1  ;;  %v2359_v38 = vmul.f32 %v5225_v28, %v2277_v29  ;;  %3790 = vmatprep.mubr.msk.f32.mxu0 %vm3859_vm0, %v3858_v5 }
 0x318   :  { %v1787_v18 = vmax.f32 %v1682_v31, 0.0  ;;  %v3645_v17 = vpop.f32.mrf.mxu0 }
 0x319   :  { %v2278_v55 = vmax.f32 %v1977_v33, 0.0  ;;  %2451 = vadd.xlane.f32.xlu1 %v2359_v38  ;;  %v1686_v39 = vpop.f32.mrf.mxu1 }
 0x31a   :  { %v1687_v41 = vadd.f32 %v5278_v6, %v1686_v39  ;;  %v1981_v42 = vpop.f32.mrf.mxu0  ;;  %3791 = vmatmul.mubr.f32.gmra.mxu0 %v1787_v18 }
 0x31b   :  { %v1982_v44 = vadd.f32 %v5216_v32, %v1981_v42  ;;  %v3538_v26 = vpop.f32.mrf.mxu1  ;;  %v2360_v2 = vmul.f32 %v5225_v28, %v2278_v55  ;;  %3793 = vmatprep.mubr.msk.f32.mxu0 %vm3859_vm0, %v3858_v5 }
 0x31c   :  { %v1788_v20 = vmax.f32 %v1687_v41, 0.0  ;;  %v3648_v47 = vpop.f32.mrf.mxu0 }
 0x31d   :  { %v2279_v48 = vmax.f32 %v1982_v44, 0.0  ;;  %2453 = vadd.xlane.f32.xlu0 %v2360_v2  ;;  %v1691_v50 = vpop.f32.mrf.mxu1 }
 0x31e   :  { %v1692_v12 = vadd.f32 %v5278_v6, %v1691_v50  ;;  %v1986_v54 = vpop.f32.mrf.mxu0  ;;  %3794 = vmatmul.mubr.f32.gmra.mxu0 %v1788_v20 }
 0x31f   :  { %v1987_v52 = vadd.f32 %v5216_v32, %v1986_v54  ;;  %v3541_v56 = vpop.f32.mrf.mxu1  ;;  %v2361_v37 = vmul.f32 %v5225_v28, %v2279_v48  ;;  %3796 = vmatprep.mubr.msk.f32.mxu0 %vm3859_vm0, %v3858_v5 }
 0x320   :  { %v1789_v59 = vmax.f32 %v1692_v12, 0.0  ;;  %v3651_v61 = vpop.f32.mrf.mxu0 }
 0x321   :  { %v2280_v58 = vmax.f32 %v1987_v52, 0.0  ;;  %2455 = vadd.xlane.f32.xlu1 %v2361_v37  ;;  %v1696_v60 = vpop.f32.mrf.mxu1 }
 0x322   :  { %v1697_v43 = vadd.f32 %v5278_v6, %v1696_v60  ;;  %v1991_v62 = vpop.f32.mrf.mxu0  ;;  %3797 = vmatmul.mubr.f32.gmra.mxu0 %v1789_v59 }
 0x323   :  { %v1992_v34 = vadd.f32 %v5216_v32, %v1991_v62  ;;  %v3544_v49 = vpop.f32.mrf.mxu1  ;;  %v2362_v0 = vmul.f32 %v5225_v28, %v2280_v58  ;;  %3799 = vmatprep.mubr.msk.f32.mxu0 %vm3859_vm0, %v3858_v5 }
 0x324   :  { %v1790_v57 = vmax.f32 %v1697_v43, 0.0  ;;  %v3654_v4 = vpop.f32.mrf.mxu0 }
 0x325   :  { %v2281_v1 = vmax.f32 %v1992_v34, 0.0  ;;  %2457 = vadd.xlane.f32.xlu0 %v2362_v0  ;;  %v1701_v40 = vpop.f32.mrf.mxu1 }
 0x326   :  { %v1702_v3 = vadd.f32 %v5278_v6, %v1701_v40  ;;  %v1996_v63 = vpop.f32.mrf.mxu0  ;;  %3800 = vmatmul.mubr.f32.gmra.mxu0 %v1790_v57 }
 0x327   :  { %v1997_v51 = vadd.f32 %v5216_v32, %v1996_v63  ;;  %v3547_v14 = vpop.f32.mrf.mxu1  ;;  %v2363_v7 = vmul.f32 %v5225_v28, %v2281_v1  ;;  %3802 = vmatprep.mubr.msk.f32.mxu0 %vm3859_vm0, %v3858_v5 }
 0x328   :  { %v1791_v46 = vmax.f32 %v1702_v3, 0.0  ;;  %v3657_v8 = vpop.f32.mrf.mxu0 }
 0x329   :  { %v2282_v9 = vmax.f32 %v1997_v51, 0.0  ;;  %2459 = vadd.xlane.f32.xlu1 %v2363_v7  ;;  %v1706_v10 = vpop.f32.mrf.mxu1 }
 0x32a   :  { %v1707_v11 = vadd.f32 %v5278_v6, %v1706_v10  ;;  %v2001_v22 = vpop.f32.mrf.mxu0  ;;  %3803 = vmatmul.mubr.f32.gmra.mxu0 %v1791_v46 }
 0x32b   :  { %v2364_v53 = vmul.f32 %v5225_v28, %v2282_v9  ;;  %v2002_v13 = vadd.f32 %v5216_v32, %v2001_v22  ;;  %v3550_v25 = vpop.f32.mrf.mxu1  ;;  %3805 = vmatprep.mubr.msk.f32.mxu0 %vm3859_vm0, %v3858_v5 }
 0x32c   :  { %v1792_v15 = vmax.f32 %v1707_v11, 0.0  ;;  %v3660_v19 = vpop.f32.mrf.mxu0 }
 0x32d   :  { %v2283_v16 = vmax.f32 %v2002_v13, 0.0  ;;  %2461 = vadd.xlane.f32.xlu0 %v2364_v53  ;;  %v1711_v21 = vpop.f32.mrf.mxu1 }
 0x32e   :  { %v1712_v23 = vadd.f32 %v5278_v6, %v1711_v21  ;;  %v2006_v35 = vpop.f32.mrf.mxu0  ;;  %3806 = vmatmul.mubr.f32.gmra.mxu0 %v1792_v15 }
 0x32f   :  { %v2007_v30 = vadd.f32 %v5216_v32, %v2006_v35  ;;  %v3553_v24 = vpop.f32.mrf.mxu1  ;;  %v2365_v29 = vmul.f32 %v5225_v28, %v2283_v16  ;;  %3808 = vmatprep.mubr.msk.f32.mxu0 %vm3859_vm0, %v3858_v5 }
 0x330   :  { %v1793_v27 = vmax.f32 %v1712_v23, 0.0  ;;  %v3663_v31 = vpop.f32.mrf.mxu0 }
 0x331   :  { %v2284_v45 = vmax.f32 %v2007_v30, 0.0  ;;  %2463 = vadd.xlane.f32.xlu1 %v2365_v29  ;;  %v1716_v33 = vpop.f32.mrf.mxu1  ;;  %v5380_v29 = vld [vmem:[#allocation2] ss:$0 sm:$0xff] }
 0x332   :  { %v1717_v36 = vadd.f32 %v5278_v6, %v1716_v33  ;;  %v2011_v38 = vpop.f32.mrf.mxu0  ;;  %3809 = vmatmul.mubr.f32.gmra.mxu0 %v1793_v27 }
 0x333   :  { %v2366_v18 = vmul.f32 %v5225_v28, %v2284_v45  ;;  %v2012_v17 = vadd.f32 %v5216_v32, %v2011_v38  ;;  %v3556_v55 = vpop.f32.mrf.mxu1  ;;  %3811 = vmatprep.mubr.msk.f32.mxu0 %vm3859_vm0, %v3858_v5 }
 0x334   :  { %v1794_v39 = vmax.f32 %v1717_v36, 0.0  ;;  %v3666_v41 = vpop.f32.mrf.mxu0 }
 0x335   :  { %v2285_v42 = vmax.f32 %v2012_v17, 0.0  ;;  %2465 = vadd.xlane.f32.xlu0 %v2366_v18 }
 0x336   :  { %v2016_v44 = vpop.f32.mrf.mxu0  ;;  %3812 = vmatmul.mubr.f32.gmra.mxu0 %v1794_v39 }
 0x337   :  { %v2367_v26 = vmul.f32 %v5225_v28, %v2285_v42  ;;  %v2017_v6 = vadd.f32 %v5216_v32, %v2016_v44 }
 0x338   :  { %v3669_v2 = vpop.f32.mrf.mxu0 }
 0x339   :  { %v2286_v20 = vmax.f32 %v2017_v6, 0.0  ;;  %2467 = vadd.xlane.f32.xlu1 %v2367_v26 }
 0x33a   :  { %v2021_v47 = vpop.f32.mrf.mxu0 }
 0x33b   :  { %v2368_v48 = vmul.f32 %v5225_v28, %v2286_v20  ;;  %v2022_v50 = vadd.f32 %v5216_v32, %v2021_v47 }
 0x33c   :  { %v3672_v12 = vpop.f32.mrf.mxu0 }
 0x33d   :  { %v2287_v5 = vmax.f32 %v2022_v50, 0.0  ;;  %2469 = vadd.xlane.f32.xlu0 %v2368_v48 }
 0x33e   :  { %v2026_v54 = vpop.f32.mrf.mxu0 }
 0x33f   :  { %v2369_v52 = vmul.f32 %v5225_v28, %v2287_v5  ;;  %v2027_v56 = vadd.f32 %v5216_v32, %v2026_v54 }
 0x340   :  { %v3675_v37 = vpop.f32.mrf.mxu0 }
 0x341   :  { %v2288_v59 = vmax.f32 %v2027_v56, 0.0  ;;  %2471 = vadd.xlane.f32.xlu1 %v2369_v52 }
 0x342   :  { %v2031_v61 = vpop.f32.mrf.mxu0 }
 0x343   :  { %v2370_v58 = vmul.f32 %v5225_v28, %v2288_v59  ;;  %v2032_v60 = vadd.f32 %v5216_v32, %v2031_v61 }
 0x344   :  { %v3678_v43 = vpop.f32.mrf.mxu0 }
 0x345   :  { %v2289_v62 = vmax.f32 %v2032_v60, 0.0  ;;  %2473 = vadd.xlane.f32.xlu0 %v2370_v58 }
 0x346   :  { %v2036_v34 = vpop.f32.mrf.mxu0 }
 0x347   :  { %v2371_v49 = vmul.f32 %v5225_v28, %v2289_v62  ;;  %v2037_v0 = vadd.f32 %v5216_v32, %v2036_v34 }
 0x348   :  { %v3681_v57 = vpop.f32.mrf.mxu0 }
 0x349   :  { %v2290_v4 = vmax.f32 %v2037_v0, 0.0  ;;  %2475 = vadd.xlane.f32.xlu1 %v2371_v49 }
 0x34a   :  { %v2041_v1 = vpop.f32.mrf.mxu0 }
 0x34b   :  { %v2372_v40 = vmul.f32 %v5225_v28, %v2290_v4  ;;  %v2042_v3 = vadd.f32 %v5216_v32, %v2041_v1 }
 0x34c   :  { %v3684_v63 = vpop.f32.mrf.mxu0 }
 0x34d   :  { %v2291_v51 = vmax.f32 %v2042_v3, 0.0  ;;  %2477 = vadd.xlane.f32.xlu0 %v2372_v40 }
 0x34e   :  { %v2046_v14 = vpop.f32.mrf.mxu0 }
 0x34f   :  { %v2373_v7 = vmul.f32 %v5225_v28, %v2291_v51  ;;  %v2047_v46 = vadd.f32 %v5216_v32, %v2046_v14 }
 0x350   :  { %v3687_v8 = vpop.f32.mrf.mxu0 }
 0x351   :  { %v2292_v9 = vmax.f32 %v2047_v46, 0.0  ;;  %2479 = vadd.xlane.f32.xlu1 %v2373_v7 }
 0x352   :  { %v2051_v10 = vpop.f32.mrf.mxu0 }
 0x353   :  { %v2374_v11 = vmul.f32 %v5225_v28, %v2292_v9  ;;  %v2052_v22 = vadd.f32 %v5216_v32, %v2051_v10 }
 0x354   :  { %v3690_v53 = vpop.f32.mrf.mxu0 }
 0x355   :  { %v2293_v13 = vmax.f32 %v2052_v22, 0.0  ;;  %2481 = vadd.xlane.f32.xlu0 %v2374_v11 }
 0x356   :  { %v2056_v25 = vpop.f32.mrf.mxu0 }
 0x357   :  { %v2375_v15 = vmul.f32 %v5225_v28, %v2293_v13  ;;  %v2057_v19 = vadd.f32 %v5216_v32, %v2056_v25 }
 0x358   :  { %v3693_v16 = vpop.f32.mrf.mxu0 }
 0x359   :  { %v2294_v21 = vmax.f32 %v2057_v19, 0.0  ;;  %2483 = vadd.xlane.f32.xlu1 %v2375_v15 }
 0x35a   :  { %v2061_v23 = vpop.f32.mrf.mxu0 }
 0x35b   :  { %v2376_v35 = vmul.f32 %v5225_v28, %v2294_v21  ;;  %v2062_v30 = vadd.f32 %v5216_v32, %v2061_v23 }
 0x35c   :  { %v3696_v24 = vpop.f32.mrf.mxu0 }
 0x35d   :  { %v2295_v27 = vmax.f32 %v2062_v30, 0.0  ;;  %2485 = vadd.xlane.f32.xlu0 %v2376_v35 }
 0x35e   :  { %v2418_v31 = vpop.xlane.xlu1 %2417  ;;  %v2066_v45 = vpop.f32.mrf.mxu0 }
 0x35f   :  { %v2377_v33 = vmul.f32 %v5225_v28, %v2295_v27  ;;  %v2574_v36 = vadd.f32 %v5380_v29, %v2418_v31  ;;  %v2067_v38 = vadd.f32 %v5216_v32, %v2066_v45 }
 0x360   :  { %v3699_v18 = vpop.f32.mrf.mxu0 }
 0x361   :  { %2650 = vst.msk [vmem:[%s5853_s7] sm:$0xff] %vm2649_vm1, %v2574_v36  ;;  %v2296_v17 = vmax.f32 %v2067_v38, 0.0  ;;  %2487 = vadd.xlane.f32.xlu1 %v2377_v33 }
 0x362   :  { %v2420_v55 = vpop.xlane.xlu0 %2419  ;;  %v2071_v39 = vpop.f32.mrf.mxu0 }
 0x363   :  { %v2378_v41 = vmul.f32 %v5225_v28, %v2296_v17  ;;  %v2575_v42 = vadd.f32 %v5380_v29, %v2420_v55  ;;  %v2072_v44 = vadd.f32 %v5216_v32, %v2071_v39 }
 0x364   :  { %v3702_v26 = vpop.f32.mrf.mxu0 }
 0x365   :  { %2651 = vst.msk [vmem:[%s5853_s7 + $0x8] sm:$0xff] %vm2649_vm1, %v2575_v42  ;;  %v2297_v6 = vmax.f32 %v2072_v44, 0.0  ;;  %2489 = vadd.xlane.f32.xlu0 %v2378_v41 }
 0x366   :  { %v2422_v2 = vpop.xlane.xlu0 %2421  ;;  %v2076_v20 = vpop.f32.mrf.mxu0 }
 0x367   :  { %v2379_v47 = vmul.f32 %v5225_v28, %v2297_v6  ;;  %v2576_v48 = vadd.f32 %v5380_v29, %v2422_v2  ;;  %v2077_v50 = vadd.f32 %v5216_v32, %v2076_v20 }
 0x368   :  { %v3705_v12 = vpop.f32.mrf.mxu0 }
 0x369   :  { %2652 = vst.msk [vmem:[%s5853_s7 + $0x10] sm:$0xff] %vm2649_vm1, %v2576_v48  ;;  %v2298_v5 = vmax.f32 %v2077_v50, 0.0  ;;  %2491 = vadd.xlane.f32.xlu1 %v2379_v47 }
 0x36a   :  { %v2424_v54 = vpop.xlane.xlu1 %2423  ;;  %v2081_v52 = vpop.f32.mrf.mxu0 }
 0x36b   :  { %v2380_v56 = vmul.f32 %v5225_v28, %v2298_v5  ;;  %v2577_v37 = vadd.f32 %v5380_v29, %v2424_v54  ;;  %v2082_v59 = vadd.f32 %v5216_v32, %v2081_v52 }
 0x36c   :  { %v3708_v61 = vpop.f32.mrf.mxu0 }
 0x36d   :  { %2653 = vst.msk [vmem:[%s5853_s7 + $0x18] sm:$0xff] %vm2649_vm1, %v2577_v37  ;;  %v2299_v58 = vmax.f32 %v2082_v59, 0.0  ;;  %2493 = vadd.xlane.f32.xlu0 %v2380_v56 }
 0x36e   :  { %v2426_v60 = vpop.xlane.xlu0 %2425  ;;  %v2086_v43 = vpop.f32.mrf.mxu0 }
 0x36f   :  { %v2381_v62 = vmul.f32 %v5225_v28, %v2299_v58  ;;  %v2578_v34 = vadd.f32 %v5380_v29, %v2426_v60  ;;  %v2087_v49 = vadd.f32 %v5216_v32, %v2086_v43 }
 0x370   :  { %v3711_v0 = vpop.f32.mrf.mxu0 }
 0x371   :  { %2654 = vst.msk [vmem:[%s5853_s7 + $0x20] sm:$0xff] %vm2649_vm1, %v2578_v34  ;;  %v2300_v57 = vmax.f32 %v2087_v49, 0.0  ;;  %2495 = vadd.xlane.f32.xlu1 %v2381_v62 }
 0x372   :  { %v2428_v4 = vpop.xlane.xlu1 %2427  ;;  %v2091_v1 = vpop.f32.mrf.mxu0 }
 0x373   :  { %v2382_v40 = vmul.f32 %v5225_v28, %v2300_v57  ;;  %v2579_v3 = vadd.f32 %v5380_v29, %v2428_v4  ;;  %v2092_v63 = vadd.f32 %v5216_v32, %v2091_v1 }
 0x374   :  { %v3714_v51 = vpop.f32.mrf.mxu0 }
 0x375   :  { %2655 = vst.msk [vmem:[%s5853_s7 + $0x28] sm:$0xff] %vm2649_vm1, %v2579_v3  ;;  %v2301_v14 = vmax.f32 %v2092_v63, 0.0  ;;  %2497 = vadd.xlane.f32.xlu0 %v2382_v40 }
 0x376   :  { %v2430_v7 = vpop.xlane.xlu0 %2429  ;;  %v2096_v46 = vpop.f32.mrf.mxu0 }
 0x377   :  { %v2383_v8 = vmul.f32 %v5225_v28, %v2301_v14  ;;  %v2580_v9 = vadd.f32 %v5380_v29, %v2430_v7  ;;  %v2097_v10 = vadd.f32 %v5216_v32, %v2096_v46 }
 0x378   :  { %v3717_v11 = vpop.f32.mrf.mxu0 }
 0x379   :  { %2656 = vst.msk [vmem:[%s5853_s7 + $0x30] sm:$0xff] %vm2649_vm1, %v2580_v9  ;;  %v2302_v22 = vmax.f32 %v2097_v10, 0.0  ;;  %2499 = vadd.xlane.f32.xlu1 %v2383_v8 }
 0x37a   :  { %v2432_v53 = vpop.xlane.xlu1 %2431  ;;  %v2101_v13 = vpop.f32.mrf.mxu0 }
 0x37b   :  { %v2384_v25 = vmul.f32 %v5225_v28, %v2302_v22  ;;  %v2581_v15 = vadd.f32 %v5380_v29, %v2432_v53  ;;  %v2102_v19 = vadd.f32 %v5216_v32, %v2101_v13  ;;  %v5492_v22 = vld [vmem:[%s5850_s4 + $0x2] ss:$0 sm:$0xff] }
 0x37c   :  { %v3720_v16 = vpop.f32.mrf.mxu0 }
 0x37d   :  { %2657 = vst.msk [vmem:[%s5853_s7 + $0x38] sm:$0xff] %vm2649_vm1, %v2581_v15  ;;  %v2303_v21 = vmax.f32 %v2102_v19, 0.0  ;;  %2501 = vadd.xlane.f32.xlu0 %v2384_v25 }
 0x37e   :  { %v2434_v23 = vpop.xlane.xlu0 %2433  ;;  %v2106_v35 = vpop.f32.mrf.mxu0 }
 0x37f   :  { %v2385_v30 = vmul.f32 %v5225_v28, %v2303_v21  ;;  %v2582_v24 = vadd.f32 %v5380_v29, %v2434_v23  ;;  %v2107_v27 = vadd.f32 %v5216_v32, %v2106_v35 }
 0x380   :  { %v3723_v31 = vpop.f32.mrf.mxu0 }
 0x381   :  { %2658 = vst.msk [vmem:[%s5853_s7 + $0x40] sm:$0xff] %vm2649_vm1, %v2582_v24  ;;  %v2304_v45 = vmax.f32 %v2107_v27, 0.0  ;;  %2503 = vadd.xlane.f32.xlu1 %v2385_v30 }
 0x382   :  { %v2436_v33 = vpop.xlane.xlu1 %2435  ;;  %v2111_v36 = vpop.f32.mrf.mxu0 }
 0x383   :  { %v2386_v38 = vmul.f32 %v5225_v28, %v2304_v45  ;;  %v2583_v18 = vadd.f32 %v5380_v29, %v2436_v33  ;;  %v2112_v17 = vadd.f32 %v5216_v32, %v2111_v36 }
 0x384   :  { %v3726_v55 = vpop.f32.mrf.mxu0 }
 0x385   :  { %2659 = vst.msk [vmem:[%s5853_s7 + $0x48] sm:$0xff] %vm2649_vm1, %v2583_v18  ;;  %v2305_v39 = vmax.f32 %v2112_v17, 0.0  ;;  %2505 = vadd.xlane.f32.xlu0 %v2386_v38 }
 0x386   :  { %v2438_v41 = vpop.xlane.xlu0 %2437  ;;  %v2116_v42 = vpop.f32.mrf.mxu0 }
 0x387   :  { %v2387_v44 = vmul.f32 %v5225_v28, %v2305_v39  ;;  %v2584_v26 = vadd.f32 %v5380_v29, %v2438_v41  ;;  %v2117_v6 = vadd.f32 %v5216_v32, %v2116_v42 }
 0x388   :  { %v3729_v2 = vpop.f32.mrf.mxu0 }
 0x389   :  { %2660 = vst.msk [vmem:[%s5853_s7 + $0x50] sm:$0xff] %vm2649_vm1, %v2584_v26  ;;  %v2306_v20 = vmax.f32 %v2117_v6, 0.0  ;;  %2507 = vadd.xlane.f32.xlu1 %v2387_v44 }
 0x38a   :  { %v2440_v47 = vpop.xlane.xlu1 %2439  ;;  %v2121_v48 = vpop.f32.mrf.mxu0 }
 0x38b   :  { %v2388_v50 = vmul.f32 %v5225_v28, %v2306_v20  ;;  %v2585_v12 = vadd.f32 %v5380_v29, %v2440_v47  ;;  %v2122_v5 = vadd.f32 %v5216_v32, %v2121_v48 }
 0x38c   :  { %v3732_v54 = vpop.f32.mrf.mxu0 }
 0x38d   :  { %2661 = vst.msk [vmem:[%s5853_s7 + $0x58] sm:$0xff] %vm2649_vm1, %v2585_v12  ;;  %v2307_v52 = vmax.f32 %v2122_v5, 0.0  ;;  %2509 = vadd.xlane.f32.xlu0 %v2388_v50 }
 0x38e   :  { %v2442_v56 = vpop.xlane.xlu0 %2441  ;;  %v2126_v37 = vpop.f32.mrf.mxu0 }
 0x38f   :  { %v2389_v59 = vmul.f32 %v5225_v28, %v2307_v52  ;;  %v2586_v61 = vadd.f32 %v5380_v29, %v2442_v56  ;;  %v2127_v58 = vadd.f32 %v5216_v32, %v2126_v37 }
 0x390   :  { %v3735_v60 = vpop.f32.mrf.mxu0 }
 0x391   :  { %2662 = vst.msk [vmem:[%s5853_s7 + $0x60] sm:$0xff] %vm2649_vm1, %v2586_v61  ;;  %v2308_v43 = vmax.f32 %v2127_v58, 0.0  ;;  %2511 = vadd.xlane.f32.xlu1 %v2389_v59 }
 0x392   :  { %v2444_v62 = vpop.xlane.xlu1 %2443  ;;  %v2131_v34 = vpop.f32.mrf.mxu0 }
 0x393   :  { %v2390_v49 = vmul.f32 %v5225_v28, %v2308_v43  ;;  %v2587_v0 = vadd.f32 %v5380_v29, %v2444_v62  ;;  %v2132_v57 = vadd.f32 %v5216_v32, %v2131_v34 }
 0x394   :  { %v3738_v4 = vpop.f32.mrf.mxu0 }
 0x395   :  { %2663 = vst.msk [vmem:[%s5853_s7 + $0x68] sm:$0xff] %vm2649_vm1, %v2587_v0  ;;  %v2309_v1 = vmax.f32 %v2132_v57, 0.0  ;;  %2513 = vadd.xlane.f32.xlu0 %v2390_v49 }
 0x396   :  { %v2446_v40 = vpop.xlane.xlu0 %2445  ;;  %v2136_v3 = vpop.f32.mrf.mxu0 }
 0x397   :  { %v2391_v63 = vmul.f32 %v5225_v28, %v2309_v1  ;;  %v2588_v51 = vadd.f32 %v5380_v29, %v2446_v40  ;;  %v2137_v14 = vadd.f32 %v5216_v32, %v2136_v3 }
 0x398   :  { %v3741_v7 = vpop.f32.mrf.mxu0 }
 0x399   :  { %2664 = vst.msk [vmem:[%s5853_s7 + $0x70] sm:$0xff] %vm2649_vm1, %v2588_v51  ;;  %v2310_v46 = vmax.f32 %v2137_v14, 0.0  ;;  %2515 = vadd.xlane.f32.xlu1 %v2391_v63 }
 0x39a   :  { %v2448_v8 = vpop.xlane.xlu1 %2447  ;;  %v2141_v9 = vpop.f32.mrf.mxu0 }
 0x39b   :  { %v2392_v10 = vmul.f32 %v5225_v28, %v2310_v46  ;;  %v2589_v11 = vadd.f32 %v5380_v29, %v2448_v8  ;;  %v2142_v32 = vadd.f32 %v5492_v22, %v2141_v9  ;;  %v5502_v28 = vld [vmem:[%s5851_s5] ss:$0 sm:$0xff] }
 0x39c   :  { %v3744_v53 = vpop.f32.mrf.mxu0 }
 0x39d   :  { %2665 = vst.msk [vmem:[%s5853_s7 + $0x78] sm:$0xff] %vm2649_vm1, %v2589_v11  ;;  %v2311_v13 = vmax.f32 %v2142_v32, 0.0  ;;  %2517 = vadd.xlane.f32.xlu0 %v2392_v10 }
 0x39e   :  { %v2450_v25 = vpop.xlane.xlu0 %2449  ;;  %v2146_v15 = vpop.f32.mrf.mxu0 }
 0x39f   :  { %v2393_v19 = vmul.f32 %v5502_v28, %v2311_v13  ;;  %v2590_v16 = vadd.f32 %v5380_v29, %v2450_v25  ;;  %v2147_v21 = vadd.f32 %v5492_v22, %v2146_v15 }
 0x3a0   :  { %v3747_v23 = vpop.f32.mrf.mxu0 }
 0x3a1   :  { %2666 = vst.msk [vmem:[%s5853_s7 + $0x80] sm:$0xff] %vm2649_vm1, %v2590_v16  ;;  %v2312_v35 = vmax.f32 %v2147_v21, 0.0  ;;  %2519 = vadd.xlane.f32.xlu1 %v2393_v19 }
 0x3a2   :  { %v2452_v30 = vpop.xlane.xlu1 %2451  ;;  %v2151_v24 = vpop.f32.mrf.mxu0 }
 0x3a3   :  { %v2394_v27 = vmul.f32 %v5502_v28, %v2312_v35  ;;  %v2591_v31 = vadd.f32 %v5380_v29, %v2452_v30  ;;  %v2152_v45 = vadd.f32 %v5492_v22, %v2151_v24 }
 0x3a4   :  { %v3750_v33 = vpop.f32.mrf.mxu0 }
 0x3a5   :  { %2667 = vst.msk [vmem:[%s5853_s7 + $0x88] sm:$0xff] %vm2649_vm1, %v2591_v31  ;;  %v2313_v36 = vmax.f32 %v2152_v45, 0.0  ;;  %2521 = vadd.xlane.f32.xlu0 %v2394_v27 }
 0x3a6   :  { %v2454_v38 = vpop.xlane.xlu0 %2453  ;;  %v2156_v18 = vpop.f32.mrf.mxu0 }
 0x3a7   :  { %v2395_v17 = vmul.f32 %v5502_v28, %v2313_v36  ;;  %v2592_v55 = vadd.f32 %v5380_v29, %v2454_v38  ;;  %v2157_v39 = vadd.f32 %v5492_v22, %v2156_v18 }
 0x3a8   :  { %v3753_v41 = vpop.f32.mrf.mxu0 }
 0x3a9   :  { %2668 = vst.msk [vmem:[%s5853_s7 + $0x90] sm:$0xff] %vm2649_vm1, %v2592_v55  ;;  %v2314_v42 = vmax.f32 %v2157_v39, 0.0  ;;  %2523 = vadd.xlane.f32.xlu1 %v2395_v17 }
 0x3aa   :  { %v2456_v44 = vpop.xlane.xlu1 %2455  ;;  %v2161_v26 = vpop.f32.mrf.mxu0 }
 0x3ab   :  { %v2396_v6 = vmul.f32 %v5502_v28, %v2314_v42  ;;  %v2593_v2 = vadd.f32 %v5380_v29, %v2456_v44  ;;  %v2162_v20 = vadd.f32 %v5492_v22, %v2161_v26 }
 0x3ac   :  { %v3756_v47 = vpop.f32.mrf.mxu0 }
 0x3ad   :  { %2669 = vst.msk [vmem:[%s5853_s7 + $0x98] sm:$0xff] %vm2649_vm1, %v2593_v2  ;;  %v2315_v48 = vmax.f32 %v2162_v20, 0.0  ;;  %2525 = vadd.xlane.f32.xlu0 %v2396_v6 }
 0x3ae   :  { %v2458_v50 = vpop.xlane.xlu0 %2457  ;;  %v2166_v12 = vpop.f32.mrf.mxu0 }
 0x3af   :  { %v2397_v5 = vmul.f32 %v5502_v28, %v2315_v48  ;;  %v2594_v54 = vadd.f32 %v5380_v29, %v2458_v50  ;;  %v2167_v52 = vadd.f32 %v5492_v22, %v2166_v12 }
 0x3b0   :  { %v3759_v56 = vpop.f32.mrf.mxu0 }
 0x3b1   :  { %2670 = vst.msk [vmem:[%s5853_s7 + $0xa0] sm:$0xff] %vm2649_vm1, %v2594_v54  ;;  %v2316_v37 = vmax.f32 %v2167_v52, 0.0  ;;  %2527 = vadd.xlane.f32.xlu1 %v2397_v5 }
 0x3b2   :  { %v2460_v59 = vpop.xlane.xlu1 %2459  ;;  %v2171_v61 = vpop.f32.mrf.mxu0 }
 0x3b3   :  { %v2398_v58 = vmul.f32 %v5502_v28, %v2316_v37  ;;  %v2595_v60 = vadd.f32 %v5380_v29, %v2460_v59  ;;  %v2172_v43 = vadd.f32 %v5492_v22, %v2171_v61 }
 0x3b4   :  { %v3762_v62 = vpop.f32.mrf.mxu0 }
 0x3b5   :  { %2671 = vst.msk [vmem:[%s5853_s7 + $0xa8] sm:$0xff] %vm2649_vm1, %v2595_v60  ;;  %v2317_v34 = vmax.f32 %v2172_v43, 0.0  ;;  %2529 = vadd.xlane.f32.xlu0 %v2398_v58 }
 0x3b6   :  { %v2462_v49 = vpop.xlane.xlu0 %2461  ;;  %v2176_v0 = vpop.f32.mrf.mxu0 }
 0x3b7   :  { %v2399_v57 = vmul.f32 %v5502_v28, %v2317_v34  ;;  %v2596_v4 = vadd.f32 %v5380_v29, %v2462_v49  ;;  %v2177_v1 = vadd.f32 %v5492_v22, %v2176_v0 }
 0x3b8   :  { %v3765_v40 = vpop.f32.mrf.mxu0 }
 0x3b9   :  { %2672 = vst.msk [vmem:[%s5853_s7 + $0xb0] sm:$0xff] %vm2649_vm1, %v2596_v4  ;;  %v2318_v3 = vmax.f32 %v2177_v1, 0.0  ;;  %2531 = vadd.xlane.f32.xlu1 %v2399_v57 }
 0x3ba   :  { %v2464_v63 = vpop.xlane.xlu1 %2463  ;;  %v2181_v51 = vpop.f32.mrf.mxu0 }
 0x3bb   :  { %v2400_v14 = vmul.f32 %v5502_v28, %v2318_v3  ;;  %v2597_v7 = vadd.f32 %v5380_v29, %v2464_v63  ;;  %v2182_v46 = vadd.f32 %v5492_v22, %v2181_v51 }
 0x3bc   :  { %v3768_v8 = vpop.f32.mrf.mxu0 }
 0x3bd   :  { %2673 = vst.msk [vmem:[%s5853_s7 + $0xb8] sm:$0xff] %vm2649_vm1, %v2597_v7  ;;  %v2319_v9 = vmax.f32 %v2182_v46, 0.0  ;;  %2533 = vadd.xlane.f32.xlu0 %v2400_v14 }
 0x3be   :  { %v2466_v10 = vpop.xlane.xlu0 %2465  ;;  %v2186_v11 = vpop.f32.mrf.mxu0 }
 0x3bf   :  { %v2401_v32 = vmul.f32 %v5502_v28, %v2319_v9  ;;  %v2598_v53 = vadd.f32 %v5380_v29, %v2466_v10  ;;  %v2187_v13 = vadd.f32 %v5492_v22, %v2186_v11 }
 0x3c0   :  { %v3771_v25 = vpop.f32.mrf.mxu0 }
 0x3c1   :  { %2674 = vst.msk [vmem:[%s5853_s7 + $0xc0] sm:$0xff] %vm2649_vm1, %v2598_v53  ;;  %v2320_v15 = vmax.f32 %v2187_v13, 0.0  ;;  %2535 = vadd.xlane.f32.xlu1 %v2401_v32 }
 0x3c2   :  { %v2468_v19 = vpop.xlane.xlu1 %2467  ;;  %v2191_v16 = vpop.f32.mrf.mxu0 }
 0x3c3   :  { %v2402_v21 = vmul.f32 %v5502_v28, %v2320_v15  ;;  %v2599_v23 = vadd.f32 %v5380_v29, %v2468_v19  ;;  %v2192_v35 = vadd.f32 %v5492_v22, %v2191_v16 }
 0x3c4   :  { %v3774_v30 = vpop.f32.mrf.mxu0 }
 0x3c5   :  { %2675 = vst.msk [vmem:[%s5853_s7 + $0xc8] sm:$0xff] %vm2649_vm1, %v2599_v23  ;;  %v2321_v24 = vmax.f32 %v2192_v35, 0.0  ;;  %2537 = vadd.xlane.f32.xlu0 %v2402_v21 }
 0x3c6   :  { %v2470_v27 = vpop.xlane.xlu0 %2469  ;;  %v2196_v31 = vpop.f32.mrf.mxu0 }
 0x3c7   :  { %v2403_v45 = vmul.f32 %v5502_v28, %v2321_v24  ;;  %v2600_v33 = vadd.f32 %v5380_v29, %v2470_v27  ;;  %v2197_v36 = vadd.f32 %v5492_v22, %v2196_v31 }
 0x3c8   :  { %v3777_v38 = vpop.f32.mrf.mxu0 }
 0x3c9   :  { %2676 = vst.msk [vmem:[%s5853_s7 + $0xd0] sm:$0xff] %vm2649_vm1, %v2600_v33  ;;  %v2322_v18 = vmax.f32 %v2197_v36, 0.0  ;;  %2539 = vadd.xlane.f32.xlu1 %v2403_v45 }
 0x3ca   :  { %v2472_v17 = vpop.xlane.xlu1 %2471  ;;  %v2201_v55 = vpop.f32.mrf.mxu0 }
 0x3cb   :  { %v2404_v39 = vmul.f32 %v5502_v28, %v2322_v18  ;;  %v2601_v41 = vadd.f32 %v5380_v29, %v2472_v17  ;;  %v2202_v42 = vadd.f32 %v5492_v22, %v2201_v55 }
 0x3cc   :  { %v3780_v44 = vpop.f32.mrf.mxu0 }
 0x3cd   :  { %2677 = vst.msk [vmem:[%s5853_s7 + $0xd8] sm:$0xff] %vm2649_vm1, %v2601_v41  ;;  %v2323_v26 = vmax.f32 %v2202_v42, 0.0  ;;  %2541 = vadd.xlane.f32.xlu0 %v2404_v39 }
 0x3ce   :  { %v2474_v6 = vpop.xlane.xlu0 %2473  ;;  %v2206_v2 = vpop.f32.mrf.mxu0 }
 0x3cf   :  { %v2405_v20 = vmul.f32 %v5502_v28, %v2323_v26  ;;  %v2602_v47 = vadd.f32 %v5380_v29, %v2474_v6  ;;  %v2207_v48 = vadd.f32 %v5492_v22, %v2206_v2 }
 0x3d0   :  { %v3783_v50 = vpop.f32.mrf.mxu0 }
 0x3d1   :  { %2678 = vst.msk [vmem:[%s5853_s7 + $0xe0] sm:$0xff] %vm2649_vm1, %v2602_v47  ;;  %v2324_v12 = vmax.f32 %v2207_v48, 0.0  ;;  %2543 = vadd.xlane.f32.xlu1 %v2405_v20 }
 0x3d2   :  { %v2476_v5 = vpop.xlane.xlu1 %2475  ;;  %v2211_v54 = vpop.f32.mrf.mxu0 }
 0x3d3   :  { %v2406_v52 = vmul.f32 %v5502_v28, %v2324_v12  ;;  %v2603_v56 = vadd.f32 %v5380_v29, %v2476_v5  ;;  %v2212_v37 = vadd.f32 %v5492_v22, %v2211_v54 }
 0x3d4   :  { %v3786_v59 = vpop.f32.mrf.mxu0 }
 0x3d5   :  { %2679 = vst.msk [vmem:[%s5853_s7 + $0xe8] sm:$0xff] %vm2649_vm1, %v2603_v56  ;;  %v2325_v61 = vmax.f32 %v2212_v37, 0.0  ;;  %2545 = vadd.xlane.f32.xlu0 %v2406_v52 }
 0x3d6   :  { %v2478_v58 = vpop.xlane.xlu0 %2477  ;;  %v2216_v60 = vpop.f32.mrf.mxu0 }
 0x3d7   :  { %v2407_v43 = vmul.f32 %v5502_v28, %v2325_v61  ;;  %v2604_v62 = vadd.f32 %v5380_v29, %v2478_v58  ;;  %v2217_v34 = vadd.f32 %v5492_v22, %v2216_v60 }
 0x3d8   :  { %v3789_v49 = vpop.f32.mrf.mxu0 }
 0x3d9   :  { %2680 = vst.msk [vmem:[%s5853_s7 + $0xf0] sm:$0xff] %vm2649_vm1, %v2604_v62  ;;  %v2326_v0 = vmax.f32 %v2217_v34, 0.0  ;;  %2547 = vadd.xlane.f32.xlu1 %v2407_v43 }
 0x3da   :  { %v2480_v57 = vpop.xlane.xlu1 %2479  ;;  %v2221_v4 = vpop.f32.mrf.mxu0 }
 0x3db   :  { %v2408_v1 = vmul.f32 %v5502_v28, %v2326_v0  ;;  %v2605_v40 = vadd.f32 %v5380_v29, %v2480_v57  ;;  %v2222_v3 = vadd.f32 %v5492_v22, %v2221_v4 }
 0x3dc   :  { %v3792_v63 = vpop.f32.mrf.mxu0 }
 0x3dd   :  { %2681 = vst.msk [vmem:[%s5853_s7 + $0xf8] sm:$0xff] %vm2649_vm1, %v2605_v40  ;;  %v2327_v51 = vmax.f32 %v2222_v3, 0.0  ;;  %2549 = vadd.xlane.f32.xlu0 %v2408_v1 }
 0x3de   :  { %v2482_v14 = vpop.xlane.xlu0 %2481  ;;  %v2226_v7 = vpop.f32.mrf.mxu0 }
 0x3df   :  { %v2409_v46 = vmul.f32 %v5502_v28, %v2327_v51  ;;  %v2606_v8 = vadd.f32 %v5380_v29, %v2482_v14  ;;  %v2227_v9 = vadd.f32 %v5492_v22, %v2226_v7 }
 0x3e0   :  { %v3795_v10 = vpop.f32.mrf.mxu0 }
 0x3e1   :  { %2682 = vst.msk [vmem:[%s5853_s7 + $0x100] sm:$0xff] %vm2649_vm1, %v2606_v8  ;;  %v2328_v11 = vmax.f32 %v2227_v9, 0.0  ;;  %2551 = vadd.xlane.f32.xlu1 %v2409_v46 }
 0x3e2   :  { %v2484_v32 = vpop.xlane.xlu1 %2483  ;;  %v2231_v53 = vpop.f32.mrf.mxu0 }
 0x3e3   :  { %v2410_v13 = vmul.f32 %v5502_v28, %v2328_v11  ;;  %v2607_v25 = vadd.f32 %v5380_v29, %v2484_v32  ;;  %v2232_v15 = vadd.f32 %v5492_v22, %v2231_v53 }
 0x3e4   :  { %v3798_v19 = vpop.f32.mrf.mxu0 }
 0x3e5   :  { %2683 = vst.msk [vmem:[%s5853_s7 + $0x108] sm:$0xff] %vm2649_vm1, %v2607_v25  ;;  %v2329_v16 = vmax.f32 %v2232_v15, 0.0  ;;  %2553 = vadd.xlane.f32.xlu0 %v2410_v13 }
 0x3e6   :  { %v2486_v21 = vpop.xlane.xlu0 %2485  ;;  %v2236_v23 = vpop.f32.mrf.mxu0 }
 0x3e7   :  { %v2411_v35 = vmul.f32 %v5502_v28, %v2329_v16  ;;  %v2608_v30 = vadd.f32 %v5380_v29, %v2486_v21  ;;  %v2237_v24 = vadd.f32 %v5492_v22, %v2236_v23 }
 0x3e8   :  { %v3801_v27 = vpop.f32.mrf.mxu0 }
 0x3e9   :  { %2684 = vst.msk [vmem:[%s5853_s7 + $0x110] sm:$0xff] %vm2649_vm1, %v2608_v30  ;;  %v2330_v31 = vmax.f32 %v2237_v24, 0.0  ;;  %2555 = vadd.xlane.f32.xlu1 %v2411_v35 }
 0x3ea   :  { %v2488_v45 = vpop.xlane.xlu1 %2487  ;;  %v2241_v33 = vpop.f32.mrf.mxu0 }
 0x3eb   :  { %v2412_v36 = vmul.f32 %v5502_v28, %v2330_v31  ;;  %v2609_v38 = vadd.f32 %v5380_v29, %v2488_v45  ;;  %v2242_v18 = vadd.f32 %v5492_v22, %v2241_v33 }
 0x3ec   :  { %v3804_v17 = vpop.f32.mrf.mxu0 }
 0x3ed   :  { %2685 = vst.msk [vmem:[%s5853_s7 + $0x118] sm:$0xff] %vm2649_vm1, %v2609_v38  ;;  %v2331_v55 = vmax.f32 %v2242_v18, 0.0  ;;  %2557 = vadd.xlane.f32.xlu0 %v2412_v36 }
 0x3ee   :  { %v2490_v39 = vpop.xlane.xlu0 %2489  ;;  %v2246_v41 = vpop.f32.mrf.mxu0 }
 0x3ef   :  { %v2413_v42 = vmul.f32 %v5502_v28, %v2331_v55  ;;  %v2610_v44 = vadd.f32 %v5380_v29, %v2490_v39  ;;  %v2247_v26 = vadd.f32 %v5492_v22, %v2246_v41 }
 0x3f0   :  { %v3807_v6 = vpop.f32.mrf.mxu0 }
 0x3f1   :  { %2686 = vst.msk [vmem:[%s5853_s7 + $0x120] sm:$0xff] %vm2649_vm1, %v2610_v44  ;;  %v2332_v2 = vmax.f32 %v2247_v26, 0.0  ;;  %2559 = vadd.xlane.f32.xlu1 %v2413_v42 }
 0x3f2   :  { %v2492_v20 = vpop.xlane.xlu1 %2491  ;;  %v2251_v47 = vpop.f32.mrf.mxu0 }
 0x3f3   :  { %v2414_v48 = vmul.f32 %v5502_v28, %v2332_v2  ;;  %v2611_v50 = vadd.f32 %v5380_v29, %v2492_v20  ;;  %v2252_v12 = vadd.f32 %v5492_v22, %v2251_v47 }
 0x3f4   :  { %v3810_v5 = vpop.f32.mrf.mxu0 }
 0x3f5   :  { %2687 = vst.msk [vmem:[%s5853_s7 + $0x128] sm:$0xff] %vm2649_vm1, %v2611_v50  ;;  %v2333_v54 = vmax.f32 %v2252_v12, 0.0  ;;  %2561 = vadd.xlane.f32.xlu0 %v2414_v48 }
 0x3f6   :  { %v2494_v52 = vpop.xlane.xlu0 %2493  ;;  %v2256_v56 = vpop.f32.mrf.mxu0 }
 0x3f7   :  { %v2415_v37 = vmul.f32 %v5502_v28, %v2333_v54  ;;  %v2612_v59 = vadd.f32 %v5380_v29, %v2494_v52  ;;  %v2257_v61 = vadd.f32 %v5492_v22, %v2256_v56 }
 0x3f8   :  { %v3813_v58 = vpop.f32.mrf.mxu0 }
 0x3f9   :  { %2688 = vst.msk [vmem:[%s5853_s7 + $0x130] sm:$0xff] %vm2649_vm1, %v2612_v59  ;;  %v2334_v60 = vmax.f32 %v2257_v61, 0.0  ;;  %2563 = vadd.xlane.f32.xlu1 %v2415_v37 }
 0x3fa   :  { %v2496_v43 = vpop.xlane.xlu1 %2495 }
 0x3fb   :  { %v2416_v62 = vmul.f32 %v5502_v28, %v2334_v60  ;;  %v2613_v34 = vadd.f32 %v5380_v29, %v2496_v43 }
 0x3fd   :  { %2689 = vst.msk [vmem:[%s5853_s7 + $0x138] sm:$0xff] %vm2649_vm1, %v2613_v34  ;;  %2565 = vadd.xlane.f32.xlu0 %v2416_v62 }
 0x3fe   :  { %v2498_v22 = vpop.xlane.xlu0 %2497 }
 0x3ff   :  { %v2614_v49 = vadd.f32 %v5380_v29, %v2498_v22 }
 0x401   :  { %2690 = vst.msk [vmem:[%s5853_s7 + $0x140] sm:$0xff] %vm2649_vm1, %v2614_v49 }
 0x402   :  { %v2500_v0 = vpop.xlane.xlu1 %2499 }
 0x403   :  { %v2615_v57 = vadd.f32 %v5380_v29, %v2500_v0 }
 0x405   :  { %2691 = vst.msk [vmem:[%s5853_s7 + $0x148] sm:$0xff] %vm2649_vm1, %v2615_v57 }
 0x406   :  { %v2502_v28 = vpop.xlane.xlu0 %2501 }
 0x407   :  { %v2616_v4 = vadd.f32 %v5380_v29, %v2502_v28 }
 0x409   :  { %2692 = vst.msk [vmem:[%s5853_s7 + $0x150] sm:$0xff] %vm2649_vm1, %v2616_v4 }
 0x40a   :  { %v2504_v1 = vpop.xlane.xlu1 %2503 }
 0x40b   :  { %v2617_v40 = vadd.f32 %v5380_v29, %v2504_v1 }
 0x40d   :  { %2693 = vst.msk [vmem:[%s5853_s7 + $0x158] sm:$0xff] %vm2649_vm1, %v2617_v40 }
 0x40e   :  { %v2506_v3 = vpop.xlane.xlu0 %2505 }
 0x40f   :  { %v2618_v63 = vadd.f32 %v5380_v29, %v2506_v3 }
 0x411   :  { %2694 = vst.msk [vmem:[%s5853_s7 + $0x160] sm:$0xff] %vm2649_vm1, %v2618_v63 }
 0x412   :  { %v2508_v51 = vpop.xlane.xlu1 %2507 }
 0x413   :  { %v2619_v14 = vadd.f32 %v5380_v29, %v2508_v51 }
 0x415   :  { %2695 = vst.msk [vmem:[%s5853_s7 + $0x168] sm:$0xff] %vm2649_vm1, %v2619_v14 }
 0x416   :  { %v2510_v7 = vpop.xlane.xlu0 %2509 }
 0x417   :  { %v2620_v46 = vadd.f32 %v5380_v29, %v2510_v7 }
 0x419   :  { %2696 = vst.msk [vmem:[%s5853_s7 + $0x170] sm:$0xff] %vm2649_vm1, %v2620_v46 }
 0x41a   :  { %v2512_v8 = vpop.xlane.xlu1 %2511 }
 0x41b   :  { %v2621_v9 = vadd.f32 %v5380_v29, %v2512_v8 }
 0x41d   :  { %2697 = vst.msk [vmem:[%s5853_s7 + $0x178] sm:$0xff] %vm2649_vm1, %v2621_v9 }
 0x41e   :  { %v2514_v10 = vpop.xlane.xlu0 %2513 }
 0x41f   :  { %v2622_v11 = vadd.f32 %v5380_v29, %v2514_v10 }
 0x421   :  { %2698 = vst.msk [vmem:[%s5853_s7 + $0x180] sm:$0xff] %vm2649_vm1, %v2622_v11 }
 0x422   :  { %v2516_v32 = vpop.xlane.xlu1 %2515 }
 0x423   :  { %v2623_v53 = vadd.f32 %v5380_v29, %v2516_v32 }
 0x425   :  { %2699 = vst.msk [vmem:[%s5853_s7 + $0x188] sm:$0xff] %vm2649_vm1, %v2623_v53 }
 0x426   :  { %v2518_v13 = vpop.xlane.xlu0 %2517 }
 0x427   :  { %v2624_v25 = vadd.f32 %v5380_v29, %v2518_v13 }
 0x429   :  { %2700 = vst.msk [vmem:[%s5853_s7 + $0x190] sm:$0xff] %vm2649_vm1, %v2624_v25 }
 0x42a   :  { %v2520_v15 = vpop.xlane.xlu1 %2519 }
 0x42b   :  { %v2625_v19 = vadd.f32 %v5380_v29, %v2520_v15 }
 0x42d   :  { %2701 = vst.msk [vmem:[%s5853_s7 + $0x198] sm:$0xff] %vm2649_vm1, %v2625_v19 }
 0x42e   :  { %v2522_v16 = vpop.xlane.xlu0 %2521 }
 0x42f   :  { %v2626_v21 = vadd.f32 %v5380_v29, %v2522_v16 }
 0x431   :  { %2702 = vst.msk [vmem:[%s5853_s7 + $0x1a0] sm:$0xff] %vm2649_vm1, %v2626_v21 }
 0x432   :  { %v2524_v23 = vpop.xlane.xlu1 %2523 }
 0x433   :  { %v2627_v35 = vadd.f32 %v5380_v29, %v2524_v23 }
 0x435   :  { %2703 = vst.msk [vmem:[%s5853_s7 + $0x1a8] sm:$0xff] %vm2649_vm1, %v2627_v35 }
 0x436   :  { %v2526_v30 = vpop.xlane.xlu0 %2525 }
 0x437   :  { %v2628_v24 = vadd.f32 %v5380_v29, %v2526_v30 }
 0x439   :  { %2704 = vst.msk [vmem:[%s5853_s7 + $0x1b0] sm:$0xff] %vm2649_vm1, %v2628_v24 }
 0x43a   :  { %v2528_v27 = vpop.xlane.xlu1 %2527 }
 0x43b   :  { %v2629_v31 = vadd.f32 %v5380_v29, %v2528_v27 }
 0x43d   :  { %2705 = vst.msk [vmem:[%s5853_s7 + $0x1b8] sm:$0xff] %vm2649_vm1, %v2629_v31 }
 0x43e   :  { %v2530_v45 = vpop.xlane.xlu0 %2529 }
 0x43f   :  { %v2630_v33 = vadd.f32 %v5380_v29, %v2530_v45 }
 0x441   :  { %2706 = vst.msk [vmem:[%s5853_s7 + $0x1c0] sm:$0xff] %vm2649_vm1, %v2630_v33 }
 0x442   :  { %v2532_v36 = vpop.xlane.xlu1 %2531 }
 0x443   :  { %v2631_v38 = vadd.f32 %v5380_v29, %v2532_v36 }
 0x445   :  { %2707 = vst.msk [vmem:[%s5853_s7 + $0x1c8] sm:$0xff] %vm2649_vm1, %v2631_v38 }
 0x446   :  { %v2534_v18 = vpop.xlane.xlu0 %2533 }
 0x447   :  { %v2632_v17 = vadd.f32 %v5380_v29, %v2534_v18 }
 0x449   :  { %2708 = vst.msk [vmem:[%s5853_s7 + $0x1d0] sm:$0xff] %vm2649_vm1, %v2632_v17 }
 0x44a   :  { %v2536_v55 = vpop.xlane.xlu1 %2535 }
 0x44b   :  { %v2633_v39 = vadd.f32 %v5380_v29, %v2536_v55 }
 0x44d   :  { %2709 = vst.msk [vmem:[%s5853_s7 + $0x1d8] sm:$0xff] %vm2649_vm1, %v2633_v39 }
 0x44e   :  { %v2538_v41 = vpop.xlane.xlu0 %2537 }
 0x44f   :  { %v2634_v42 = vadd.f32 %v5380_v29, %v2538_v41 }
 0x451   :  { %2710 = vst.msk [vmem:[%s5853_s7 + $0x1e0] sm:$0xff] %vm2649_vm1, %v2634_v42 }
 0x452   :  { %v2540_v44 = vpop.xlane.xlu1 %2539 }
 0x453   :  { %v2635_v26 = vadd.f32 %v5380_v29, %v2540_v44 }
 0x455   :  { %2711 = vst.msk [vmem:[%s5853_s7 + $0x1e8] sm:$0xff] %vm2649_vm1, %v2635_v26 }
 0x456   :  { %v2542_v6 = vpop.xlane.xlu0 %2541 }
 0x457   :  { %v2636_v2 = vadd.f32 %v5380_v29, %v2542_v6 }
 0x459   :  { %2712 = vst.msk [vmem:[%s5853_s7 + $0x1f0] sm:$0xff] %vm2649_vm1, %v2636_v2 }
 0x45a   :  { %v2544_v20 = vpop.xlane.xlu1 %2543 }
 0x45b   :  { %v2637_v47 = vadd.f32 %v5380_v29, %v2544_v20 }
 0x45d   :  { %2713 = vst.msk [vmem:[%s5853_s7 + $0x1f8] sm:$0xff] %vm2649_vm1, %v2637_v47 }
 0x45e   :  { %v2546_v48 = vpop.xlane.xlu0 %2545 }
 0x45f   :  { %v2638_v50 = vadd.f32 %v5380_v29, %v2546_v48 }
 0x461   :  { %2714 = vst.msk [vmem:[%s5853_s7 + $0x200] sm:$0xff] %vm2649_vm1, %v2638_v50 }
 0x462   :  { %v2548_v12 = vpop.xlane.xlu1 %2547 }
 0x463   :  { %v2639_v5 = vadd.f32 %v5380_v29, %v2548_v12 }
 0x465   :  { %2715 = vst.msk [vmem:[%s5853_s7 + $0x208] sm:$0xff] %vm2649_vm1, %v2639_v5 }
 0x466   :  { %v2550_v54 = vpop.xlane.xlu0 %2549 }
 0x467   :  { %v2640_v52 = vadd.f32 %v5380_v29, %v2550_v54 }
 0x469   :  { %2716 = vst.msk [vmem:[%s5853_s7 + $0x210] sm:$0xff] %vm2649_vm1, %v2640_v52 }
 0x46a   :  { %v2552_v56 = vpop.xlane.xlu1 %2551 }
 0x46b   :  { %v2641_v37 = vadd.f32 %v5380_v29, %v2552_v56 }
 0x46d   :  { %2717 = vst.msk [vmem:[%s5853_s7 + $0x218] sm:$0xff] %vm2649_vm1, %v2641_v37 }
 0x46e   :  { %v2554_v59 = vpop.xlane.xlu0 %2553 }
 0x46f   :  { %v2642_v61 = vadd.f32 %v5380_v29, %v2554_v59 }
 0x471   :  { %2718 = vst.msk [vmem:[%s5853_s7 + $0x220] sm:$0xff] %vm2649_vm1, %v2642_v61 }
 0x472   :  { %v2556_v58 = vpop.xlane.xlu1 %2555 }
 0x473   :  { %v2643_v60 = vadd.f32 %v5380_v29, %v2556_v58 }
 0x475   :  { %2719 = vst.msk [vmem:[%s5853_s7 + $0x228] sm:$0xff] %vm2649_vm1, %v2643_v60 }
 0x476   :  { %v2558_v43 = vpop.xlane.xlu0 %2557 }
 0x477   :  { %v2644_v62 = vadd.f32 %v5380_v29, %v2558_v43 }
 0x479   :  { %2720 = vst.msk [vmem:[%s5853_s7 + $0x230] sm:$0xff] %vm2649_vm1, %v2644_v62 }
 0x47a   :  { %v2560_v34 = vpop.xlane.xlu1 %2559 }
 0x47b   :  { %v2645_v22 = vadd.f32 %v5380_v29, %v2560_v34 }
 0x47d   :  { %2721 = vst.msk [vmem:[%s5853_s7 + $0x238] sm:$0xff] %vm2649_vm1, %v2645_v22 }
 0x47e   :  { %v2562_v49 = vpop.xlane.xlu0 %2561 }
 0x47f   :  { %v2646_v0 = vadd.f32 %v5380_v29, %v2562_v49 }
 0x481   :  { %2722 = vst.msk [vmem:[%s5853_s7 + $0x240] sm:$0xff] %vm2649_vm1, %v2646_v0 }
 0x482   :  { %v2564_v57 = vpop.xlane.xlu1 %2563 }
 0x483   :  { %v2647_v28 = vadd.f32 %v5380_v29, %v2564_v57 }
 0x485   :  { %2723 = vst.msk [vmem:[%s5853_s7 + $0x248] sm:$0xff] %vm2649_vm1, %v2647_v28 }
 0x486   :  { %v2566_v4 = vpop.xlane.xlu0 %2565 }
 0x487   :  { %v2648_v1 = vadd.f32 %v5380_v29, %v2566_v4 }
 0x489   :  { %2724 = vst.msk [vmem:[%s5853_s7 + $0x250] sm:$0xff] %vm2649_vm1, %v2648_v1 }

</bundles_post_ra>
